<compile_context>
chip_gen: v7x
topology: tpu7x:2x2x1
jax: 0.10.0
libtpu: 0.0.40
codegen_flags: <defaults>
</compile_context>

<pallas_src>
import math

import jax
import jax.numpy as jnp
from jax import lax
from jax.experimental import pallas as pl
from jax.experimental.pallas import tpu as pltpu

# ----------------------- scaled-down "DINO ViT" config ----------------------
PATCH = 14              # self.patch_size = 14 (kept exactly)
EMBED_DIM = 128         # ViT-base uses 768; scaled down, lane-aligned
NUM_HEADS = 4
HEAD_DIM = EMBED_DIM // NUM_HEADS
MLP_DIM = 4 * EMBED_DIM
DEPTH = 2               # ViT-base uses 12 blocks; scaled down
BEV_DIM = 64            # args.bev_latent_dim
LN_EPS = 1e-6
ATTN_SCALE = 1.0 / math.sqrt(HEAD_DIM)

LANE = 128
SUBLANE = 8
BEV_PAD = ((BEV_DIM + LANE - 1) // LANE) * LANE   # lane-dense output stores

# tanh GELU lowers to the EUP (separate VLIW slot, ~free) instead of a long erf
# polynomial on the VALU. Set False for a bit-closer match to nn.GELU(approximate='none').
USE_TANH_GELU = True


# --------------------------------- kernel -----------------------------------
def _layernorm(x, g, b):
    mu = jnp.mean(x, axis=-1, keepdims=True)
    var = jnp.mean((x - mu) ** 2, axis=-1, keepdims=True)
    return (x - mu) * lax.rsqrt(var + LN_EPS) * g + b


def encoder_kernel(xp_ref, tokbias_ref, kmask_ref, w_pe_ref,
                   ln1g_ref, ln1b_ref, wqkv_ref, bqkv_ref, wo_ref, bo_ref,
                   ln2g_ref, ln2b_ref, w1_ref, b1_ref, w2_ref, b2_ref,
                   lnfg_ref, lnfb_ref, wproj_ref, bproj_ref,
                   o_ref):
    """Fused DINO encoder for one image group.

    Token row layout per image: row 0 = CLS, rows 1..t_real-1 = patches,
    rows >= t_real = zero padding (masked out as attention keys, dropped in wrapper).
    All per-layer weights are stacked [DEPTH, ...] and fully VMEM-resident.
    """
    gb, t_pad, k_pad = xp_ref.shape
    dm = EMBED_DIM
    rows = gb * t_pad
    depth = wqkv_ref.shape[0]

    # -------- patch embed + CLS slot + positional embedding -----------------
    xp = xp_ref[...].reshape(rows, k_pad)                       # bf16 straight from HBM
    pe = jnp.dot(xp, w_pe_ref[...], preferred_element_type=jnp.float32)
    # token_bias: row 0 = cls + pos[0]; rows 1..P = b_pe + pos[i]; pad rows = 0.
    x = (pe.reshape(gb, t_pad, dm) + tokbias_ref[...][None, :, :]).reshape(rows, dm)

    kmask = kmask_ref[...]                                      # f32 additive key mask, hoisted

    # -------- transformer blocks (static unroll; weights resident) ----------
    # TODO(synk): at ViT-base scale the stacked weights (~170 MB) do not fit VMEM;
    # stream one layer per grid step (depth axis, "arbitrary") as in the previous version.
    for d in range(depth):
        # --- multi-head self-attention ---
        xn = _layernorm(x, ln1g_ref[d], ln1b_ref[d])
        qkv = jnp.dot(xn.astype(jnp.bfloat16), wqkv_ref[d],
                      preferred_element_type=jnp.float32) + bqkv_ref[d]
        wo = wo_ref[d]                                          # (dm, dm) bf16

        acc = None
        for hh in range(NUM_HEADS):                             # static; 32-lane slices only
            lo = hh * HEAD_DIM
            q = qkv[:, lo:lo + HEAD_DIM].reshape(gb, t_pad, HEAD_DIM).astype(jnp.bfloat16)
            k = qkv[:, dm + lo:dm + lo + HEAD_DIM].reshape(gb, t_pad, HEAD_DIM).astype(jnp.bfloat16)
            v = qkv[:, 2 * dm + lo:2 * dm + lo + HEAD_DIM].reshape(gb, t_pad, HEAD_DIM).astype(jnp.bfloat16)
            # batched over the GB images in this grid step, no explicit transpose
            s = jnp.einsum('bqd,bkd->bqk', q, k,
                           preferred_element_type=jnp.float32) * ATTN_SCALE
            s = s + kmask[None, :, :]                           # f32 mask on f32 scores
            m = jnp.max(s, axis=-1, keepdims=True)
            e = jnp.exp(s - m)
            l = jnp.sum(e, axis=-1, keepdims=True)
            p = (e * pl.reciprocal(l, approx=True)).astype(jnp.bfloat16)   # divide on EUP
            oh = jnp.einsum('bqk,bkd->bqd', p, v,
                            preferred_element_type=jnp.float32).reshape(rows, HEAD_DIM)
            # Fold output projection per head == concat(heads) @ W_o (no lane concat).
            contrib = jnp.dot(oh.astype(jnp.bfloat16), wo[lo:lo + HEAD_DIM, :],
                              preferred_element_type=jnp.float32)
            acc = contrib if acc is None else acc + contrib
        x = x + acc + bo_ref[d]

        # --- MLP ---
        xn2 = _layernorm(x, ln2g_ref[d], ln2b_ref[d])
        h1 = jnp.dot(xn2.astype(jnp.bfloat16), w1_ref[d],
                     preferred_element_type=jnp.float32) + b1_ref[d]
        h1 = jax.nn.gelu(h1, approximate=USE_TANH_GELU)
        x = x + jnp.dot(h1.astype(jnp.bfloat16), w2_ref[d],
                        preferred_element_type=jnp.float32) + b2_ref[d]

    # -------- final LayerNorm + feat_proj ------------------------------------
    xnf = _layernorm(x, lnfg_ref[...], lnfb_ref[...])
    out = jnp.dot(xnf.astype(jnp.bfloat16), wproj_ref[...],
                  preferred_element_type=jnp.float32) + bproj_ref[...]
    o_ref[...] = out.reshape(gb, t_pad, wproj_ref.shape[1]).astype(o_ref.dtype)


# ------------------------------ pallas wrapper -------------------------------
def _pick_group(bn, t_pad, target_rows=512):
    """Images per grid step (>=512 rows/step when possible) + padded batch size."""
    gb = max(1, min(bn, max(1, target_rows // t_pad)))
    n_groups = -(-bn // gb)
    if n_groups > 1 and n_groups % 2:
        n_groups += 1                       # balanced split across v7x's two TensorCores
    gb = -(-bn // n_groups)
    return gb, gb * n_groups


def _vmem_limit_bytes():
    cap = 64 * 1024 * 1024                  # conservative default (v7x per-TC VMEM)
    try:
        info = pltpu.get_tpu_info()
        cap = int(getattr(info, "vmem_capacity_bytes", cap))
    except Exception:
        pass
    # ~3/4 of physical, capped: ~48 MiB on v7x, ~96 MiB on v5e/v6e.
    return min(cap * 3 // 4, 100 * 1024 * 1024)


def encoder_pallas(xp_pad, pk, *, gb):
    bn_pad, t_pad, k_pad = xp_pad.shape
    bev_pad = pk["w_proj"].shape[1]

    def grp(last):                          # per image-group block
        return pl.BlockSpec((gb, t_pad, last), lambda g: (g, 0, 0))

    def full(a):                            # whole-array resident block (loaded once)
        if a.ndim == 2:
            return pl.BlockSpec(a.shape, lambda g: (0, 0))
        return pl.BlockSpec(a.shape, lambda g: (0, 0, 0))

    weight_order = ("token_bias", "kmask", "w_pe",
                    "ln1_g", "ln1_b", "w_qkv", "b_qkv", "w_o", "b_o",
                    "ln2_g", "ln2_b", "w_fc1", "b_fc1", "w_fc2", "b_fc2",
                    "ln_f_g", "ln_f_b", "w_proj", "b_proj")
    weights = [pk[name] for name in weight_order]

    return pl.pallas_call(
        encoder_kernel,
        out_shape=jax.ShapeDtypeStruct((bn_pad, t_pad, bev_pad), jnp.bfloat16),
        grid=(bn_pad // gb,),
        in_specs=[grp(k_pad)] + [full(w) for w in weights],
        out_specs=grp(bev_pad),
        compiler_params=pltpu.CompilerParams(
            # TODO(synk): evaluate pltpu.CORE_PARALLEL for this axis on v7x.
            dimension_semantics=("parallel",),
            vmem_limit_bytes=_vmem_limit_bytes()),
    )(xp_pad, *weights)


# ----------------------------- parameter handling ----------------------------
def init_params(key, in_chans=3):
    p_dim = in_chans * PATCH * PATCH
    keys = iter(jax.random.split(key, 4 + 4 * DEPTH))

    def nrm(k, shape, std=0.02):
        return (std * jax.random.normal(k, shape)).astype(jnp.float32)

    params = {
        "w_pe": nrm(next(keys), (p_dim, EMBED_DIM)),
        "b_pe": jnp.zeros((1, EMBED_DIM), jnp.float32),
        "cls": nrm(next(keys), (1, 1, EMBED_DIM)),
        "blocks": [],
        "ln_f_g": jnp.ones((1, EMBED_DIM), jnp.float32),
        "ln_f_b": jnp.zeros((1, EMBED_DIM), jnp.float32),
        "w_proj": nrm(next(keys), (EMBED_DIM, BEV_DIM)),
        "b_proj": jnp.zeros((1, BEV_DIM), jnp.float32),
    }
    for _ in range(DEPTH):
        params["blocks"].append({
            "ln1_g": jnp.ones((1, EMBED_DIM), jnp.float32),
            "ln1_b": jnp.zeros((1, EMBED_DIM), jnp.float32),
            "w_qkv": nrm(next(keys), (EMBED_DIM, 3 * EMBED_DIM)),
            "b_qkv": jnp.zeros((1, 3 * EMBED_DIM), jnp.float32),
            "w_o": nrm(next(keys), (EMBED_DIM, EMBED_DIM)),
            "b_o": jnp.zeros((1, EMBED_DIM), jnp.float32),
            "ln2_g": jnp.ones((1, EMBED_DIM), jnp.float32),
            "ln2_b": jnp.zeros((1, EMBED_DIM), jnp.float32),
            "w_fc1": nrm(next(keys), (EMBED_DIM, MLP_DIM)),
            "b_fc1": jnp.zeros((1, MLP_DIM), jnp.float32),
            "w_fc2": nrm(next(keys), (MLP_DIM, EMBED_DIM)),
            "b_fc2": jnp.zeros((1, EMBED_DIM), jnp.float32),
        })
    return params


def _token_dims(C, H, W):
    h, w = H // PATCH, W // PATCH
    t_patch = h * w
    t_real = t_patch + 1                                        # + CLS
    t_pad = ((t_real + SUBLANE - 1) // SUBLANE) * SUBLANE       # sublane-aligned tokens
    k_real = C * PATCH * PATCH
    k_pad = ((k_real + LANE - 1) // LANE) * LANE                # 588 -> 640
    return h, w, t_patch, t_real, t_pad, k_real, k_pad


def pack_params(params, t_pad, t_real, k_pad):
    """Pad / stack / cast logical (PyTorch-layout) params into kernel-ready tensors."""
    d = EMBED_DIM
    k_real = params["w_pe"].shape[0]

    w_pe = jnp.zeros((k_pad, d), jnp.float32).at[:k_real].set(params["w_pe"])

    pos = params["pos_full"][0]                                  # [t_real, D]
    tok_bias = jnp.zeros((t_pad, d), jnp.float32)
    tok_bias = tok_bias.at[0].set(params["cls"][0, 0] + pos[0])          # CLS + pos0
    tok_bias = tok_bias.at[1:t_real].set(params["b_pe"][0] + pos[1:t_real])

    # Additive key mask (f32): padded key tokens (index >= t_real) never attended to.
    # Built once here instead of per depth step inside the kernel.
    kmask = jnp.where(jnp.arange(t_pad)[None, :] < t_real, 0.0, -1e30)
    kmask = jnp.broadcast_to(kmask, (t_pad, t_pad)).astype(jnp.float32)

    def stack(name):
        return jnp.stack([blk[name] for blk in params["blocks"]], axis=0)

    w_proj = jnp.zeros((d, BEV_PAD), jnp.float32).at[:, :BEV_DIM].set(params["w_proj"])
    b_proj = jnp.zeros((1, BEV_PAD), jnp.float32).at[:, :BEV_DIM].set(params["b_proj"])

    return {
        "token_bias": tok_bias,
        "kmask": kmask,
        "w_pe": w_pe.astype(jnp.bfloat16),
        "ln1_g": stack("ln1_g"), "ln1_b": stack("ln1_b"),
        "w_qkv": stack("w_qkv").astype(jnp.bfloat16), "b_qkv": stack("b_qkv"),
        "w_o": stack("w_o").astype(jnp.bfloat16), "b_o": stack("b_o"),
        "ln2_g": stack("ln2_g"), "ln2_b": stack("ln2_b"),
        "w_fc1": stack("w_fc1").astype(jnp.bfloat16), "b_fc1": stack("b_fc1"),
        "w_fc2": stack("w_fc2").astype(jnp.bfloat16), "b_fc2": stack("b_fc2"),
        "ln_f_g": params["ln_f_g"], "ln_f_b": params["ln_f_b"],
        "w_proj": w_proj.astype(jnp.bfloat16), "b_proj": b_proj,
    }


# ------------------------------ forward (glue) --------------------------------
def dino_encoder_forward(x, packed):
    # x: [B, N, C, H, W]  (NCHW per camera, as in the PyTorch module)
    B, N, C, H, W = x.shape
    h, w, t_patch, t_real, t_pad, k_real, k_pad = _token_dims(C, H, W)
    bn = B * N
    gb, bn_pad = _pick_group(bn, t_pad)

    # Patch extraction in bf16 (halves pre-amble HBM passes and the kernel's largest DMA).
    # TODO(synk): at production scale express patch extraction through the kernel's
    # index_map (read [C,14,14] windows per step) instead of materializing this transpose.
    xc = x.reshape(bn, C, H, W).astype(jnp.bfloat16)
    xp = xc.reshape(bn, C, h, PATCH, w, PATCH).transpose(0, 2, 4, 1, 3, 5)
    xp = xp.reshape(bn, t_patch, k_real)
    # row 0 per image = CLS slot (zeros); pad tokens / contraction lanes / batch in one op
    xp_pad = jnp.pad(xp, ((0, bn_pad - bn), (1, t_pad - t_real), (0, k_pad - k_real)))

    out = encoder_pallas(xp_pad, packed, gb=gb)       # [BN_PAD, T_PAD, BEV_PAD] bf16

    # drop CLS + padded tokens/lanes/images, reshape to spatial map, channels-first
    feat = out[:bn, 1:t_real, :BEV_DIM]
    feat = feat.reshape(bn, h, w, BEV_DIM)            # .view(-1, h, w, Dbev)
    feat = feat.transpose(0, 3, 1, 2)                 # .permute(0, 3, 1, 2)
    return {"features": feat, "rgb_flip_index": None}


# ---------------------------------- main --------------------------------------
if __name__ == "__main__":
    key = jax.random.PRNGKey(0)
    k_param, k_x, k_pos = jax.random.split(key, 3)

    # small but shape-consistent input: H, W divisible by patch_size=14
    B, N, C, H, W = 2, 2, 3, 28, 28
    x = jax.random.normal(k_x, (B, N, C, H, W), dtype=jnp.float32)

    params = init_params(k_param, in_chans=C)
    h, w, t_patch, t_real, t_pad, k_real, k_pad = _token_dims(C, H, W)
    params["pos_full"] = (0.02 * jax.random.normal(k_pos, (1, t_real, EMBED_DIM))).astype(jnp.float32)

    # one-time weight packing (outside jit: no per-call repacking passes)
    packed = pack_params(params, t_pad, t_real, k_pad)

    fwd = jax.jit(dino_encoder_forward)
    out = fwd(x, packed)
    feats = jax.block_until_ready(out["features"])

    expected = (B * N, BEV_DIM, h, w)
    assert feats.shape == expected, (feats.shape, expected)
    assert out["rgb_flip_index"] is None
    assert bool(jnp.all(jnp.isfinite(feats.astype(jnp.float32))))
    print("KERNEL_OK")
</pallas_src>

<mosaic_0001>
module attributes {stable_mosaic.version = 11 : i64} {
  func.func @encoder_kernel(%arg0: i32, %arg1: memref<4x8x640xbf16, #tpu.memory_space<vmem>>, %arg2: memref<8x128xf32, #tpu.memory_space<vmem>>, %arg3: memref<8x8xf32, #tpu.memory_space<vmem>>, %arg4: memref<640x128xbf16, #tpu.memory_space<vmem>>, %arg5: memref<2x1x128xf32, #tpu.memory_space<vmem>>, %arg6: memref<2x1x128xf32, #tpu.memory_space<vmem>>, %arg7: memref<2x128x384xbf16, #tpu.memory_space<vmem>>, %arg8: memref<2x1x384xf32, #tpu.memory_space<vmem>>, %arg9: memref<2x128x128xbf16, #tpu.memory_space<vmem>>, %arg10: memref<2x1x128xf32, #tpu.memory_space<vmem>>, %arg11: memref<2x1x128xf32, #tpu.memory_space<vmem>>, %arg12: memref<2x1x128xf32, #tpu.memory_space<vmem>>, %arg13: memref<2x128x512xbf16, #tpu.memory_space<vmem>>, %arg14: memref<2x1x512xf32, #tpu.memory_space<vmem>>, %arg15: memref<2x512x128xbf16, #tpu.memory_space<vmem>>, %arg16: memref<2x1x128xf32, #tpu.memory_space<vmem>>, %arg17: memref<1x128xf32, #tpu.memory_space<vmem>>, %arg18: memref<1x128xf32, #tpu.memory_space<vmem>>, %arg19: memref<128x128xbf16, #tpu.memory_space<vmem>>, %arg20: memref<1x128xf32, #tpu.memory_space<vmem>>, %arg21: memref<4x8x128xbf16, #tpu.memory_space<vmem>>) attributes {dimension_semantics = [#tpu.dimension_semantics<parallel>], iteration_bounds = array<i64: 1>, scalar_prefetch = 0 : i64, scratch_operands = 0 : i64, tpu.core_type = #tpu.core_type<tc>, window_params = [{transform_indices = @transform_0, window_bounds = array<i64: 4, 8, 640>}, {pipeline_mode = #tpu.pipeline_mode<synchronous>, transform_indices = @transform_1, window_bounds = array<i64: 8, 128>}, {pipeline_mode = #tpu.pipeline_mode<synchronous>, transform_indices = @transform_2, window_bounds = array<i64: 8, 8>}, {pipeline_mode = #tpu.pipeline_mode<synchronous>, transform_indices = @transform_3, window_bounds = array<i64: 640, 128>}, {pipeline_mode = #tpu.pipeline_mode<synchronous>, transform_indices = @transform_4, window_bounds = array<i64: 2, 1, 128>}, {pipeline_mode = #tpu.pipeline_mode<synchronous>, transform_indices = @transform_5, window_bounds = array<i64: 2, 1, 128>}, {pipeline_mode = #tpu.pipeline_mode<synchronous>, transform_indices = @transform_6, window_bounds = array<i64: 2, 128, 384>}, {pipeline_mode = #tpu.pipeline_mode<synchronous>, transform_indices = @transform_7, window_bounds = array<i64: 2, 1, 384>}, {pipeline_mode = #tpu.pipeline_mode<synchronous>, transform_indices = @transform_8, window_bounds = array<i64: 2, 128, 128>}, {pipeline_mode = #tpu.pipeline_mode<synchronous>, transform_indices = @transform_9, window_bounds = array<i64: 2, 1, 128>}, {pipeline_mode = #tpu.pipeline_mode<synchronous>, transform_indices = @transform_10, window_bounds = array<i64: 2, 1, 128>}, {pipeline_mode = #tpu.pipeline_mode<synchronous>, transform_indices = @transform_11, window_bounds = array<i64: 2, 1, 128>}, {pipeline_mode = #tpu.pipeline_mode<synchronous>, transform_indices = @transform_12, window_bounds = array<i64: 2, 128, 512>}, {pipeline_mode = #tpu.pipeline_mode<synchronous>, transform_indices = @transform_13, window_bounds = array<i64: 2, 1, 512>}, {pipeline_mode = #tpu.pipeline_mode<synchronous>, transform_indices = @transform_14, window_bounds = array<i64: 2, 512, 128>}, {pipeline_mode = #tpu.pipeline_mode<synchronous>, transform_indices = @transform_15, window_bounds = array<i64: 2, 1, 128>}, {pipeline_mode = #tpu.pipeline_mode<synchronous>, transform_indices = @transform_16, window_bounds = array<i64: 1, 128>}, {pipeline_mode = #tpu.pipeline_mode<synchronous>, transform_indices = @transform_17, window_bounds = array<i64: 1, 128>}, {pipeline_mode = #tpu.pipeline_mode<synchronous>, transform_indices = @transform_18, window_bounds = array<i64: 128, 128>}, {pipeline_mode = #tpu.pipeline_mode<synchronous>, transform_indices = @transform_19, window_bounds = array<i64: 1, 128>}, {transform_indices = @transform_20, window_bounds = array<i64: 4, 8, 128>}]} {
    %c0 = arith.constant 0 : index
    %c0_0 = arith.constant 0 : index
    %c0_1 = arith.constant 0 : index
    %0 = vector.load %arg1[%c0, %c0_0, %c0_1] : memref<4x8x640xbf16, #tpu.memory_space<vmem>>, vector<4x8x640xbf16>
    %1 = vector.shape_cast %0 : vector<4x8x640xbf16> to vector<32x640xbf16>
    %c0_2 = arith.constant 0 : index
    %c0_3 = arith.constant 0 : index
    %2 = vector.load %arg4[%c0_2, %c0_3] : memref<640x128xbf16, #tpu.memory_space<vmem>>, vector<640x128xbf16>
    %cst = arith.constant dense<0.000000e+00> : vector<32x128xf32>
    %3 = tpu.matmul %1, %2, %cst {dimension_numbers = #tpu.dot_dimension_numbers<[1], [0], [0], [1], [0, 0, 1, 1], [], []>} : vector<32x640xbf16>, vector<640x128xbf16>, vector<32x128xf32> -> vector<32x128xf32>
    %4 = vector.shape_cast %3 : vector<32x128xf32> to vector<4x8x128xf32>
    %c0_4 = arith.constant 0 : index
    %c0_5 = arith.constant 0 : index
    %5 = vector.load %arg2[%c0_4, %c0_5] : memref<8x128xf32, #tpu.memory_space<vmem>>, vector<8x128xf32>
    %6 = vector.shape_cast %5 : vector<8x128xf32> to vector<1x8x128xf32>
    %7 = vector.broadcast %6 : vector<1x8x128xf32> to vector<4x8x128xf32>
    %8 = arith.addf %4, %7 : vector<4x8x128xf32>
    %9 = vector.shape_cast %8 : vector<4x8x128xf32> to vector<32x128xf32>
    %c0_6 = arith.constant 0 : index
    %c0_7 = arith.constant 0 : index
    %10 = vector.load %arg3[%c0_6, %c0_7] : memref<8x8xf32, #tpu.memory_space<vmem>>, vector<8x8xf32>
    %c0_8 = arith.constant 0 : index
    %c0_9 = arith.constant 0 : index
    %c0_10 = arith.constant 0 : index
    %11 = vector.load %arg5[%c0_8, %c0_9, %c0_10] : memref<2x1x128xf32, #tpu.memory_space<vmem>>, vector<1x1x128xf32>
    %12 = vector.shape_cast %11 : vector<1x1x128xf32> to vector<1x128xf32>
    %c0_11 = arith.constant 0 : index
    %c0_12 = arith.constant 0 : index
    %c0_13 = arith.constant 0 : index
    %13 = vector.load %arg6[%c0_11, %c0_12, %c0_13] : memref<2x1x128xf32, #tpu.memory_space<vmem>>, vector<1x1x128xf32>
    %14 = vector.shape_cast %13 : vector<1x1x128xf32> to vector<1x128xf32>
    %cst_14 = arith.constant dense<0.000000e+00> : vector<32xf32>
    %15 = vector.multi_reduction <add>, %9, %cst_14 [1] : vector<32x128xf32> to vector<32xf32>
    %16 = vector.shape_cast %15 : vector<32xf32> to vector<32x1xf32>
    %cst_15 = arith.constant 1.280000e+02 : f32
    %17 = vector.broadcast %cst_15 : f32 to vector<32x1xf32>
    %18 = arith.divf %16, %17 : vector<32x1xf32>
    %19 = vector.broadcast %18 : vector<32x1xf32> to vector<32x128xf32>
    %20 = arith.subf %9, %19 : vector<32x128xf32>
    %21 = arith.mulf %20, %20 : vector<32x128xf32>
    %cst_16 = arith.constant dense<0.000000e+00> : vector<32xf32>
    %22 = vector.multi_reduction <add>, %21, %cst_16 [1] : vector<32x128xf32> to vector<32xf32>
    %23 = vector.shape_cast %22 : vector<32xf32> to vector<32x1xf32>
    %cst_17 = arith.constant 1.280000e+02 : f32
    %24 = vector.broadcast %cst_17 : f32 to vector<32x1xf32>
    %25 = arith.divf %23, %24 : vector<32x1xf32>
    %26 = vector.broadcast %18 : vector<32x1xf32> to vector<32x128xf32>
    %27 = arith.subf %9, %26 : vector<32x128xf32>
    %cst_18 = arith.constant 9.99999997E-7 : f32
    %28 = vector.broadcast %cst_18 : f32 to vector<32x1xf32>
    %29 = arith.addf %25, %28 : vector<32x1xf32>
    %30 = math.rsqrt %29 : vector<32x1xf32>
    %31 = vector.broadcast %30 : vector<32x1xf32> to vector<32x128xf32>
    %32 = arith.mulf %27, %31 : vector<32x128xf32>
    %33 = vector.broadcast %12 : vector<1x128xf32> to vector<32x128xf32>
    %34 = arith.mulf %32, %33 : vector<32x128xf32>
    %35 = vector.broadcast %14 : vector<1x128xf32> to vector<32x128xf32>
    %36 = arith.addf %34, %35 : vector<32x128xf32>
    %37 = arith.truncf %36 : vector<32x128xf32> to vector<32x128xbf16>
    %c0_19 = arith.constant 0 : index
    %c0_20 = arith.constant 0 : index
    %c0_21 = arith.constant 0 : index
    %38 = vector.load %arg7[%c0_19, %c0_20, %c0_21] : memref<2x128x384xbf16, #tpu.memory_space<vmem>>, vector<1x128x384xbf16>
    %39 = vector.shape_cast %38 : vector<1x128x384xbf16> to vector<128x384xbf16>
    %cst_22 = arith.constant dense<0.000000e+00> : vector<32x384xf32>
    %40 = tpu.matmul %37, %39, %cst_22 {dimension_numbers = #tpu.dot_dimension_numbers<[1], [0], [0], [1], [0, 0, 1, 1], [], []>} : vector<32x128xbf16>, vector<128x384xbf16>, vector<32x384xf32> -> vector<32x384xf32>
    %c0_23 = arith.constant 0 : index
    %c0_24 = arith.constant 0 : index
    %c0_25 = arith.constant 0 : index
    %41 = vector.load %arg8[%c0_23, %c0_24, %c0_25] : memref<2x1x384xf32, #tpu.memory_space<vmem>>, vector<1x1x384xf32>
    %42 = vector.shape_cast %41 : vector<1x1x384xf32> to vector<1x384xf32>
    %43 = vector.broadcast %42 : vector<1x384xf32> to vector<32x384xf32>
    %44 = arith.addf %40, %43 : vector<32x384xf32>
    %c0_26 = arith.constant 0 : index
    %c0_27 = arith.constant 0 : index
    %c0_28 = arith.constant 0 : index
    %45 = vector.load %arg9[%c0_26, %c0_27, %c0_28] : memref<2x128x128xbf16, #tpu.memory_space<vmem>>, vector<1x128x128xbf16>
    %46 = vector.shape_cast %45 : vector<1x128x128xbf16> to vector<128x128xbf16>
    %47 = vector.extract_strided_slice %44 {offsets = [0, 0], sizes = [32, 32], strides = [1, 1]} : vector<32x384xf32> to vector<32x32xf32>
    %48 = vector.shape_cast %47 : vector<32x32xf32> to vector<4x8x32xf32>
    %49 = arith.truncf %48 : vector<4x8x32xf32> to vector<4x8x32xbf16>
    %50 = vector.extract_strided_slice %44 {offsets = [0, 128], sizes = [32, 32], strides = [1, 1]} : vector<32x384xf32> to vector<32x32xf32>
    %51 = vector.shape_cast %50 : vector<32x32xf32> to vector<4x8x32xf32>
    %52 = arith.truncf %51 : vector<4x8x32xf32> to vector<4x8x32xbf16>
    %53 = vector.extract_strided_slice %44 {offsets = [0, 256], sizes = [32, 32], strides = [1, 1]} : vector<32x384xf32> to vector<32x32xf32>
    %54 = vector.shape_cast %53 : vector<32x32xf32> to vector<4x8x32xf32>
    %55 = arith.truncf %54 : vector<4x8x32xf32> to vector<4x8x32xbf16>
    "tpu.trace_start"() <{level = 10 : i32, message = "bqd,bkd->bqk"}> : () -> ()
    %cst_29 = arith.constant dense<0.000000e+00> : vector<4x8x8xf32>
    %56 = tpu.matmul %49, %52, %cst_29 {dimension_numbers = #tpu.dot_dimension_numbers<[2], [2], [1], [1], [0, 0, 0, 1, 1, 1], [0], [0]>} : vector<4x8x32xbf16>, vector<4x8x32xbf16>, vector<4x8x8xf32> -> vector<4x8x8xf32>
    "tpu.trace_stop"() : () -> ()
    %cst_30 = arith.constant 0.176776692 : f32
    %57 = vector.broadcast %cst_30 : f32 to vector<4x8x8xf32>
    %58 = arith.mulf %56, %57 : vector<4x8x8xf32>
    %59 = vector.shape_cast %10 : vector<8x8xf32> to vector<1x8x8xf32>
    %60 = vector.broadcast %59 : vector<1x8x8xf32> to vector<4x8x8xf32>
    %61 = arith.addf %58, %60 : vector<4x8x8xf32>
    %cst_31 = arith.constant dense<0xFF800000> : vector<4x8xf32>
    %62 = vector.multi_reduction <maximumf>, %61, %cst_31 [2] : vector<4x8x8xf32> to vector<4x8xf32>
    %63 = vector.shape_cast %62 : vector<4x8xf32> to vector<4x8x1xf32>
    %64 = vector.broadcast %63 : vector<4x8x1xf32> to vector<4x8x8xf32>
    %65 = arith.subf %61, %64 : vector<4x8x8xf32>
    %66 = math.exp %65 : vector<4x8x8xf32>
    %cst_32 = arith.constant dense<0.000000e+00> : vector<4x8xf32>
    %67 = vector.multi_reduction <add>, %66, %cst_32 [2] : vector<4x8x8xf32> to vector<4x8xf32>
    %68 = vector.shape_cast %67 : vector<4x8xf32> to vector<4x8x1xf32>
    %69 = tpu.reciprocal %68 {approx = true} : vector<4x8x1xf32> -> vector<4x8x1xf32>
    %70 = vector.broadcast %69 : vector<4x8x1xf32> to vector<4x8x8xf32>
    %71 = arith.mulf %66, %70 : vector<4x8x8xf32>
    %72 = arith.truncf %71 : vector<4x8x8xf32> to vector<4x8x8xbf16>
    "tpu.trace_start"() <{level = 10 : i32, message = "bqk,bkd->bqd"}> : () -> ()
    %cst_33 = arith.constant dense<0.000000e+00> : vector<4x8x32xf32>
    %73 = tpu.matmul %72, %55, %cst_33 {dimension_numbers = #tpu.dot_dimension_numbers<[2], [1], [1], [2], [0, 0, 0, 1, 1, 2], [0], [0]>} : vector<4x8x8xbf16>, vector<4x8x32xbf16>, vector<4x8x32xf32> -> vector<4x8x32xf32>
    "tpu.trace_stop"() : () -> ()
    %74 = vector.shape_cast %73 : vector<4x8x32xf32> to vector<32x32xf32>
    %75 = arith.truncf %74 : vector<32x32xf32> to vector<32x32xbf16>
    %76 = vector.extract_strided_slice %46 {offsets = [0, 0], sizes = [32, 128], strides = [1, 1]} : vector<128x128xbf16> to vector<32x128xbf16>
    %cst_34 = arith.constant dense<0.000000e+00> : vector<32x128xf32>
    %77 = tpu.matmul %75, %76, %cst_34 {dimension_numbers = #tpu.dot_dimension_numbers<[1], [0], [0], [1], [0, 0, 1, 1], [], []>} : vector<32x32xbf16>, vector<32x128xbf16>, vector<32x128xf32> -> vector<32x128xf32>
    %78 = vector.extract_strided_slice %44 {offsets = [0, 32], sizes = [32, 32], strides = [1, 1]} : vector<32x384xf32> to vector<32x32xf32>
    %79 = vector.shape_cast %78 : vector<32x32xf32> to vector<4x8x32xf32>
    %80 = arith.truncf %79 : vector<4x8x32xf32> to vector<4x8x32xbf16>
    %81 = vector.extract_strided_slice %44 {offsets = [0, 160], sizes = [32, 32], strides = [1, 1]} : vector<32x384xf32> to vector<32x32xf32>
    %82 = vector.shape_cast %81 : vector<32x32xf32> to vector<4x8x32xf32>
    %83 = arith.truncf %82 : vector<4x8x32xf32> to vector<4x8x32xbf16>
    %84 = vector.extract_strided_slice %44 {offsets = [0, 288], sizes = [32, 32], strides = [1, 1]} : vector<32x384xf32> to vector<32x32xf32>
    %85 = vector.shape_cast %84 : vector<32x32xf32> to vector<4x8x32xf32>
    %86 = arith.truncf %85 : vector<4x8x32xf32> to vector<4x8x32xbf16>
    "tpu.trace_start"() <{level = 10 : i32, message = "bqd,bkd->bqk"}> : () -> ()
    %cst_35 = arith.constant dense<0.000000e+00> : vector<4x8x8xf32>
    %87 = tpu.matmul %80, %83, %cst_35 {dimension_numbers = #tpu.dot_dimension_numbers<[2], [2], [1], [1], [0, 0, 0, 1, 1, 1], [0], [0]>} : vector<4x8x32xbf16>, vector<4x8x32xbf16>, vector<4x8x8xf32> -> vector<4x8x8xf32>
    "tpu.trace_stop"() : () -> ()
    %cst_36 = arith.constant 0.176776692 : f32
    %88 = vector.broadcast %cst_36 : f32 to vector<4x8x8xf32>
    %89 = arith.mulf %87, %88 : vector<4x8x8xf32>
    %90 = vector.shape_cast %10 : vector<8x8xf32> to vector<1x8x8xf32>
    %91 = vector.broadcast %90 : vector<1x8x8xf32> to vector<4x8x8xf32>
    %92 = arith.addf %89, %91 : vector<4x8x8xf32>
    %cst_37 = arith.constant dense<0xFF800000> : vector<4x8xf32>
    %93 = vector.multi_reduction <maximumf>, %92, %cst_37 [2] : vector<4x8x8xf32> to vector<4x8xf32>
    %94 = vector.shape_cast %93 : vector<4x8xf32> to vector<4x8x1xf32>
    %95 = vector.broadcast %94 : vector<4x8x1xf32> to vector<4x8x8xf32>
    %96 = arith.subf %92, %95 : vector<4x8x8xf32>
    %97 = math.exp %96 : vector<4x8x8xf32>
    %cst_38 = arith.constant dense<0.000000e+00> : vector<4x8xf32>
    %98 = vector.multi_reduction <add>, %97, %cst_38 [2] : vector<4x8x8xf32> to vector<4x8xf32>
    %99 = vector.shape_cast %98 : vector<4x8xf32> to vector<4x8x1xf32>
    %100 = tpu.reciprocal %99 {approx = true} : vector<4x8x1xf32> -> vector<4x8x1xf32>
    %101 = vector.broadcast %100 : vector<4x8x1xf32> to vector<4x8x8xf32>
    %102 = arith.mulf %97, %101 : vector<4x8x8xf32>
    %103 = arith.truncf %102 : vector<4x8x8xf32> to vector<4x8x8xbf16>
    "tpu.trace_start"() <{level = 10 : i32, message = "bqk,bkd->bqd"}> : () -> ()
    %cst_39 = arith.constant dense<0.000000e+00> : vector<4x8x32xf32>
    %104 = tpu.matmul %103, %86, %cst_39 {dimension_numbers = #tpu.dot_dimension_numbers<[2], [1], [1], [2], [0, 0, 0, 1, 1, 2], [0], [0]>} : vector<4x8x8xbf16>, vector<4x8x32xbf16>, vector<4x8x32xf32> -> vector<4x8x32xf32>
    "tpu.trace_stop"() : () -> ()
    %105 = vector.shape_cast %104 : vector<4x8x32xf32> to vector<32x32xf32>
    %106 = arith.truncf %105 : vector<32x32xf32> to vector<32x32xbf16>
    %107 = vector.extract_strided_slice %46 {offsets = [32, 0], sizes = [32, 128], strides = [1, 1]} : vector<128x128xbf16> to vector<32x128xbf16>
    %cst_40 = arith.constant dense<0.000000e+00> : vector<32x128xf32>
    %108 = tpu.matmul %106, %107, %cst_40 {dimension_numbers = #tpu.dot_dimension_numbers<[1], [0], [0], [1], [0, 0, 1, 1], [], []>} : vector<32x32xbf16>, vector<32x128xbf16>, vector<32x128xf32> -> vector<32x128xf32>
    %109 = arith.addf %77, %108 : vector<32x128xf32>
    %110 = vector.extract_strided_slice %44 {offsets = [0, 64], sizes = [32, 32], strides = [1, 1]} : vector<32x384xf32> to vector<32x32xf32>
    %111 = vector.shape_cast %110 : vector<32x32xf32> to vector<4x8x32xf32>
    %112 = arith.truncf %111 : vector<4x8x32xf32> to vector<4x8x32xbf16>
    %113 = vector.extract_strided_slice %44 {offsets = [0, 192], sizes = [32, 32], strides = [1, 1]} : vector<32x384xf32> to vector<32x32xf32>
    %114 = vector.shape_cast %113 : vector<32x32xf32> to vector<4x8x32xf32>
    %115 = arith.truncf %114 : vector<4x8x32xf32> to vector<4x8x32xbf16>
    %116 = vector.extract_strided_slice %44 {offsets = [0, 320], sizes = [32, 32], strides = [1, 1]} : vector<32x384xf32> to vector<32x32xf32>
    %117 = vector.shape_cast %116 : vector<32x32xf32> to vector<4x8x32xf32>
    %118 = arith.truncf %117 : vector<4x8x32xf32> to vector<4x8x32xbf16>
    "tpu.trace_start"() <{level = 10 : i32, message = "bqd,bkd->bqk"}> : () -> ()
    %cst_41 = arith.constant dense<0.000000e+00> : vector<4x8x8xf32>
    %119 = tpu.matmul %112, %115, %cst_41 {dimension_numbers = #tpu.dot_dimension_numbers<[2], [2], [1], [1], [0, 0, 0, 1, 1, 1], [0], [0]>} : vector<4x8x32xbf16>, vector<4x8x32xbf16>, vector<4x8x8xf32> -> vector<4x8x8xf32>
    "tpu.trace_stop"() : () -> ()
    %cst_42 = arith.constant 0.176776692 : f32
    %120 = vector.broadcast %cst_42 : f32 to vector<4x8x8xf32>
    %121 = arith.mulf %119, %120 : vector<4x8x8xf32>
    %122 = vector.shape_cast %10 : vector<8x8xf32> to vector<1x8x8xf32>
    %123 = vector.broadcast %122 : vector<1x8x8xf32> to vector<4x8x8xf32>
    %124 = arith.addf %121, %123 : vector<4x8x8xf32>
    %cst_43 = arith.constant dense<0xFF800000> : vector<4x8xf32>
    %125 = vector.multi_reduction <maximumf>, %124, %cst_43 [2] : vector<4x8x8xf32> to vector<4x8xf32>
    %126 = vector.shape_cast %125 : vector<4x8xf32> to vector<4x8x1xf32>
    %127 = vector.broadcast %126 : vector<4x8x1xf32> to vector<4x8x8xf32>
    %128 = arith.subf %124, %127 : vector<4x8x8xf32>
    %129 = math.exp %128 : vector<4x8x8xf32>
    %cst_44 = arith.constant dense<0.000000e+00> : vector<4x8xf32>
    %130 = vector.multi_reduction <add>, %129, %cst_44 [2] : vector<4x8x8xf32> to vector<4x8xf32>
    %131 = vector.shape_cast %130 : vector<4x8xf32> to vector<4x8x1xf32>
    %132 = tpu.reciprocal %131 {approx = true} : vector<4x8x1xf32> -> vector<4x8x1xf32>
    %133 = vector.broadcast %132 : vector<4x8x1xf32> to vector<4x8x8xf32>
    %134 = arith.mulf %129, %133 : vector<4x8x8xf32>
    %135 = arith.truncf %134 : vector<4x8x8xf32> to vector<4x8x8xbf16>
    "tpu.trace_start"() <{level = 10 : i32, message = "bqk,bkd->bqd"}> : () -> ()
    %cst_45 = arith.constant dense<0.000000e+00> : vector<4x8x32xf32>
    %136 = tpu.matmul %135, %118, %cst_45 {dimension_numbers = #tpu.dot_dimension_numbers<[2], [1], [1], [2], [0, 0, 0, 1, 1, 2], [0], [0]>} : vector<4x8x8xbf16>, vector<4x8x32xbf16>, vector<4x8x32xf32> -> vector<4x8x32xf32>
    "tpu.trace_stop"() : () -> ()
    %137 = vector.shape_cast %136 : vector<4x8x32xf32> to vector<32x32xf32>
    %138 = arith.truncf %137 : vector<32x32xf32> to vector<32x32xbf16>
    %139 = vector.extract_strided_slice %46 {offsets = [64, 0], sizes = [32, 128], strides = [1, 1]} : vector<128x128xbf16> to vector<32x128xbf16>
    %cst_46 = arith.constant dense<0.000000e+00> : vector<32x128xf32>
    %140 = tpu.matmul %138, %139, %cst_46 {dimension_numbers = #tpu.dot_dimension_numbers<[1], [0], [0], [1], [0, 0, 1, 1], [], []>} : vector<32x32xbf16>, vector<32x128xbf16>, vector<32x128xf32> -> vector<32x128xf32>
    %141 = arith.addf %109, %140 : vector<32x128xf32>
    %142 = vector.extract_strided_slice %44 {offsets = [0, 96], sizes = [32, 32], strides = [1, 1]} : vector<32x384xf32> to vector<32x32xf32>
    %143 = vector.shape_cast %142 : vector<32x32xf32> to vector<4x8x32xf32>
    %144 = arith.truncf %143 : vector<4x8x32xf32> to vector<4x8x32xbf16>
    %145 = vector.extract_strided_slice %44 {offsets = [0, 224], sizes = [32, 32], strides = [1, 1]} : vector<32x384xf32> to vector<32x32xf32>
    %146 = vector.shape_cast %145 : vector<32x32xf32> to vector<4x8x32xf32>
    %147 = arith.truncf %146 : vector<4x8x32xf32> to vector<4x8x32xbf16>
    %148 = vector.extract_strided_slice %44 {offsets = [0, 352], sizes = [32, 32], strides = [1, 1]} : vector<32x384xf32> to vector<32x32xf32>
    %149 = vector.shape_cast %148 : vector<32x32xf32> to vector<4x8x32xf32>
    %150 = arith.truncf %149 : vector<4x8x32xf32> to vector<4x8x32xbf16>
    "tpu.trace_start"() <{level = 10 : i32, message = "bqd,bkd->bqk"}> : () -> ()
    %cst_47 = arith.constant dense<0.000000e+00> : vector<4x8x8xf32>
    %151 = tpu.matmul %144, %147, %cst_47 {dimension_numbers = #tpu.dot_dimension_numbers<[2], [2], [1], [1], [0, 0, 0, 1, 1, 1], [0], [0]>} : vector<4x8x32xbf16>, vector<4x8x32xbf16>, vector<4x8x8xf32> -> vector<4x8x8xf32>
    "tpu.trace_stop"() : () -> ()
    %cst_48 = arith.constant 0.176776692 : f32
    %152 = vector.broadcast %cst_48 : f32 to vector<4x8x8xf32>
    %153 = arith.mulf %151, %152 : vector<4x8x8xf32>
    %154 = vector.shape_cast %10 : vector<8x8xf32> to vector<1x8x8xf32>
    %155 = vector.broadcast %154 : vector<1x8x8xf32> to vector<4x8x8xf32>
    %156 = arith.addf %153, %155 : vector<4x8x8xf32>
    %cst_49 = arith.constant dense<0xFF800000> : vector<4x8xf32>
    %157 = vector.multi_reduction <maximumf>, %156, %cst_49 [2] : vector<4x8x8xf32> to vector<4x8xf32>
    %158 = vector.shape_cast %157 : vector<4x8xf32> to vector<4x8x1xf32>
    %159 = vector.broadcast %158 : vector<4x8x1xf32> to vector<4x8x8xf32>
    %160 = arith.subf %156, %159 : vector<4x8x8xf32>
    %161 = math.exp %160 : vector<4x8x8xf32>
    %cst_50 = arith.constant dense<0.000000e+00> : vector<4x8xf32>
    %162 = vector.multi_reduction <add>, %161, %cst_50 [2] : vector<4x8x8xf32> to vector<4x8xf32>
    %163 = vector.shape_cast %162 : vector<4x8xf32> to vector<4x8x1xf32>
    %164 = tpu.reciprocal %163 {approx = true} : vector<4x8x1xf32> -> vector<4x8x1xf32>
    %165 = vector.broadcast %164 : vector<4x8x1xf32> to vector<4x8x8xf32>
    %166 = arith.mulf %161, %165 : vector<4x8x8xf32>
    %167 = arith.truncf %166 : vector<4x8x8xf32> to vector<4x8x8xbf16>
    "tpu.trace_start"() <{level = 10 : i32, message = "bqk,bkd->bqd"}> : () -> ()
    %cst_51 = arith.constant dense<0.000000e+00> : vector<4x8x32xf32>
    %168 = tpu.matmul %167, %150, %cst_51 {dimension_numbers = #tpu.dot_dimension_numbers<[2], [1], [1], [2], [0, 0, 0, 1, 1, 2], [0], [0]>} : vector<4x8x8xbf16>, vector<4x8x32xbf16>, vector<4x8x32xf32> -> vector<4x8x32xf32>
    "tpu.trace_stop"() : () -> ()
    %169 = vector.shape_cast %168 : vector<4x8x32xf32> to vector<32x32xf32>
    %170 = arith.truncf %169 : vector<32x32xf32> to vector<32x32xbf16>
    %171 = vector.extract_strided_slice %46 {offsets = [96, 0], sizes = [32, 128], strides = [1, 1]} : vector<128x128xbf16> to vector<32x128xbf16>
    %cst_52 = arith.constant dense<0.000000e+00> : vector<32x128xf32>
    %172 = tpu.matmul %170, %171, %cst_52 {dimension_numbers = #tpu.dot_dimension_numbers<[1], [0], [0], [1], [0, 0, 1, 1], [], []>} : vector<32x32xbf16>, vector<32x128xbf16>, vector<32x128xf32> -> vector<32x128xf32>
    %173 = arith.addf %141, %172 : vector<32x128xf32>
    %174 = arith.addf %9, %173 : vector<32x128xf32>
    %c0_53 = arith.constant 0 : index
    %c0_54 = arith.constant 0 : index
    %c0_55 = arith.constant 0 : index
    %175 = vector.load %arg10[%c0_53, %c0_54, %c0_55] : memref<2x1x128xf32, #tpu.memory_space<vmem>>, vector<1x1x128xf32>
    %176 = vector.shape_cast %175 : vector<1x1x128xf32> to vector<1x128xf32>
    %177 = vector.broadcast %176 : vector<1x128xf32> to vector<32x128xf32>
    %178 = arith.addf %174, %177 : vector<32x128xf32>
    %c0_56 = arith.constant 0 : index
    %c0_57 = arith.constant 0 : index
    %c0_58 = arith.constant 0 : index
    %179 = vector.load %arg11[%c0_56, %c0_57, %c0_58] : memref<2x1x128xf32, #tpu.memory_space<vmem>>, vector<1x1x128xf32>
    %180 = vector.shape_cast %179 : vector<1x1x128xf32> to vector<1x128xf32>
    %c0_59 = arith.constant 0 : index
    %c0_60 = arith.constant 0 : index
    %c0_61 = arith.constant 0 : index
    %181 = vector.load %arg12[%c0_59, %c0_60, %c0_61] : memref<2x1x128xf32, #tpu.memory_space<vmem>>, vector<1x1x128xf32>
    %182 = vector.shape_cast %181 : vector<1x1x128xf32> to vector<1x128xf32>
    %cst_62 = arith.constant dense<0.000000e+00> : vector<32xf32>
    %183 = vector.multi_reduction <add>, %178, %cst_62 [1] : vector<32x128xf32> to vector<32xf32>
    %184 = vector.shape_cast %183 : vector<32xf32> to vector<32x1xf32>
    %cst_63 = arith.constant 1.280000e+02 : f32
    %185 = vector.broadcast %cst_63 : f32 to vector<32x1xf32>
    %186 = arith.divf %184, %185 : vector<32x1xf32>
    %187 = vector.broadcast %186 : vector<32x1xf32> to vector<32x128xf32>
    %188 = arith.subf %178, %187 : vector<32x128xf32>
    %189 = arith.mulf %188, %188 : vector<32x128xf32>
    %cst_64 = arith.constant dense<0.000000e+00> : vector<32xf32>
    %190 = vector.multi_reduction <add>, %189, %cst_64 [1] : vector<32x128xf32> to vector<32xf32>
    %191 = vector.shape_cast %190 : vector<32xf32> to vector<32x1xf32>
    %cst_65 = arith.constant 1.280000e+02 : f32
    %192 = vector.broadcast %cst_65 : f32 to vector<32x1xf32>
    %193 = arith.divf %191, %192 : vector<32x1xf32>
    %194 = vector.broadcast %186 : vector<32x1xf32> to vector<32x128xf32>
    %195 = arith.subf %178, %194 : vector<32x128xf32>
    %cst_66 = arith.constant 9.99999997E-7 : f32
    %196 = vector.broadcast %cst_66 : f32 to vector<32x1xf32>
    %197 = arith.addf %193, %196 : vector<32x1xf32>
    %198 = math.rsqrt %197 : vector<32x1xf32>
    %199 = vector.broadcast %198 : vector<32x1xf32> to vector<32x128xf32>
    %200 = arith.mulf %195, %199 : vector<32x128xf32>
    %201 = vector.broadcast %180 : vector<1x128xf32> to vector<32x128xf32>
    %202 = arith.mulf %200, %201 : vector<32x128xf32>
    %203 = vector.broadcast %182 : vector<1x128xf32> to vector<32x128xf32>
    %204 = arith.addf %202, %203 : vector<32x128xf32>
    %205 = arith.truncf %204 : vector<32x128xf32> to vector<32x128xbf16>
    %c0_67 = arith.constant 0 : index
    %c0_68 = arith.constant 0 : index
    %c0_69 = arith.constant 0 : index
    %206 = vector.load %arg13[%c0_67, %c0_68, %c0_69] : memref<2x128x512xbf16, #tpu.memory_space<vmem>>, vector<1x128x512xbf16>
    %207 = vector.shape_cast %206 : vector<1x128x512xbf16> to vector<128x512xbf16>
    %cst_70 = arith.constant dense<0.000000e+00> : vector<32x512xf32>
    %208 = tpu.matmul %205, %207, %cst_70 {dimension_numbers = #tpu.dot_dimension_numbers<[1], [0], [0], [1], [0, 0, 1, 1], [], []>} : vector<32x128xbf16>, vector<128x512xbf16>, vector<32x512xf32> -> vector<32x512xf32>
    %c0_71 = arith.constant 0 : index
    %c0_72 = arith.constant 0 : index
    %c0_73 = arith.constant 0 : index
    %209 = vector.load %arg14[%c0_71, %c0_72, %c0_73] : memref<2x1x512xf32, #tpu.memory_space<vmem>>, vector<1x1x512xf32>
    %210 = vector.shape_cast %209 : vector<1x1x512xf32> to vector<1x512xf32>
    %211 = vector.broadcast %210 : vector<1x512xf32> to vector<32x512xf32>
    %212 = arith.addf %208, %211 : vector<32x512xf32>
    %213 = arith.mulf %212, %212 : vector<32x512xf32>
    %214 = arith.mulf %212, %213 : vector<32x512xf32>
    %cst_74 = arith.constant 4.471500e-02 : f32
    %215 = vector.broadcast %cst_74 : f32 to vector<32x512xf32>
    %216 = arith.mulf %215, %214 : vector<32x512xf32>
    %217 = arith.addf %212, %216 : vector<32x512xf32>
    %cst_75 = arith.constant 0.797884583 : f32
    %218 = vector.broadcast %cst_75 : f32 to vector<32x512xf32>
    %219 = arith.mulf %218, %217 : vector<32x512xf32>
    %220 = math.tanh %219 : vector<32x512xf32>
    %cst_76 = arith.constant 1.000000e+00 : f32
    %221 = vector.broadcast %cst_76 : f32 to vector<32x512xf32>
    %222 = arith.addf %221, %220 : vector<32x512xf32>
    %cst_77 = arith.constant 5.000000e-01 : f32
    %223 = vector.broadcast %cst_77 : f32 to vector<32x512xf32>
    %224 = arith.mulf %223, %222 : vector<32x512xf32>
    %225 = arith.mulf %212, %224 : vector<32x512xf32>
    %226 = arith.truncf %225 : vector<32x512xf32> to vector<32x512xbf16>
    %c0_78 = arith.constant 0 : index
    %c0_79 = arith.constant 0 : index
    %c0_80 = arith.constant 0 : index
    %227 = vector.load %arg15[%c0_78, %c0_79, %c0_80] : memref<2x512x128xbf16, #tpu.memory_space<vmem>>, vector<1x512x128xbf16>
    %228 = vector.shape_cast %227 : vector<1x512x128xbf16> to vector<512x128xbf16>
    %cst_81 = arith.constant dense<0.000000e+00> : vector<32x128xf32>
    %229 = tpu.matmul %226, %228, %cst_81 {dimension_numbers = #tpu.dot_dimension_numbers<[1], [0], [0], [1], [0, 0, 1, 1], [], []>} : vector<32x512xbf16>, vector<512x128xbf16>, vector<32x128xf32> -> vector<32x128xf32>
    %230 = arith.addf %178, %229 : vector<32x128xf32>
    %c0_82 = arith.constant 0 : index
    %c0_83 = arith.constant 0 : index
    %c0_84 = arith.constant 0 : index
    %231 = vector.load %arg16[%c0_82, %c0_83, %c0_84] : memref<2x1x128xf32, #tpu.memory_space<vmem>>, vector<1x1x128xf32>
    %232 = vector.shape_cast %231 : vector<1x1x128xf32> to vector<1x128xf32>
    %233 = vector.broadcast %232 : vector<1x128xf32> to vector<32x128xf32>
    %234 = arith.addf %230, %233 : vector<32x128xf32>
    %c1 = arith.constant 1 : index
    %c0_85 = arith.constant 0 : index
    %c0_86 = arith.constant 0 : index
    %235 = vector.load %arg5[%c1, %c0_85, %c0_86] : memref<2x1x128xf32, #tpu.memory_space<vmem>>, vector<1x1x128xf32>
    %236 = vector.shape_cast %235 : vector<1x1x128xf32> to vector<1x128xf32>
    %c1_87 = arith.constant 1 : index
    %c0_88 = arith.constant 0 : index
    %c0_89 = arith.constant 0 : index
    %237 = vector.load %arg6[%c1_87, %c0_88, %c0_89] : memref<2x1x128xf32, #tpu.memory_space<vmem>>, vector<1x1x128xf32>
    %238 = vector.shape_cast %237 : vector<1x1x128xf32> to vector<1x128xf32>
    %cst_90 = arith.constant dense<0.000000e+00> : vector<32xf32>
    %239 = vector.multi_reduction <add>, %234, %cst_90 [1] : vector<32x128xf32> to vector<32xf32>
    %240 = vector.shape_cast %239 : vector<32xf32> to vector<32x1xf32>
    %cst_91 = arith.constant 1.280000e+02 : f32
    %241 = vector.broadcast %cst_91 : f32 to vector<32x1xf32>
    %242 = arith.divf %240, %241 : vector<32x1xf32>
    %243 = vector.broadcast %242 : vector<32x1xf32> to vector<32x128xf32>
    %244 = arith.subf %234, %243 : vector<32x128xf32>
    %245 = arith.mulf %244, %244 : vector<32x128xf32>
    %cst_92 = arith.constant dense<0.000000e+00> : vector<32xf32>
    %246 = vector.multi_reduction <add>, %245, %cst_92 [1] : vector<32x128xf32> to vector<32xf32>
    %247 = vector.shape_cast %246 : vector<32xf32> to vector<32x1xf32>
    %cst_93 = arith.constant 1.280000e+02 : f32
    %248 = vector.broadcast %cst_93 : f32 to vector<32x1xf32>
    %249 = arith.divf %247, %248 : vector<32x1xf32>
    %250 = vector.broadcast %242 : vector<32x1xf32> to vector<32x128xf32>
    %251 = arith.subf %234, %250 : vector<32x128xf32>
    %cst_94 = arith.constant 9.99999997E-7 : f32
    %252 = vector.broadcast %cst_94 : f32 to vector<32x1xf32>
    %253 = arith.addf %249, %252 : vector<32x1xf32>
    %254 = math.rsqrt %253 : vector<32x1xf32>
    %255 = vector.broadcast %254 : vector<32x1xf32> to vector<32x128xf32>
    %256 = arith.mulf %251, %255 : vector<32x128xf32>
    %257 = vector.broadcast %236 : vector<1x128xf32> to vector<32x128xf32>
    %258 = arith.mulf %256, %257 : vector<32x128xf32>
    %259 = vector.broadcast %238 : vector<1x128xf32> to vector<32x128xf32>
    %260 = arith.addf %258, %259 : vector<32x128xf32>
    %261 = arith.truncf %260 : vector<32x128xf32> to vector<32x128xbf16>
    %c1_95 = arith.constant 1 : index
    %c0_96 = arith.constant 0 : index
    %c0_97 = arith.constant 0 : index
    %262 = vector.load %arg7[%c1_95, %c0_96, %c0_97] : memref<2x128x384xbf16, #tpu.memory_space<vmem>>, vector<1x128x384xbf16>
    %263 = vector.shape_cast %262 : vector<1x128x384xbf16> to vector<128x384xbf16>
    %cst_98 = arith.constant dense<0.000000e+00> : vector<32x384xf32>
    %264 = tpu.matmul %261, %263, %cst_98 {dimension_numbers = #tpu.dot_dimension_numbers<[1], [0], [0], [1], [0, 0, 1, 1], [], []>} : vector<32x128xbf16>, vector<128x384xbf16>, vector<32x384xf32> -> vector<32x384xf32>
    %c1_99 = arith.constant 1 : index
    %c0_100 = arith.constant 0 : index
    %c0_101 = arith.constant 0 : index
    %265 = vector.load %arg8[%c1_99, %c0_100, %c0_101] : memref<2x1x384xf32, #tpu.memory_space<vmem>>, vector<1x1x384xf32>
    %266 = vector.shape_cast %265 : vector<1x1x384xf32> to vector<1x384xf32>
    %267 = vector.broadcast %266 : vector<1x384xf32> to vector<32x384xf32>
    %268 = arith.addf %264, %267 : vector<32x384xf32>
    %c1_102 = arith.constant 1 : index
    %c0_103 = arith.constant 0 : index
    %c0_104 = arith.constant 0 : index
    %269 = vector.load %arg9[%c1_102, %c0_103, %c0_104] : memref<2x128x128xbf16, #tpu.memory_space<vmem>>, vector<1x128x128xbf16>
    %270 = vector.shape_cast %269 : vector<1x128x128xbf16> to vector<128x128xbf16>
    %271 = vector.extract_strided_slice %268 {offsets = [0, 0], sizes = [32, 32], strides = [1, 1]} : vector<32x384xf32> to vector<32x32xf32>
    %272 = vector.shape_cast %271 : vector<32x32xf32> to vector<4x8x32xf32>
    %273 = arith.truncf %272 : vector<4x8x32xf32> to vector<4x8x32xbf16>
    %274 = vector.extract_strided_slice %268 {offsets = [0, 128], sizes = [32, 32], strides = [1, 1]} : vector<32x384xf32> to vector<32x32xf32>
    %275 = vector.shape_cast %274 : vector<32x32xf32> to vector<4x8x32xf32>
    %276 = arith.truncf %275 : vector<4x8x32xf32> to vector<4x8x32xbf16>
    %277 = vector.extract_strided_slice %268 {offsets = [0, 256], sizes = [32, 32], strides = [1, 1]} : vector<32x384xf32> to vector<32x32xf32>
    %278 = vector.shape_cast %277 : vector<32x32xf32> to vector<4x8x32xf32>
    %279 = arith.truncf %278 : vector<4x8x32xf32> to vector<4x8x32xbf16>
    "tpu.trace_start"() <{level = 10 : i32, message = "bqd,bkd->bqk"}> : () -> ()
    %cst_105 = arith.constant dense<0.000000e+00> : vector<4x8x8xf32>
    %280 = tpu.matmul %273, %276, %cst_105 {dimension_numbers = #tpu.dot_dimension_numbers<[2], [2], [1], [1], [0, 0, 0, 1, 1, 1], [0], [0]>} : vector<4x8x32xbf16>, vector<4x8x32xbf16>, vector<4x8x8xf32> -> vector<4x8x8xf32>
    "tpu.trace_stop"() : () -> ()
    %cst_106 = arith.constant 0.176776692 : f32
    %281 = vector.broadcast %cst_106 : f32 to vector<4x8x8xf32>
    %282 = arith.mulf %280, %281 : vector<4x8x8xf32>
    %283 = vector.shape_cast %10 : vector<8x8xf32> to vector<1x8x8xf32>
    %284 = vector.broadcast %283 : vector<1x8x8xf32> to vector<4x8x8xf32>
    %285 = arith.addf %282, %284 : vector<4x8x8xf32>
    %cst_107 = arith.constant dense<0xFF800000> : vector<4x8xf32>
    %286 = vector.multi_reduction <maximumf>, %285, %cst_107 [2] : vector<4x8x8xf32> to vector<4x8xf32>
    %287 = vector.shape_cast %286 : vector<4x8xf32> to vector<4x8x1xf32>
    %288 = vector.broadcast %287 : vector<4x8x1xf32> to vector<4x8x8xf32>
    %289 = arith.subf %285, %288 : vector<4x8x8xf32>
    %290 = math.exp %289 : vector<4x8x8xf32>
    %cst_108 = arith.constant dense<0.000000e+00> : vector<4x8xf32>
    %291 = vector.multi_reduction <add>, %290, %cst_108 [2] : vector<4x8x8xf32> to vector<4x8xf32>
    %292 = vector.shape_cast %291 : vector<4x8xf32> to vector<4x8x1xf32>
    %293 = tpu.reciprocal %292 {approx = true} : vector<4x8x1xf32> -> vector<4x8x1xf32>
    %294 = vector.broadcast %293 : vector<4x8x1xf32> to vector<4x8x8xf32>
    %295 = arith.mulf %290, %294 : vector<4x8x8xf32>
    %296 = arith.truncf %295 : vector<4x8x8xf32> to vector<4x8x8xbf16>
    "tpu.trace_start"() <{level = 10 : i32, message = "bqk,bkd->bqd"}> : () -> ()
    %cst_109 = arith.constant dense<0.000000e+00> : vector<4x8x32xf32>
    %297 = tpu.matmul %296, %279, %cst_109 {dimension_numbers = #tpu.dot_dimension_numbers<[2], [1], [1], [2], [0, 0, 0, 1, 1, 2], [0], [0]>} : vector<4x8x8xbf16>, vector<4x8x32xbf16>, vector<4x8x32xf32> -> vector<4x8x32xf32>
    "tpu.trace_stop"() : () -> ()
    %298 = vector.shape_cast %297 : vector<4x8x32xf32> to vector<32x32xf32>
    %299 = arith.truncf %298 : vector<32x32xf32> to vector<32x32xbf16>
    %300 = vector.extract_strided_slice %270 {offsets = [0, 0], sizes = [32, 128], strides = [1, 1]} : vector<128x128xbf16> to vector<32x128xbf16>
    %cst_110 = arith.constant dense<0.000000e+00> : vector<32x128xf32>
    %301 = tpu.matmul %299, %300, %cst_110 {dimension_numbers = #tpu.dot_dimension_numbers<[1], [0], [0], [1], [0, 0, 1, 1], [], []>} : vector<32x32xbf16>, vector<32x128xbf16>, vector<32x128xf32> -> vector<32x128xf32>
    %302 = vector.extract_strided_slice %268 {offsets = [0, 32], sizes = [32, 32], strides = [1, 1]} : vector<32x384xf32> to vector<32x32xf32>
    %303 = vector.shape_cast %302 : vector<32x32xf32> to vector<4x8x32xf32>
    %304 = arith.truncf %303 : vector<4x8x32xf32> to vector<4x8x32xbf16>
    %305 = vector.extract_strided_slice %268 {offsets = [0, 160], sizes = [32, 32], strides = [1, 1]} : vector<32x384xf32> to vector<32x32xf32>
    %306 = vector.shape_cast %305 : vector<32x32xf32> to vector<4x8x32xf32>
    %307 = arith.truncf %306 : vector<4x8x32xf32> to vector<4x8x32xbf16>
    %308 = vector.extract_strided_slice %268 {offsets = [0, 288], sizes = [32, 32], strides = [1, 1]} : vector<32x384xf32> to vector<32x32xf32>
    %309 = vector.shape_cast %308 : vector<32x32xf32> to vector<4x8x32xf32>
    %310 = arith.truncf %309 : vector<4x8x32xf32> to vector<4x8x32xbf16>
    "tpu.trace_start"() <{level = 10 : i32, message = "bqd,bkd->bqk"}> : () -> ()
    %cst_111 = arith.constant dense<0.000000e+00> : vector<4x8x8xf32>
    %311 = tpu.matmul %304, %307, %cst_111 {dimension_numbers = #tpu.dot_dimension_numbers<[2], [2], [1], [1], [0, 0, 0, 1, 1, 1], [0], [0]>} : vector<4x8x32xbf16>, vector<4x8x32xbf16>, vector<4x8x8xf32> -> vector<4x8x8xf32>
    "tpu.trace_stop"() : () -> ()
    %cst_112 = arith.constant 0.176776692 : f32
    %312 = vector.broadcast %cst_112 : f32 to vector<4x8x8xf32>
    %313 = arith.mulf %311, %312 : vector<4x8x8xf32>
    %314 = vector.shape_cast %10 : vector<8x8xf32> to vector<1x8x8xf32>
    %315 = vector.broadcast %314 : vector<1x8x8xf32> to vector<4x8x8xf32>
    %316 = arith.addf %313, %315 : vector<4x8x8xf32>
    %cst_113 = arith.constant dense<0xFF800000> : vector<4x8xf32>
    %317 = vector.multi_reduction <maximumf>, %316, %cst_113 [2] : vector<4x8x8xf32> to vector<4x8xf32>
    %318 = vector.shape_cast %317 : vector<4x8xf32> to vector<4x8x1xf32>
    %319 = vector.broadcast %318 : vector<4x8x1xf32> to vector<4x8x8xf32>
    %320 = arith.subf %316, %319 : vector<4x8x8xf32>
    %321 = math.exp %320 : vector<4x8x8xf32>
    %cst_114 = arith.constant dense<0.000000e+00> : vector<4x8xf32>
    %322 = vector.multi_reduction <add>, %321, %cst_114 [2] : vector<4x8x8xf32> to vector<4x8xf32>
    %323 = vector.shape_cast %322 : vector<4x8xf32> to vector<4x8x1xf32>
    %324 = tpu.reciprocal %323 {approx = true} : vector<4x8x1xf32> -> vector<4x8x1xf32>
    %325 = vector.broadcast %324 : vector<4x8x1xf32> to vector<4x8x8xf32>
    %326 = arith.mulf %321, %325 : vector<4x8x8xf32>
    %327 = arith.truncf %326 : vector<4x8x8xf32> to vector<4x8x8xbf16>
    "tpu.trace_start"() <{level = 10 : i32, message = "bqk,bkd->bqd"}> : () -> ()
    %cst_115 = arith.constant dense<0.000000e+00> : vector<4x8x32xf32>
    %328 = tpu.matmul %327, %310, %cst_115 {dimension_numbers = #tpu.dot_dimension_numbers<[2], [1], [1], [2], [0, 0, 0, 1, 1, 2], [0], [0]>} : vector<4x8x8xbf16>, vector<4x8x32xbf16>, vector<4x8x32xf32> -> vector<4x8x32xf32>
    "tpu.trace_stop"() : () -> ()
    %329 = vector.shape_cast %328 : vector<4x8x32xf32> to vector<32x32xf32>
    %330 = arith.truncf %329 : vector<32x32xf32> to vector<32x32xbf16>
    %331 = vector.extract_strided_slice %270 {offsets = [32, 0], sizes = [32, 128], strides = [1, 1]} : vector<128x128xbf16> to vector<32x128xbf16>
    %cst_116 = arith.constant dense<0.000000e+00> : vector<32x128xf32>
    %332 = tpu.matmul %330, %331, %cst_116 {dimension_numbers = #tpu.dot_dimension_numbers<[1], [0], [0], [1], [0, 0, 1, 1], [], []>} : vector<32x32xbf16>, vector<32x128xbf16>, vector<32x128xf32> -> vector<32x128xf32>
    %333 = arith.addf %301, %332 : vector<32x128xf32>
    %334 = vector.extract_strided_slice %268 {offsets = [0, 64], sizes = [32, 32], strides = [1, 1]} : vector<32x384xf32> to vector<32x32xf32>
    %335 = vector.shape_cast %334 : vector<32x32xf32> to vector<4x8x32xf32>
    %336 = arith.truncf %335 : vector<4x8x32xf32> to vector<4x8x32xbf16>
    %337 = vector.extract_strided_slice %268 {offsets = [0, 192], sizes = [32, 32], strides = [1, 1]} : vector<32x384xf32> to vector<32x32xf32>
    %338 = vector.shape_cast %337 : vector<32x32xf32> to vector<4x8x32xf32>
    %339 = arith.truncf %338 : vector<4x8x32xf32> to vector<4x8x32xbf16>
    %340 = vector.extract_strided_slice %268 {offsets = [0, 320], sizes = [32, 32], strides = [1, 1]} : vector<32x384xf32> to vector<32x32xf32>
    %341 = vector.shape_cast %340 : vector<32x32xf32> to vector<4x8x32xf32>
    %342 = arith.truncf %341 : vector<4x8x32xf32> to vector<4x8x32xbf16>
    "tpu.trace_start"() <{level = 10 : i32, message = "bqd,bkd->bqk"}> : () -> ()
    %cst_117 = arith.constant dense<0.000000e+00> : vector<4x8x8xf32>
    %343 = tpu.matmul %336, %339, %cst_117 {dimension_numbers = #tpu.dot_dimension_numbers<[2], [2], [1], [1], [0, 0, 0, 1, 1, 1], [0], [0]>} : vector<4x8x32xbf16>, vector<4x8x32xbf16>, vector<4x8x8xf32> -> vector<4x8x8xf32>
    "tpu.trace_stop"() : () -> ()
    %cst_118 = arith.constant 0.176776692 : f32
    %344 = vector.broadcast %cst_118 : f32 to vector<4x8x8xf32>
    %345 = arith.mulf %343, %344 : vector<4x8x8xf32>
    %346 = vector.shape_cast %10 : vector<8x8xf32> to vector<1x8x8xf32>
    %347 = vector.broadcast %346 : vector<1x8x8xf32> to vector<4x8x8xf32>
    %348 = arith.addf %345, %347 : vector<4x8x8xf32>
    %cst_119 = arith.constant dense<0xFF800000> : vector<4x8xf32>
    %349 = vector.multi_reduction <maximumf>, %348, %cst_119 [2] : vector<4x8x8xf32> to vector<4x8xf32>
    %350 = vector.shape_cast %349 : vector<4x8xf32> to vector<4x8x1xf32>
    %351 = vector.broadcast %350 : vector<4x8x1xf32> to vector<4x8x8xf32>
    %352 = arith.subf %348, %351 : vector<4x8x8xf32>
    %353 = math.exp %352 : vector<4x8x8xf32>
    %cst_120 = arith.constant dense<0.000000e+00> : vector<4x8xf32>
    %354 = vector.multi_reduction <add>, %353, %cst_120 [2] : vector<4x8x8xf32> to vector<4x8xf32>
    %355 = vector.shape_cast %354 : vector<4x8xf32> to vector<4x8x1xf32>
    %356 = tpu.reciprocal %355 {approx = true} : vector<4x8x1xf32> -> vector<4x8x1xf32>
    %357 = vector.broadcast %356 : vector<4x8x1xf32> to vector<4x8x8xf32>
    %358 = arith.mulf %353, %357 : vector<4x8x8xf32>
    %359 = arith.truncf %358 : vector<4x8x8xf32> to vector<4x8x8xbf16>
    "tpu.trace_start"() <{level = 10 : i32, message = "bqk,bkd->bqd"}> : () -> ()
    %cst_121 = arith.constant dense<0.000000e+00> : vector<4x8x32xf32>
    %360 = tpu.matmul %359, %342, %cst_121 {dimension_numbers = #tpu.dot_dimension_numbers<[2], [1], [1], [2], [0, 0, 0, 1, 1, 2], [0], [0]>} : vector<4x8x8xbf16>, vector<4x8x32xbf16>, vector<4x8x32xf32> -> vector<4x8x32xf32>
    "tpu.trace_stop"() : () -> ()
    %361 = vector.shape_cast %360 : vector<4x8x32xf32> to vector<32x32xf32>
    %362 = arith.truncf %361 : vector<32x32xf32> to vector<32x32xbf16>
    %363 = vector.extract_strided_slice %270 {offsets = [64, 0], sizes = [32, 128], strides = [1, 1]} : vector<128x128xbf16> to vector<32x128xbf16>
    %cst_122 = arith.constant dense<0.000000e+00> : vector<32x128xf32>
    %364 = tpu.matmul %362, %363, %cst_122 {dimension_numbers = #tpu.dot_dimension_numbers<[1], [0], [0], [1], [0, 0, 1, 1], [], []>} : vector<32x32xbf16>, vector<32x128xbf16>, vector<32x128xf32> -> vector<32x128xf32>
    %365 = arith.addf %333, %364 : vector<32x128xf32>
    %366 = vector.extract_strided_slice %268 {offsets = [0, 96], sizes = [32, 32], strides = [1, 1]} : vector<32x384xf32> to vector<32x32xf32>
    %367 = vector.shape_cast %366 : vector<32x32xf32> to vector<4x8x32xf32>
    %368 = arith.truncf %367 : vector<4x8x32xf32> to vector<4x8x32xbf16>
    %369 = vector.extract_strided_slice %268 {offsets = [0, 224], sizes = [32, 32], strides = [1, 1]} : vector<32x384xf32> to vector<32x32xf32>
    %370 = vector.shape_cast %369 : vector<32x32xf32> to vector<4x8x32xf32>
    %371 = arith.truncf %370 : vector<4x8x32xf32> to vector<4x8x32xbf16>
    %372 = vector.extract_strided_slice %268 {offsets = [0, 352], sizes = [32, 32], strides = [1, 1]} : vector<32x384xf32> to vector<32x32xf32>
    %373 = vector.shape_cast %372 : vector<32x32xf32> to vector<4x8x32xf32>
    %374 = arith.truncf %373 : vector<4x8x32xf32> to vector<4x8x32xbf16>
    "tpu.trace_start"() <{level = 10 : i32, message = "bqd,bkd->bqk"}> : () -> ()
    %cst_123 = arith.constant dense<0.000000e+00> : vector<4x8x8xf32>
    %375 = tpu.matmul %368, %371, %cst_123 {dimension_numbers = #tpu.dot_dimension_numbers<[2], [2], [1], [1], [0, 0, 0, 1, 1, 1], [0], [0]>} : vector<4x8x32xbf16>, vector<4x8x32xbf16>, vector<4x8x8xf32> -> vector<4x8x8xf32>
    "tpu.trace_stop"() : () -> ()
    %cst_124 = arith.constant 0.176776692 : f32
    %376 = vector.broadcast %cst_124 : f32 to vector<4x8x8xf32>
    %377 = arith.mulf %375, %376 : vector<4x8x8xf32>
    %378 = vector.shape_cast %10 : vector<8x8xf32> to vector<1x8x8xf32>
    %379 = vector.broadcast %378 : vector<1x8x8xf32> to vector<4x8x8xf32>
    %380 = arith.addf %377, %379 : vector<4x8x8xf32>
    %cst_125 = arith.constant dense<0xFF800000> : vector<4x8xf32>
    %381 = vector.multi_reduction <maximumf>, %380, %cst_125 [2] : vector<4x8x8xf32> to vector<4x8xf32>
    %382 = vector.shape_cast %381 : vector<4x8xf32> to vector<4x8x1xf32>
    %383 = vector.broadcast %382 : vector<4x8x1xf32> to vector<4x8x8xf32>
    %384 = arith.subf %380, %383 : vector<4x8x8xf32>
    %385 = math.exp %384 : vector<4x8x8xf32>
    %cst_126 = arith.constant dense<0.000000e+00> : vector<4x8xf32>
    %386 = vector.multi_reduction <add>, %385, %cst_126 [2] : vector<4x8x8xf32> to vector<4x8xf32>
    %387 = vector.shape_cast %386 : vector<4x8xf32> to vector<4x8x1xf32>
    %388 = tpu.reciprocal %387 {approx = true} : vector<4x8x1xf32> -> vector<4x8x1xf32>
    %389 = vector.broadcast %388 : vector<4x8x1xf32> to vector<4x8x8xf32>
    %390 = arith.mulf %385, %389 : vector<4x8x8xf32>
    %391 = arith.truncf %390 : vector<4x8x8xf32> to vector<4x8x8xbf16>
    "tpu.trace_start"() <{level = 10 : i32, message = "bqk,bkd->bqd"}> : () -> ()
    %cst_127 = arith.constant dense<0.000000e+00> : vector<4x8x32xf32>
    %392 = tpu.matmul %391, %374, %cst_127 {dimension_numbers = #tpu.dot_dimension_numbers<[2], [1], [1], [2], [0, 0, 0, 1, 1, 2], [0], [0]>} : vector<4x8x8xbf16>, vector<4x8x32xbf16>, vector<4x8x32xf32> -> vector<4x8x32xf32>
    "tpu.trace_stop"() : () -> ()
    %393 = vector.shape_cast %392 : vector<4x8x32xf32> to vector<32x32xf32>
    %394 = arith.truncf %393 : vector<32x32xf32> to vector<32x32xbf16>
    %395 = vector.extract_strided_slice %270 {offsets = [96, 0], sizes = [32, 128], strides = [1, 1]} : vector<128x128xbf16> to vector<32x128xbf16>
    %cst_128 = arith.constant dense<0.000000e+00> : vector<32x128xf32>
    %396 = tpu.matmul %394, %395, %cst_128 {dimension_numbers = #tpu.dot_dimension_numbers<[1], [0], [0], [1], [0, 0, 1, 1], [], []>} : vector<32x32xbf16>, vector<32x128xbf16>, vector<32x128xf32> -> vector<32x128xf32>
    %397 = arith.addf %365, %396 : vector<32x128xf32>
    %398 = arith.addf %234, %397 : vector<32x128xf32>
    %c1_129 = arith.constant 1 : index
    %c0_130 = arith.constant 0 : index
    %c0_131 = arith.constant 0 : index
    %399 = vector.load %arg10[%c1_129, %c0_130, %c0_131] : memref<2x1x128xf32, #tpu.memory_space<vmem>>, vector<1x1x128xf32>
    %400 = vector.shape_cast %399 : vector<1x1x128xf32> to vector<1x128xf32>
    %401 = vector.broadcast %400 : vector<1x128xf32> to vector<32x128xf32>
    %402 = arith.addf %398, %401 : vector<32x128xf32>
    %c1_132 = arith.constant 1 : index
    %c0_133 = arith.constant 0 : index
    %c0_134 = arith.constant 0 : index
    %403 = vector.load %arg11[%c1_132, %c0_133, %c0_134] : memref<2x1x128xf32, #tpu.memory_space<vmem>>, vector<1x1x128xf32>
    %404 = vector.shape_cast %403 : vector<1x1x128xf32> to vector<1x128xf32>
    %c1_135 = arith.constant 1 : index
    %c0_136 = arith.constant 0 : index
    %c0_137 = arith.constant 0 : index
    %405 = vector.load %arg12[%c1_135, %c0_136, %c0_137] : memref<2x1x128xf32, #tpu.memory_space<vmem>>, vector<1x1x128xf32>
    %406 = vector.shape_cast %405 : vector<1x1x128xf32> to vector<1x128xf32>
    %cst_138 = arith.constant dense<0.000000e+00> : vector<32xf32>
    %407 = vector.multi_reduction <add>, %402, %cst_138 [1] : vector<32x128xf32> to vector<32xf32>
    %408 = vector.shape_cast %407 : vector<32xf32> to vector<32x1xf32>
    %cst_139 = arith.constant 1.280000e+02 : f32
    %409 = vector.broadcast %cst_139 : f32 to vector<32x1xf32>
    %410 = arith.divf %408, %409 : vector<32x1xf32>
    %411 = vector.broadcast %410 : vector<32x1xf32> to vector<32x128xf32>
    %412 = arith.subf %402, %411 : vector<32x128xf32>
    %413 = arith.mulf %412, %412 : vector<32x128xf32>
    %cst_140 = arith.constant dense<0.000000e+00> : vector<32xf32>
    %414 = vector.multi_reduction <add>, %413, %cst_140 [1] : vector<32x128xf32> to vector<32xf32>
    %415 = vector.shape_cast %414 : vector<32xf32> to vector<32x1xf32>
    %cst_141 = arith.constant 1.280000e+02 : f32
    %416 = vector.broadcast %cst_141 : f32 to vector<32x1xf32>
    %417 = arith.divf %415, %416 : vector<32x1xf32>
    %418 = vector.broadcast %410 : vector<32x1xf32> to vector<32x128xf32>
    %419 = arith.subf %402, %418 : vector<32x128xf32>
    %cst_142 = arith.constant 9.99999997E-7 : f32
    %420 = vector.broadcast %cst_142 : f32 to vector<32x1xf32>
    %421 = arith.addf %417, %420 : vector<32x1xf32>
    %422 = math.rsqrt %421 : vector<32x1xf32>
    %423 = vector.broadcast %422 : vector<32x1xf32> to vector<32x128xf32>
    %424 = arith.mulf %419, %423 : vector<32x128xf32>
    %425 = vector.broadcast %404 : vector<1x128xf32> to vector<32x128xf32>
    %426 = arith.mulf %424, %425 : vector<32x128xf32>
    %427 = vector.broadcast %406 : vector<1x128xf32> to vector<32x128xf32>
    %428 = arith.addf %426, %427 : vector<32x128xf32>
    %429 = arith.truncf %428 : vector<32x128xf32> to vector<32x128xbf16>
    %c1_143 = arith.constant 1 : index
    %c0_144 = arith.constant 0 : index
    %c0_145 = arith.constant 0 : index
    %430 = vector.load %arg13[%c1_143, %c0_144, %c0_145] : memref<2x128x512xbf16, #tpu.memory_space<vmem>>, vector<1x128x512xbf16>
    %431 = vector.shape_cast %430 : vector<1x128x512xbf16> to vector<128x512xbf16>
    %cst_146 = arith.constant dense<0.000000e+00> : vector<32x512xf32>
    %432 = tpu.matmul %429, %431, %cst_146 {dimension_numbers = #tpu.dot_dimension_numbers<[1], [0], [0], [1], [0, 0, 1, 1], [], []>} : vector<32x128xbf16>, vector<128x512xbf16>, vector<32x512xf32> -> vector<32x512xf32>
    %c1_147 = arith.constant 1 : index
    %c0_148 = arith.constant 0 : index
    %c0_149 = arith.constant 0 : index
    %433 = vector.load %arg14[%c1_147, %c0_148, %c0_149] : memref<2x1x512xf32, #tpu.memory_space<vmem>>, vector<1x1x512xf32>
    %434 = vector.shape_cast %433 : vector<1x1x512xf32> to vector<1x512xf32>
    %435 = vector.broadcast %434 : vector<1x512xf32> to vector<32x512xf32>
    %436 = arith.addf %432, %435 : vector<32x512xf32>
    %437 = arith.mulf %436, %436 : vector<32x512xf32>
    %438 = arith.mulf %436, %437 : vector<32x512xf32>
    %cst_150 = arith.constant 4.471500e-02 : f32
    %439 = vector.broadcast %cst_150 : f32 to vector<32x512xf32>
    %440 = arith.mulf %439, %438 : vector<32x512xf32>
    %441 = arith.addf %436, %440 : vector<32x512xf32>
    %cst_151 = arith.constant 0.797884583 : f32
    %442 = vector.broadcast %cst_151 : f32 to vector<32x512xf32>
    %443 = arith.mulf %442, %441 : vector<32x512xf32>
    %444 = math.tanh %443 : vector<32x512xf32>
    %cst_152 = arith.constant 1.000000e+00 : f32
    %445 = vector.broadcast %cst_152 : f32 to vector<32x512xf32>
    %446 = arith.addf %445, %444 : vector<32x512xf32>
    %cst_153 = arith.constant 5.000000e-01 : f32
    %447 = vector.broadcast %cst_153 : f32 to vector<32x512xf32>
    %448 = arith.mulf %447, %446 : vector<32x512xf32>
    %449 = arith.mulf %436, %448 : vector<32x512xf32>
    %450 = arith.truncf %449 : vector<32x512xf32> to vector<32x512xbf16>
    %c1_154 = arith.constant 1 : index
    %c0_155 = arith.constant 0 : index
    %c0_156 = arith.constant 0 : index
    %451 = vector.load %arg15[%c1_154, %c0_155, %c0_156] : memref<2x512x128xbf16, #tpu.memory_space<vmem>>, vector<1x512x128xbf16>
    %452 = vector.shape_cast %451 : vector<1x512x128xbf16> to vector<512x128xbf16>
    %cst_157 = arith.constant dense<0.000000e+00> : vector<32x128xf32>
    %453 = tpu.matmul %450, %452, %cst_157 {dimension_numbers = #tpu.dot_dimension_numbers<[1], [0], [0], [1], [0, 0, 1, 1], [], []>} : vector<32x512xbf16>, vector<512x128xbf16>, vector<32x128xf32> -> vector<32x128xf32>
    %454 = arith.addf %402, %453 : vector<32x128xf32>
    %c1_158 = arith.constant 1 : index
    %c0_159 = arith.constant 0 : index
    %c0_160 = arith.constant 0 : index
    %455 = vector.load %arg16[%c1_158, %c0_159, %c0_160] : memref<2x1x128xf32, #tpu.memory_space<vmem>>, vector<1x1x128xf32>
    %456 = vector.shape_cast %455 : vector<1x1x128xf32> to vector<1x128xf32>
    %457 = vector.broadcast %456 : vector<1x128xf32> to vector<32x128xf32>
    %458 = arith.addf %454, %457 : vector<32x128xf32>
    %c0_161 = arith.constant 0 : index
    %c0_162 = arith.constant 0 : index
    %459 = vector.load %arg17[%c0_161, %c0_162] : memref<1x128xf32, #tpu.memory_space<vmem>>, vector<1x128xf32>
    %c0_163 = arith.constant 0 : index
    %c0_164 = arith.constant 0 : index
    %460 = vector.load %arg18[%c0_163, %c0_164] : memref<1x128xf32, #tpu.memory_space<vmem>>, vector<1x128xf32>
    %cst_165 = arith.constant dense<0.000000e+00> : vector<32xf32>
    %461 = vector.multi_reduction <add>, %458, %cst_165 [1] : vector<32x128xf32> to vector<32xf32>
    %462 = vector.shape_cast %461 : vector<32xf32> to vector<32x1xf32>
    %cst_166 = arith.constant 1.280000e+02 : f32
    %463 = vector.broadcast %cst_166 : f32 to vector<32x1xf32>
    %464 = arith.divf %462, %463 : vector<32x1xf32>
    %465 = vector.broadcast %464 : vector<32x1xf32> to vector<32x128xf32>
    %466 = arith.subf %458, %465 : vector<32x128xf32>
    %467 = arith.mulf %466, %466 : vector<32x128xf32>
    %cst_167 = arith.constant dense<0.000000e+00> : vector<32xf32>
    %468 = vector.multi_reduction <add>, %467, %cst_167 [1] : vector<32x128xf32> to vector<32xf32>
    %469 = vector.shape_cast %468 : vector<32xf32> to vector<32x1xf32>
    %cst_168 = arith.constant 1.280000e+02 : f32
    %470 = vector.broadcast %cst_168 : f32 to vector<32x1xf32>
    %471 = arith.divf %469, %470 : vector<32x1xf32>
    %472 = vector.broadcast %464 : vector<32x1xf32> to vector<32x128xf32>
    %473 = arith.subf %458, %472 : vector<32x128xf32>
    %cst_169 = arith.constant 9.99999997E-7 : f32
    %474 = vector.broadcast %cst_169 : f32 to vector<32x1xf32>
    %475 = arith.addf %471, %474 : vector<32x1xf32>
    %476 = math.rsqrt %475 : vector<32x1xf32>
    %477 = vector.broadcast %476 : vector<32x1xf32> to vector<32x128xf32>
    %478 = arith.mulf %473, %477 : vector<32x128xf32>
    %479 = vector.broadcast %459 : vector<1x128xf32> to vector<32x128xf32>
    %480 = arith.mulf %478, %479 : vector<32x128xf32>
    %481 = vector.broadcast %460 : vector<1x128xf32> to vector<32x128xf32>
    %482 = arith.addf %480, %481 : vector<32x128xf32>
    %483 = arith.truncf %482 : vector<32x128xf32> to vector<32x128xbf16>
    %c0_170 = arith.constant 0 : index
    %c0_171 = arith.constant 0 : index
    %484 = vector.load %arg19[%c0_170, %c0_171] : memref<128x128xbf16, #tpu.memory_space<vmem>>, vector<128x128xbf16>
    %cst_172 = arith.constant dense<0.000000e+00> : vector<32x128xf32>
    %485 = tpu.matmul %483, %484, %cst_172 {dimension_numbers = #tpu.dot_dimension_numbers<[1], [0], [0], [1], [0, 0, 1, 1], [], []>} : vector<32x128xbf16>, vector<128x128xbf16>, vector<32x128xf32> -> vector<32x128xf32>
    %c0_173 = arith.constant 0 : index
    %c0_174 = arith.constant 0 : index
    %486 = vector.load %arg20[%c0_173, %c0_174] : memref<1x128xf32, #tpu.memory_space<vmem>>, vector<1x128xf32>
    %487 = vector.broadcast %486 : vector<1x128xf32> to vector<32x128xf32>
    %488 = arith.addf %485, %487 : vector<32x128xf32>
    %489 = vector.shape_cast %488 : vector<32x128xf32> to vector<4x8x128xf32>
    %490 = arith.truncf %489 : vector<4x8x128xf32> to vector<4x8x128xbf16>
    %c0_175 = arith.constant 0 : index
    %c0_176 = arith.constant 0 : index
    %c0_177 = arith.constant 0 : index
    %491 = vector.load %arg21[%c0_175, %c0_176, %c0_177] : memref<4x8x128xbf16, #tpu.memory_space<vmem>>, vector<4x8x128xbf16>
    tpu.vector_store %arg21[%c0_175, %c0_176, %c0_177], %490 {strides = array<i32>} : memref<4x8x128xbf16, #tpu.memory_space<vmem>>, vector<4x8x128xbf16>,
    return
  }
  func.func @transform_0(%arg0: i32) -> (i32, i32, i32) {
    %c0_i32 = arith.constant 0 : i32
    %c0_i32_0 = arith.constant 0 : i32
    %c0_i32_1 = arith.constant 0 : i32
    return %arg0, %c0_i32, %c0_i32_0 : i32, i32, i32
  }
  func.func @transform_1(%arg0: i32) -> (i32, i32) {
    %c0_i32 = arith.constant 0 : i32
    %c0_i32_0 = arith.constant 0 : i32
    %c0_i32_1 = arith.constant 0 : i32
    return %c0_i32, %c0_i32_0 : i32, i32
  }
  func.func @transform_2(%arg0: i32) -> (i32, i32) {
    %c0_i32 = arith.constant 0 : i32
    %c0_i32_0 = arith.constant 0 : i32
    %c0_i32_1 = arith.constant 0 : i32
    return %c0_i32, %c0_i32_0 : i32, i32
  }
  func.func @transform_3(%arg0: i32) -> (i32, i32) {
    %c0_i32 = arith.constant 0 : i32
    %c0_i32_0 = arith.constant 0 : i32
    %c0_i32_1 = arith.constant 0 : i32
    return %c0_i32, %c0_i32_0 : i32, i32
  }
  func.func @transform_4(%arg0: i32) -> (i32, i32, i32) {
    %c0_i32 = arith.constant 0 : i32
    %c0_i32_0 = arith.constant 0 : i32
    %c0_i32_1 = arith.constant 0 : i32
    %c0_i32_2 = arith.constant 0 : i32
    return %c0_i32, %c0_i32_0, %c0_i32_1 : i32, i32, i32
  }
  func.func @transform_5(%arg0: i32) -> (i32, i32, i32) {
    %c0_i32 = arith.constant 0 : i32
    %c0_i32_0 = arith.constant 0 : i32
    %c0_i32_1 = arith.constant 0 : i32
    %c0_i32_2 = arith.constant 0 : i32
    return %c0_i32, %c0_i32_0, %c0_i32_1 : i32, i32, i32
  }
  func.func @transform_6(%arg0: i32) -> (i32, i32, i32) {
    %c0_i32 = arith.constant 0 : i32
    %c0_i32_0 = arith.constant 0 : i32
    %c0_i32_1 = arith.constant 0 : i32
    %c0_i32_2 = arith.constant 0 : i32
    return %c0_i32, %c0_i32_0, %c0_i32_1 : i32, i32, i32
  }
  func.func @transform_7(%arg0: i32) -> (i32, i32, i32) {
    %c0_i32 = arith.constant 0 : i32
    %c0_i32_0 = arith.constant 0 : i32
    %c0_i32_1 = arith.constant 0 : i32
    %c0_i32_2 = arith.constant 0 : i32
    return %c0_i32, %c0_i32_0, %c0_i32_1 : i32, i32, i32
  }
  func.func @transform_8(%arg0: i32) -> (i32, i32, i32) {
    %c0_i32 = arith.constant 0 : i32
    %c0_i32_0 = arith.constant 0 : i32
    %c0_i32_1 = arith.constant 0 : i32
    %c0_i32_2 = arith.constant 0 : i32
    return %c0_i32, %c0_i32_0, %c0_i32_1 : i32, i32, i32
  }
  func.func @transform_9(%arg0: i32) -> (i32, i32, i32) {
    %c0_i32 = arith.constant 0 : i32
    %c0_i32_0 = arith.constant 0 : i32
    %c0_i32_1 = arith.constant 0 : i32
    %c0_i32_2 = arith.constant 0 : i32
    return %c0_i32, %c0_i32_0, %c0_i32_1 : i32, i32, i32
  }
  func.func @transform_10(%arg0: i32) -> (i32, i32, i32) {
    %c0_i32 = arith.constant 0 : i32
    %c0_i32_0 = arith.constant 0 : i32
    %c0_i32_1 = arith.constant 0 : i32
    %c0_i32_2 = arith.constant 0 : i32
    return %c0_i32, %c0_i32_0, %c0_i32_1 : i32, i32, i32
  }
  func.func @transform_11(%arg0: i32) -> (i32, i32, i32) {
    %c0_i32 = arith.constant 0 : i32
    %c0_i32_0 = arith.constant 0 : i32
    %c0_i32_1 = arith.constant 0 : i32
    %c0_i32_2 = arith.constant 0 : i32
    return %c0_i32, %c0_i32_0, %c0_i32_1 : i32, i32, i32
  }
  func.func @transform_12(%arg0: i32) -> (i32, i32, i32) {
    %c0_i32 = arith.constant 0 : i32
    %c0_i32_0 = arith.constant 0 : i32
    %c0_i32_1 = arith.constant 0 : i32
    %c0_i32_2 = arith.constant 0 : i32
    return %c0_i32, %c0_i32_0, %c0_i32_1 : i32, i32, i32
  }
  func.func @transform_13(%arg0: i32) -> (i32, i32, i32) {
    %c0_i32 = arith.constant 0 : i32
    %c0_i32_0 = arith.constant 0 : i32
    %c0_i32_1 = arith.constant 0 : i32
    %c0_i32_2 = arith.constant 0 : i32
    return %c0_i32, %c0_i32_0, %c0_i32_1 : i32, i32, i32
  }
  func.func @transform_14(%arg0: i32) -> (i32, i32, i32) {
    %c0_i32 = arith.constant 0 : i32
    %c0_i32_0 = arith.constant 0 : i32
    %c0_i32_1 = arith.constant 0 : i32
    %c0_i32_2 = arith.constant 0 : i32
    return %c0_i32, %c0_i32_0, %c0_i32_1 : i32, i32, i32
  }
  func.func @transform_15(%arg0: i32) -> (i32, i32, i32) {
    %c0_i32 = arith.constant 0 : i32
    %c0_i32_0 = arith.constant 0 : i32
    %c0_i32_1 = arith.constant 0 : i32
    %c0_i32_2 = arith.constant 0 : i32
    return %c0_i32, %c0_i32_0, %c0_i32_1 : i32, i32, i32
  }
  func.func @transform_16(%arg0: i32) -> (i32, i32) {
    %c0_i32 = arith.constant 0 : i32
    %c0_i32_0 = arith.constant 0 : i32
    %c0_i32_1 = arith.constant 0 : i32
    return %c0_i32, %c0_i32_0 : i32, i32
  }
  func.func @transform_17(%arg0: i32) -> (i32, i32) {
    %c0_i32 = arith.constant 0 : i32
    %c0_i32_0 = arith.constant 0 : i32
    %c0_i32_1 = arith.constant 0 : i32
    return %c0_i32, %c0_i32_0 : i32, i32
  }
  func.func @transform_18(%arg0: i32) -> (i32, i32) {
    %c0_i32 = arith.constant 0 : i32
    %c0_i32_0 = arith.constant 0 : i32
    %c0_i32_1 = arith.constant 0 : i32
    return %c0_i32, %c0_i32_0 : i32, i32
  }
  func.func @transform_19(%arg0: i32) -> (i32, i32) {
    %c0_i32 = arith.constant 0 : i32
    %c0_i32_0 = arith.constant 0 : i32
    %c0_i32_1 = arith.constant 0 : i32
    return %c0_i32, %c0_i32_0 : i32, i32
  }
  func.func @transform_20(%arg0: i32) -> (i32, i32, i32) {
    %c0_i32 = arith.constant 0 : i32
    %c0_i32_0 = arith.constant 0 : i32
    %c0_i32_1 = arith.constant 0 : i32
    return %arg0, %c0_i32, %c0_i32_0 : i32, i32, i32
  }
}

</mosaic_0001>

<bundles_post_ra>
// kernel: dino_encoder_forward.1
= control target key start
LH: loop header
LB: loop body
LE: loop exit
PB: predicated region body
PF: predicated region fallthrough
CT: control target
= control target key end

     0   :  { %vm9518_vm0 = vmmov 0   ;;  %vm979_vm1 = vcmask 261120   ;;  %vm1224_vm2 = vcmask 1043456   ;;  %vm1172_vm3 = vcmask 64512   ;;  %s9519_s27 = smov 96   ;;  %s11639_s3 = inlined_call_operand.vmem [shape: bf16[640,128], index: 3, kind: input, shape index: {}]   ;;  %s11640_s0 = inlined_call_operand.vmem [shape: bf16[4,8,640], index: 0, kind: input, shape index: {}]   ;;  %s11641_s1 = inlined_call_operand.vmem [shape: f32[8,128], index: 1, kind: input, shape index: {}]   ;;  %s11642_s6 = inlined_call_operand.vmem [shape: bf16[2,128,384], index: 6, kind: input, shape index: {}]   ;;  %s11643_s4 = inlined_call_operand.vmem [shape: f32[2,1,128], index: 4, kind: input, shape index: {}]   ;;  %s11644_s5 = inlined_call_operand.vmem [shape: f32[2,1,128], index: 5, kind: input, shape index: {}]   ;;  %s11645_s7 = inlined_call_operand.vmem [shape: f32[2,1,384], index: 7, kind: input, shape index: {}]   ;;  %s11646_s2 = inlined_call_operand.vmem [shape: f32[8,8], index: 2, kind: input, shape index: {}]   ;;  %s11647_s8 = inlined_call_operand.vmem [shape: bf16[2,128,128], index: 8, kind: input, shape index: {}]   ;;  %s11648_s9 = inlined_call_operand.vmem [shape: f32[2,1,128], index: 9, kind: input, shape index: {}]   ;;  %s11649_s12 = inlined_call_operand.vmem [shape: bf16[2,128,512], index: 12, kind: input, shape index: {}]   ;;  %s11650_s10 = inlined_call_operand.vmem [shape: f32[2,1,128], index: 10, kind: input, shape index: {}]   ;;  %s11651_s11 = inlined_call_operand.vmem [shape: f32[2,1,128], index: 11, kind: input, shape index: {}]   ;;  %s11652_s14 = inlined_call_operand.vmem [shape: bf16[2,512,128], index: 14, kind: input, shape index: {}]   ;;  %s11653_s13 = inlined_call_operand.vmem [shape: f32[2,1,512], index: 13, kind: input, shape index: {}]   ;;  %s11654_s15 = inlined_call_operand.vmem [shape: f32[2,1,128], index: 15, kind: input, shape index: {}]   ;;  %s11655_s18 = inlined_call_operand.vmem [shape: bf16[128,128], index: 18, kind: input, shape index: {}]   ;;  %s11656_s16 = inlined_call_operand.vmem [shape: f32[1,128], index: 16, kind: input, shape index: {}]   ;;  %s11657_s17 = inlined_call_operand.vmem [shape: f32[1,128], index: 17, kind: input, shape index: {}]   ;;  %s11658_s19 = inlined_call_operand.vmem [shape: f32[1,128], index: 19, kind: input, shape index: {}]   ;;  %s11659_s20 = inlined_call_operand.vmem [shape: bf16[4,8,128], index: 20, kind: output, shape index: {}]  }
   0x1   :  { %11666 = sst [smem:[#allocation2_spill]] %s11639_s3 }
   0x2   :  { %11667 = sst [smem:[#allocation3_spill]] %s11640_s0  ;;  %s11671_s23 = sld [smem:[#allocation2_spill]] }
   0x3   :  { %11668 = sst [smem:[#allocation4_spill]] %s11641_s1  ;;  %s11672_s29 = sld [smem:[#allocation3_spill]] }
   0x4   :  { %11669 = sst [smem:[#allocation5_spill]] %s11642_s6  ;;  %s11673_s6 = sld [smem:[#allocation4_spill]] }
   0x5   :  { %11670 = sst [smem:[#allocation6_spill]] %s11643_s4  ;;  %s11674_s28 = sld [smem:[#allocation5_spill]] }
   0x6   :  { %s11675_s24 = sld [smem:[#allocation6_spill]]  ;;  %s9520_s4 = smov 64  }
   0x8   :  { %v8979_v0 = vld [vmem:[%s11671_s23 + $0x40] sm:$0xff]   ;;  %v8983_v4 = vld [vmem:[%s11671_s23 + $0x48] sm:$0xff]   ;;  %v8987_v8 = vld [vmem:[%s11671_s23 + $0x50] sm:$0xff]  }
   0x9   :  { %v8980_v1 = vld [vmem:[%s11671_s23 + $0xc0] sm:$0xff]   ;;  %8053 = vmatprep.subr.bf16.mxu0 %v8979_v0  ;;  %v8984_v5 = vld [vmem:[%s11671_s23 + $0xc8] sm:$0xff]   ;;  %v8988_v9 = vld [vmem:[%s11671_s23 + $0xd0] sm:$0xff]  }
   0xa   :  { %v8981_v2 = vld [vmem:[%s11671_s23] sm:$0xff]   ;;  %8081 = vmatprep.subr.bf16.mxu1 %v8980_v1  ;;  %v8985_v6 = vld [vmem:[%s11671_s23 + $0x8] sm:$0xff]   ;;  %v8989_v10 = vld [vmem:[%s11671_s23 + $0x10] sm:$0xff]  }
   0xb   :  { %v8982_v3 = vld [vmem:[%s11671_s23 + $0x80] sm:$0xff]   ;;  %8054 = vmatpush3.bf16.msra.mxu0 %v8981_v2  ;;  %v8986_v7 = vld [vmem:[%s11671_s23 + $0x88] sm:$0xff]   ;;  %v8990_v11 = vld [vmem:[%s11671_s23 + $0x90] sm:$0xff]  }
   0xc   :  { %8082 = vmatpush3.bf16.msra.mxu1 %v8982_v3  ;;  %8055 = vmatprep.subr.bf16.mxu0 %v8983_v4  ;;  %v8991_v12 = vld [vmem:[%s11671_s23 + $0x58] sm:$0xff]   ;;  %v8995_v16 = vld [vmem:[%s11671_s23 + $0x60] sm:$0xff]   ;;  %v8999_v20 = vld [vmem:[%s11671_s23 + $0x68] sm:$0xff]  }
   0xd   :  { %8083 = vmatprep.subr.bf16.mxu1 %v8984_v5  ;;  %v8992_v13 = vld [vmem:[%s11671_s23 + $0xd8] sm:$0xff]   ;;  %v8996_v17 = vld [vmem:[%s11671_s23 + $0xe0] sm:$0xff]   ;;  %v9000_v21 = vld [vmem:[%s11671_s23 + $0xe8] sm:$0xff]  }
   0xe   :  { %v8993_v14 = vld [vmem:[%s11671_s23 + $0x18] sm:$0xff]   ;;  %v8997_v18 = vld [vmem:[%s11671_s23 + $0x20] sm:$0xff]   ;;  %v9001_v22 = vld [vmem:[%s11671_s23 + $0x28] sm:$0xff]  }
   0xf   :  { %8056 = vmatpush3.bf16.msra.mxu0 %v8985_v6  ;;  %v8994_v15 = vld [vmem:[%s11671_s23 + $0x98] sm:$0xff]   ;;  %v8998_v19 = vld [vmem:[%s11671_s23 + $0xa0] sm:$0xff]   ;;  %v9002_v23 = vld [vmem:[%s11671_s23 + $0xa8] sm:$0xff]  }
  0x10   :  { %8084 = vmatpush3.bf16.msra.mxu1 %v8986_v7  ;;  %8057 = vmatprep.subr.bf16.mxu0 %v8987_v8  ;;  %v9003_v24 = vld [vmem:[%s11671_s23 + $0x70] sm:$0xff]   ;;  %v9007_v28 = vld [vmem:[%s11671_s23 + $0x78] sm:$0xff]   ;;  %v9016_v35 = vld [vmem:[%s11672_s29 + $0xc] ss:$20 sps:$4 sm:$0xff]  }
  0x11   :  { %8085 = vmatprep.subr.bf16.mxu1 %v8988_v9  ;;  %v9004_v25 = vld [vmem:[%s11671_s23 + $0xf0] sm:$0xff]   ;;  %v9008_v29 = vld [vmem:[%s11671_s23 + $0xf8] sm:$0xff]   ;;  %v9017_v36 = vld [vmem:[%s11671_s23 + $0x100] sm:$0xff]   ;;  %531 = vmatprep.mubr.bf16.mxu1 %v9016_v35 }
  0x12   :  { %v9005_v26 = vld [vmem:[%s11671_s23 + $0x30] sm:$0xff]   ;;  %v9009_v30 = vld [vmem:[%s11671_s23 + $0x38] sm:$0xff]   ;;  %v9018_v37 = vld [vmem:[%s11671_s23 + $0x108] sm:$0xff]  }
  0x13   :  { %8058 = vmatpush3.bf16.msra.mxu0 %v8989_v10  ;;  %v9006_v27 = vld [vmem:[%s11671_s23 + $0xb0] sm:$0xff]   ;;  %v9010_v31 = vld [vmem:[%s11671_s23 + $0xb8] sm:$0xff]   ;;  %v9022_v39 = vld [vmem:[%s11672_s29 + $0x2c] ss:$20 sps:$4 sm:$0xff]  }
  0x14   :  { %8086 = vmatpush3.bf16.msra.mxu1 %v8990_v11  ;;  %8059 = vmatprep.subr.bf16.mxu0 %v8991_v12  ;;  %v9011_v32 = vld [vmem:[%s11672_s29] ss:$20 sps:$4 sm:$0xff]   ;;  %v9013_v33 = vld [vmem:[%s11672_s29 + $0x4] ss:$20 sps:$4 sm:$0xff]   ;;  %v9014_v34 = vld [vmem:[%s11672_s29 + $0x8] ss:$20 sps:$4 sm:$0xff]  }
  0x15   :  { %8087 = vmatprep.subr.bf16.mxu1 %v8992_v13  ;;  %482 = vmatprep.mubr.bf16.mxu0 %v9013_v33  ;;  %v9019_v38 = vld [vmem:[%s11671_s23 + $0x110] sm:$0xff]   ;;  %v9020_v41 = vld [vmem:[%s11671_s23 + $0x118] sm:$0xff]   ;;  %v9021_v45 = vld [vmem:[%s11671_s23 + $0x120] sm:$0xff]  }
  0x16   :  { %v9024_v40 = vld [vmem:[%s11672_s29 + $0x34] ss:$20 sps:$4 sm:$0xff]   ;;  %v9028_v43 = vld [vmem:[%s11672_s29 + $0x30] ss:$20 sps:$4 sm:$0xff]   ;;  %v9030_v48 = vld [vmem:[%s11671_s23 + $0x138] sm:$0xff]  }
  0x17   :  { %8060 = vmatpush3.bf16.msra.mxu0 %v8993_v14  ;;  %v9027_v42 = vld [vmem:[%s11672_s29 + $0x28] ss:$20 sps:$4 sm:$0xff]   ;;  %v9031_v44 = vld [vmem:[%s11672_s29 + $0x10] ss:$20 sps:$4 sm:$0xff]   ;;  %v9032_v49 = vld [vmem:[%s11672_s29 + $0x38] ss:$20 sps:$4 sm:$0xff]  }
  0x18   :  { %8088 = vmatpush3.bf16.msra.mxu1 %v8994_v15  ;;  %8061 = vmatprep.subr.bf16.mxu0 %v8995_v16  ;;  %v9026_v46 = vld [vmem:[%s11671_s23 + $0x128] sm:$0xff]   ;;  %v9029_v47 = vld [vmem:[%s11671_s23 + $0x130] sm:$0xff]   ;;  %v597_v15 = vld [vmem:[%s11673_s6] sm:$0xff]  ;;  %s11664_s29 = smov 32   ;;  %s11676_s23 = smov 32  }
  0x19   :  { %8089 = vmatprep.subr.bf16.mxu1 %v8996_v17 }
  0x1b   :  { %8062 = vmatpush3.bf16.msra.mxu0 %v8997_v18 }
  0x1c   :  { %8090 = vmatpush3.bf16.msra.mxu1 %v8998_v19  ;;  %8063 = vmatprep.subr.bf16.mxu0 %v8999_v20 }
  0x1d   :  { %8091 = vmatprep.subr.bf16.mxu1 %v9000_v21 }
  0x1f   :  { %8064 = vmatpush3.bf16.msra.mxu0 %v9001_v22 }
  0x20   :  { %8092 = vmatpush3.bf16.msra.mxu1 %v9002_v23  ;;  %8065 = vmatprep.subr.bf16.mxu0 %v9003_v24 }
  0x21   :  { %8093 = vmatprep.subr.bf16.mxu1 %v9004_v25 }
  0x23   :  { %8066 = vmatpush3.bf16.msra.mxu0 %v9005_v26 }
  0x24   :  { %8094 = vmatpush3.bf16.msra.mxu1 %v9006_v27  ;;  %8067 = vmatprep.subr.bf16.mxu0 %v9007_v28  ;;  %v9033_v27 = vld [vmem:[%s11674_s28] ss:$12 sps:$4 sm:$0xff]   ;;  %v9035_v28 = vld [vmem:[%s11674_s28 + $0x4] ss:$12 sps:$4 sm:$0xff]  }
  0x25   :  { %8095 = vmatprep.subr.bf16.mxu1 %v9008_v29  ;;  %v9038_v29 = vld [vmem:[%s11674_s28 + $0x1c] ss:$12 sps:$4 sm:$0xff]  }
  0x27   :  { %8068 = vmatpush3.bf16.msra.mxu0 %v9009_v30  ;;  %v9036_v30 = vld [vmem:[%s11674_s28 + $0x18] ss:$12 sps:$4 sm:$0xff]  }
  0x28   :  { %8096 = vmatpush3.bf16.msra.mxu1 %v9010_v31  ;;  %8421 = vmatprep.subr.bf16.mxu0 %v9017_v36  ;;  %v9039_v31 = vld [vmem:[%s11674_s28 + $0x8] ss:$12 sps:$4 sm:$0xff]  }
  0x29   :  { %849 = vmatprep.subr.bf16.mxu1 %v9035_v28 }
  0x2a   :  { %483 = vmatmul.mubr.bf16.vlgmr.msra.gmra.mrb[0].mxu0 %v9011_v32 }
  0x2b   :  { %532 = vmatmul.mubr.bf16.vlgmr.msra.gmra.mrb[0].mxu1 %v9014_v34  ;;  %8422 = vmatpush3.bf16.msra.mxu0 %v9017_v36 }
  0x2c   :  { %8423 = vmatprep.subr.bf16.mxu0 %v9018_v37  ;;  %490 = vmatprep.mubr.bf16.mxu0 %v9022_v39 }
  0x2d   :  { %539 = vmatprep.mubr.bf16.mxu1 %v9024_v40  ;;  %850 = vmatpush1.bf16.msra.mxu1 %v9033_v27  ;;  %v7596_v27 = vld [vmem:[%s11644_s5] ss:$0 sm:$0xff] }
  0x2e   :  { %851 = vmatprep.subr.bf16.mxu1 %v9038_v29 }
  0x2f   :  { %8424 = vmatpush3.bf16.msra.mxu0 %v9018_v37 }
  0x30   :  { %8425 = vmatprep.subr.bf16.mxu0 %v9019_v38 }
  0x31   :  { %852 = vmatpush1.bf16.msra.mxu1 %v9036_v30 }
  0x32   :  { %491 = vmatmul.mubr.bf16.gmra.mrb[4].mxu0 %v9027_v42 }
  0x33   :  { %540 = vmatmul.mubr.bf16.gmra.mrb[4].mxu1 %v9028_v43  ;;  %8426 = vmatpush3.bf16.msra.mxu0 %v9019_v38 }
  0x34   :  { %8427 = vmatprep.subr.bf16.mxu0 %v9020_v41  ;;  %8437 = vmatprep.mubr.bf16.mxu0 %v9031_v44 }
  0x37   :  { %8428 = vmatpush3.bf16.msra.mxu0 %v9020_v41 }
  0x38   :  { %8429 = vmatprep.subr.bf16.mxu0 %v9021_v45 }
  0x3b   :  { %8430 = vmatpush3.bf16.msra.mxu0 %v9021_v45 }
  0x3c   :  { %8431 = vmatprep.subr.bf16.mxu0 %v9026_v46 }
  0x3f   :  { %8432 = vmatpush3.bf16.msra.mxu0 %v9026_v46 }
  0x40   :  { %8433 = vmatprep.subr.bf16.mxu0 %v9029_v47 }
  0x43   :  { %8434 = vmatpush3.bf16.msra.mxu0 %v9029_v47 }
  0x44   :  { %8435 = vmatprep.subr.bf16.mxu0 %v9030_v48 }
  0x47   :  { %8436 = vmatpush3.bf16.msra.mxu0 %v9030_v48  ;;  %v9042_v48 = vld [vmem:[%s11674_s28 + $0x34] ss:$12 sps:$4 sm:$0xff]  }
  0x48   :  { %8441 = vmatprep.subr.bf16.mxu0 %v9039_v31  ;;  %853 = vmatprep.subr.bf16.mxu1 %v9042_v48 }
  0x4a   :  { %8438 = vmatmul.mubr.bf16.vlgmr.msra.gmra.mrb[8].mxu0 %v9032_v49  ;;  %v9043_v49 = vld [vmem:[%s11674_s28 + $0x20] ss:$12 sps:$4 sm:$0xff]  }
  0x4b   :  { %8442 = vmatpush3.bf16.msra.mxu0 %v9039_v31 }
  0x4c   :  { %8443 = vmatprep.subr.bf16.mxu0 %v9043_v49 }
  0x4f   :  { %8444 = vmatpush3.bf16.msra.mxu0 %v9043_v49 }
  0xfd   :  { %v8069_v50 = vpop.f32.mrb[0].mxu0 }
  0xfe   :  { %v8097_v51 = vpop.f32.mrb[0].mxu1  ;;  %v8070_v52 = vpop.f32.mrb[1].mxu0 }
  0xff   :  { %v8071_v53 = vadd.f32 %v8070_v52, %v8069_v50  ;;  %v8098_v54 = vpop.f32.mrb[1].mxu1  ;;  %v8072_v55 = vpop.f32.mrb[2].mxu0  ;;  %v9040_v50 = vld [vmem:[%s11674_s28 + $0x30] ss:$12 sps:$4 sm:$0xff]   ;;  %v9047_v52 = vld [vmem:[%s11674_s28 + $0x38] ss:$12 sps:$4 sm:$0xff]  }
 0x100   :  { %v8099_v56 = vadd.f32 %v8098_v54, %v8097_v51  ;;  %v8100_v57 = vpop.f32.mrb[2].mxu1  ;;  %v8073_v58 = vpop.f32.mrb[3].mxu0  ;;  %854 = vmatpush1.bf16.msra.mxu1 %v9040_v50  ;;  %v9046_v51 = vld [vmem:[%s11674_s28 + $0x4c] ss:$12 sps:$4 sm:$0xff]   ;;  %8445 = vmatprep.subr.bf16.mxu0 %v9047_v52  ;;  %v9050_v54 = vld [vmem:[%s11674_s28 + $0x64] ss:$12 sps:$4 sm:$0xff]  }
 0x101   :  { %v8074_v59 = vadd.f32 %v8073_v58, %v8072_v55  ;;  %v8101_v60 = vpop.f32.mrb[3].mxu1  ;;  %855 = vmatprep.subr.bf16.mxu1 %v9046_v51  ;;  %8446 = vmatpush3.bf16.msra.mxu0 %v9047_v52  ;;  %v9051_v55 = vld [vmem:[%s11674_s28 + $0x50] ss:$12 sps:$4 sm:$0xff]   ;;  %v9055_v58 = vld [vmem:[%s11674_s28 + $0x68] ss:$12 sps:$4 sm:$0xff]  }
 0x102   :  { %v8102_v61 = vadd.f32 %v8101_v60, %v8100_v57  ;;  %v534_v62 = vadd.f32 %v8099_v56, %v8071_v53  ;;  %v9044_v53 = vld [vmem:[%s11674_s28 + $0x48] ss:$12 sps:$4 sm:$0xff]   ;;  %v9048_v56 = vld [vmem:[%s11674_s28 + $0x60] ss:$12 sps:$4 sm:$0xff]   ;;  %8447 = vmatprep.subr.bf16.mxu0 %v9051_v55 }
 0x103   :  { %v9054_v57 = vld [vmem:[%s11674_s28 + $0x7c] ss:$12 sps:$4 sm:$0xff]   ;;  %v9058_v60 = vld [vmem:[%s11674_s28 + $0x94] ss:$12 sps:$4 sm:$0xff]  }
 0x104   :  { %v537_v63 = vadd.f32 %v8102_v61, %v8074_v59  ;;  %856 = vmatpush1.bf16.msra.mxu1 %v9044_v53  ;;  %v9052_v59 = vld [vmem:[%s11674_s28 + $0x78] ss:$12 sps:$4 sm:$0xff]   ;;  %v9059_v61 = vld [vmem:[%s11674_s28 + $0x80] ss:$12 sps:$4 sm:$0xff]  }
 0x105   :  { %v8075_v0 = vpop.f32.mrb[4].mxu0  ;;  %857 = vmatprep.subr.bf16.mxu1 %v9050_v54  ;;  %8448 = vmatpush3.bf16.msra.mxu0 %v9051_v55 }
 0x106   :  { %v8103_v1 = vpop.f32.mrb[4].mxu1  ;;  %v8076_v2 = vpop.f32.mrb[5].mxu0  ;;  %8449 = vmatprep.subr.bf16.mxu0 %v9055_v58 }
 0x107   :  { %v8077_v3 = vadd.f32 %v8076_v2, %v8075_v0  ;;  %v8104_v4 = vpop.f32.mrb[5].mxu1  ;;  %v8078_v5 = vpop.f32.mrb[6].mxu0  ;;  %v9062_v0 = vld [vmem:[%s11674_s28 + $0xac] ss:$12 sps:$4 sm:$0xff]   ;;  %v9516_v2 = vmov 0  }
 0x108   :  { %v8105_v6 = vadd.f32 %v8104_v4, %v8103_v1  ;;  %v8106_v7 = vpop.f32.mrb[6].mxu1  ;;  %v8079_v8 = vpop.f32.mrb[7].mxu0  ;;  %858 = vmatpush1.bf16.msra.mxu1 %v9048_v56  ;;  %v9063_v1 = vld [vmem:[%s11674_s28 + $0x98] ss:$12 sps:$4 sm:$0xff]   ;;  %881 = vmatprep.mubr.bf16.mxu1 %v9516_v2 }
 0x109   :  { %v8080_v9 = vadd.f32 %v8079_v8, %v8078_v5  ;;  %v8107_v10 = vpop.f32.mrb[7].mxu1  ;;  %859 = vmatprep.subr.bf16.mxu1 %v9054_v57  ;;  %8450 = vmatpush3.bf16.msra.mxu0 %v9055_v58 }
 0x10a   :  { %v8108_v11 = vadd.f32 %v8107_v10, %v8106_v7  ;;  %v542_v12 = vadd.f32 %v8105_v6, %v8077_v3  ;;  %8451 = vmatprep.subr.bf16.mxu0 %v9059_v61  ;;  %v9064_v3 = vld [vmem:[%s11674_s28 + $0xb0] ss:$12 sps:$4 sm:$0xff]  }
 0x10c   :  { %v545_v13 = vadd.f32 %v8108_v11, %v8080_v9  ;;  %860 = vmatpush1.bf16.msra.mxu1 %v9052_v59 }
 0x10d   :  { %861 = vmatprep.subr.bf16.mxu1 %v9058_v60  ;;  %8452 = vmatpush3.bf16.msra.mxu0 %v9059_v61 }
 0x10e   :  { %8453 = vmatprep.subr.bf16.mxu0 %v9063_v1 }
 0x111   :  { %8454 = vmatpush3.bf16.msra.mxu0 %v9063_v1 }
 0x112   :  { %8455 = vmatprep.subr.bf16.mxu0 %v9064_v3 }
 0x115   :  { %8456 = vmatpush3.bf16.msra.mxu0 %v9064_v3 }
 0x11d   :  { %v8439_v14 = vpop.f32.mrb[8].mxu0 }
 0x11e   :  { %v591_v16 = vadd.f32 %v8439_v14, %v542_v12  ;;  %v582_v17 = vpop.f32.mrb[9].mxu0 }
 0x11f   :  { %v583_v18 = vadd.f32 %v582_v17, %v534_v62  ;;  %v8440_v19 = vpop.f32.mrb[10].mxu0  ;;  %v9056_v62 = vld [vmem:[%s11674_s28 + $0x90] ss:$12 sps:$4 sm:$0xff]  }
 0x120   :  { %v9780_v20 = vadd.f32 %v597_v15, %v591_v16  ;;  %v594_v21 = vadd.f32 %v8440_v19, %v545_v13  ;;  %v585_v22 = vpop.f32.mrb[11].mxu0  ;;  %862 = vmatpush1.bf16.msra.mxu1 %v9056_v62 }
 0x121   :  { %v9782_v23 = vadd.f32 %v597_v15, %v583_v18  ;;  %v586_v24 = vadd.f32 %v585_v22, %v537_v63  ;;  %v9060_v63 = vld [vmem:[%s11674_s28 + $0xa8] ss:$12 sps:$4 sm:$0xff]   ;;  %863 = vmatprep.subr.bf16.mxu1 %v9062_v0  ;;  %v7595_v18 = vld [vmem:[%s11675_s24] ss:$0 sm:$0xff] }
 0x122   :  { %609 = vadd.xlane.f32.xlu1 %v9780_v20  ;;  %v9786_v25 = vadd.f32 %v597_v15, %v594_v21 }
 0x123   :  { %605 = vadd.xlane.f32.xlu0 %v9782_v23  ;;  %v9788_v26 = vadd.f32 %v597_v15, %v586_v24 }
 0x124   :  { %864 = vmatpush1.bf16.msra.mxu1 %v9060_v63 }
 0x126   :  { %611 = vadd.xlane.f32.xlu1 %v9786_v25 }
 0x127   :  { %607 = vadd.xlane.f32.xlu0 %v9788_v26 }
 0x1af   :  { %v610_v32 = vpop.xlane.xlu1 %609 }
 0x1b0   :  { %v606_v33 = vpop.xlane.xlu0 %605  ;;  %v616_v34 = vmul.f32 0.0078125, %v610_v32 }
 0x1b1   :  { %v614_v35 = vmul.f32 0.0078125, %v606_v33 }
 0x1b2   :  { %v9813_v42 = vsub.f32 %v9780_v20, %v616_v34 }
 0x1b3   :  { %v612_v36 = vpop.xlane.xlu1 %611  ;;  %v9808_v37 = vsub.f32 %v9782_v23, %v614_v35 }
 0x1b4   :  { %v608_v38 = vpop.xlane.xlu0 %607  ;;  %v617_v39 = vmul.f32 0.0078125, %v612_v36  ;;  %v624_v44 = vmul.f32 %v9813_v42, %v9813_v42 }
 0x1b5   :  { %v615_v40 = vmul.f32 0.0078125, %v608_v38  ;;  %v622_v41 = vmul.f32 %v9808_v37, %v9808_v37 }
 0x1b6   :  { %v9823_v46 = vsub.f32 %v9786_v25, %v617_v39 }
 0x1b7   :  { %626 = vadd.xlane.f32.xlu0 %v622_v41  ;;  %v9816_v43 = vsub.f32 %v9788_v26, %v615_v40  ;;  %v9517_v40 = vmov 0.0   ;;  %v706_v41 = vlaneseq }
 0x1b8   :  { %v625_v47 = vmul.f32 %v9823_v46, %v9823_v46  ;;  %8461 = vmatprep.subr.bf16.mxu1 %v9517_v40  ;;  %8479 = vmatprep.subr.bf16.mxu0 %v9517_v40 }
 0x1b9   :  { %v623_v45 = vmul.f32 %v9816_v43, %v9816_v43 }
 0x1bb   :  { %630 = vadd.xlane.f32.xlu0 %v624_v44  ;;  %628 = vadd.xlane.f32.xlu1 %v623_v45  ;;  %v704_v44 = vld [vmem:[%s11645_s7] sm:$0x7] }
 0x1bf   :  { %632 = vadd.xlane.f32.xlu1 %v625_v47 }
 0x244   :  { %v627_v4 = vpop.xlane.xlu0 %626 }
 0x245   :  { %v634_v5 = vmul.f32 0.0078125, %v627_v4 }
 0x247   :  { %v638_v6 = vadd.f32 1e-06, %v634_v5 }
 0x248   :  { %v629_v7 = vpop.xlane.xlu1 %628  ;;  %v631_v8 = vpop.xlane.xlu0 %630 }
 0x249   :  { %9281 = vrsqrt.f32 %v638_v6  ;;  %v635_v9 = vmul.f32 0.0078125, %v629_v7  ;;  %v636_v10 = vmul.f32 0.0078125, %v631_v8 }
 0x24b   :  { %v639_v11 = vadd.f32 1e-06, %v635_v9  ;;  %v640_v12 = vadd.f32 1e-06, %v636_v10 }
 0x24c   :  { %v633_v13 = vpop.xlane.xlu1 %632 }
 0x24d   :  { %9283 = vrsqrt.f32 %v639_v11  ;;  %v637_v14 = vmul.f32 0.0078125, %v633_v13 }
 0x24e   :  { %9285 = vrsqrt.f32 %v640_v12 }
 0x24f   :  { %v641_v15 = vadd.f32 1e-06, %v637_v14 }
 0x251   :  { %9287 = vrsqrt.f32 %v641_v15 }
 0x253   :  { %v9282_v16 = vpop.eup %9281 }
 0x254   :  { %v646_v17 = vmul.f32 %v9282_v16, %v9808_v37 }
 0x256   :  { %v656_v22 = vmul.f32 %v7595_v18, %v646_v17 }
 0x257   :  { %v9284_v19 = vpop.eup %9283 }
 0x258   :  { %v9286_v21 = vpop.eup %9285  ;;  %v647_v24 = vmul.f32 %v9284_v19, %v9816_v43  ;;  %v666_v31 = vadd.f32 %v7596_v27, %v656_v22 }
 0x259   :  { %v648_v28 = vmul.f32 %v9286_v21, %v9813_v42  ;;  %v9902_v42 = vshrl.u32 %v706_v41, 7 }
 0x25a   :  { %v657_v29 = vmul.f32 %v7595_v18, %v647_v24 }
 0x25b   :  { %v9288_v30 = vpop.eup %9287  ;;  %v658_v34 = vmul.f32 %v7595_v18, %v648_v28  ;;  %v9905_v43 = vsub.s32 1, %v9902_v42  ;;  %v9911_v45 = vsub.s32 2, %v9902_v42  ;;  %v9915_v47 = vsub.s32 0, %v9902_v42 }
 0x25c   :  { %v667_v32 = vadd.f32 %v7596_v27, %v657_v29  ;;  %v649_v33 = vmul.f32 %v9288_v30, %v9823_v46 }
 0x25d   :  { %v668_v37 = vadd.f32 %v7596_v27, %v658_v34  ;;  %v713_v46 = vrot.slane %v704_v44, %v9905_v43  ;;  %v717_v50 = vrot.slane %v704_v44, %v9911_v45  ;;  %v709_v54 = vrot.slane %v704_v44, %v9915_v47 }
 0x25e   :  { %v670_v35 = vpack.c.bf16 %v667_v32, %v666_v31  ;;  %v659_v36 = vmul.f32 %v7595_v18, %v649_v33  ;;  %v9980_v32 = vld [vmem:[%s11646_s2] sm:$0xff] }
 0x260   :  { %882 = vmatmul.mubr.bf16.vlgmr.msra.gmra.mrb[8].mxu1 %v670_v35  ;;  %8457 = vmatprep.mubr.bf16.mxu0 %v670_v35  ;;  %v669_v38 = vadd.f32 %v7596_v27, %v659_v36 }
 0x261   :  { %891 = vmatprep.mubr.bf16.mxu1 %v9516_v2 }
 0x262   :  { %v671_v39 = vpack.c.bf16 %v669_v38, %v668_v37 }
 0x264   :  { %8458 = vmatmul.mubr.bf16.vlgmr.msra.gmra.mrb[12].mxu0 %v671_v39 }
 0x265   :  { %8481 = vmatprep.mubr.msk.bf16.mxu0 %vm9518_vm0, %v9517_v40 }
 0x268   :  { %892 = vmatmul.mubr.bf16.gmra.mrb[12].mxu1 %v671_v39 }
 0x269   :  { %8463 = vmatprep.mubr.msk.bf16.mxu1 %vm9518_vm0, %v9517_v40 }
 0x333   :  { %v883_v48 = vpop.f32.mrb[8].mxu1 }
 0x334   :  { %v885_v49 = vpop.f32.mrb[9].mxu1  ;;  %v884_v0 = vadd.f32 %v883_v48, %v709_v54 }
 0x335   :  { %v886_v51 = vadd.f32 %v885_v49, %v713_v46  ;;  %v887_v52 = vpop.f32.mrb[10].mxu1 }
 0x336   :  { %v889_v53 = vpop.f32.mrb[11].mxu1  ;;  %v9930_v7 = vpack.c.bf16 %v884_v0, %v884_v0  ;;  %v888_v12 = vadd.f32 %v887_v52, %v709_v54 }
 0x337   :  { %v9919_v55 = vpack.c.bf16 %v886_v51, %v886_v51  ;;  %v8459_v56 = vpop.f32.mrb[12].mxu0  ;;  %v890_v59 = vadd.f32 %v889_v53, %v713_v46 }
 0x338   :  { %v9921_v57 = vadd.f32 %v8459_v56, %v717_v50  ;;  %v936_v58 = vpop.f32.mrb[13].mxu0  ;;  %v9946_v17 = vpack.c.bf16 %v888_v12, %v888_v12 }
 0x339   :  { %v8460_v60 = vpop.f32.mrb[14].mxu0  ;;  %v984_v61 = vsel %vm979_vm1, %v9919_v55, 0  ;;  %v9928_v4 = vpack.c.bf16 %v890_v59, %v890_v59  ;;  %v937_v19 = vadd.f32 %v936_v58, %v717_v50 }
 0x33a   :  { %v9925_v62 = vadd.f32 %v8460_v60, %v717_v50  ;;  %v939_v63 = vpop.f32.mrb[15].mxu0  ;;  %8462 = vmatpush3.bf16.xpose.msra.mxu1 %v984_v61 }
 0x33b   :  { %v893_v1 = vpop.f32.mrb[12].mxu1  ;;  %8467 = vmatprep.subr.bf16.mxu1 %v9517_v40  ;;  %v1030_v11 = vsel %vm979_vm1, %v9928_v4, 0  ;;  %v940_v13 = vadd.f32 %v939_v63, %v717_v50  ;;  %v9965_v28 = vpack.c.bf16 %v937_v19, %v937_v19 }
 0x33c   :  { %v895_v3 = vpop.f32.mrb[13].mxu1  ;;  %v894_v24 = vadd.f32 %v893_v1, %v709_v54 }
 0x33d   :  { %v897_v5 = vpop.f32.mrb[14].mxu1  ;;  %v896_v9 = vadd.f32 %v895_v3, %v713_v46  ;;  %v9948_v18 = vpack.c.bf16 %v940_v13, %v940_v13  ;;  %v1226_v30 = vsel %vm1224_vm2, %v9965_v28, 0 }
 0x33e   :  { %v899_v6 = vpop.f32.mrb[15].mxu1  ;;  %v898_v16 = vadd.f32 %v897_v5, %v709_v54  ;;  %v9968_v29 = vpack.c.bf16 %v894_v24, %v894_v24 }
 0x33f   :  { %v900_v8 = vadd.f32 %v899_v6, %v713_v46  ;;  %v9943_v15 = vpack.c.bf16 %v896_v9, %v896_v9  ;;  %v1272_v27 = vsel %vm1224_vm2, %v9948_v18, 0 }
 0x340   :  { %v9950_v21 = vpack.c.bf16 %v898_v16, %v898_v16 }
 0x341   :  { %v9932_v10 = vpack.c.bf16 %v900_v8, %v900_v8  ;;  %8464 = vmatmul.mubr.msk.bf16.vlgmr.msra.gmra.mrb[16].mxu1 %vm979_vm1, %v9930_v7  ;;  %v1076_v22 = vsel %vm979_vm1, %v9943_v15, 0 }
 0x342   :  { %8468 = vmatpush3.bf16.xpose.msra.mxu1 %v1030_v11  ;;  %8469 = vmatprep.mubr.msk.bf16.mxu1 %vm9518_vm0, %v9517_v40 }
 0x343   :  { %v1122_v14 = vsel %vm979_vm1, %v9932_v10, 0  ;;  %8473 = vmatprep.subr.bf16.mxu1 %v9517_v40 }
 0x344   :  { %8480 = vmatpush3.bf16.xpose.msra.mxu0 %v1122_v14 }
 0x345   :  { %8491 = vmatprep.subr.bf16.mxu0 %v9517_v40 }
 0x349   :  { %8470 = vmatmul.mubr.msk.bf16.vlgmr.msra.gmra.mrb[20].mxu1 %vm979_vm1, %v9946_v17 }
 0x34a   :  { %8474 = vmatpush3.bf16.xpose.msra.mxu1 %v1076_v22  ;;  %8475 = vmatprep.mubr.msk.bf16.mxu1 %vm9518_vm0, %v9517_v40 }
 0x34b   :  { %8482 = vmatmul.mubr.msk.bf16.vlgmr.msra.gmra.mrb[16].mxu0 %vm979_vm1, %v9950_v21  ;;  %8485 = vmatprep.subr.bf16.mxu1 %v9517_v40 }
 0x34c   :  { %8492 = vmatpush3.bf16.msra.mxu0 %v1272_v27  ;;  %8493 = vmatprep.mubr.msk.bf16.mxu0 %vm9518_vm0, %v9517_v40 }
 0x34d   :  { %8503 = vmatprep.subr.bf16.mxu0 %v9517_v40 }
 0x351   :  { %8476 = vmatmul.mubr.msk.bf16.vlgmr.msra.gmra.mrb[24].mxu1 %vm979_vm1, %v9968_v29 }
 0x352   :  { %8486 = vmatpush3.bf16.msra.mxu1 %v1226_v30  ;;  %8487 = vmatprep.mubr.msk.bf16.mxu1 %vm9518_vm0, %v9517_v40 }
 0x353   :  { %8497 = vmatprep.subr.bf16.mxu1 %v9517_v40 }
 0x414   :  { %v1020_v31 = vpop.f32.mrb[16].mxu1 }
 0x415   :  { %v1164_v33 = vmul.f32 0.17677669, %v1020_v31  ;;  %v8465_v34 = vpop.f32.mrb[17].mxu1 }
 0x416   :  { %v1023_v35 = vpop.f32.mrb[18].mxu1 }
 0x417   :  { %v8466_v36 = vpop.f32.mrb[19].mxu1  ;;  %v1168_v37 = vadd.f32 %v1164_v33, %v9980_v32 }
 0x419   :  { %v1173_v38 = vsel %vm1172_vm3, %v1168_v37, -inf }
 0x41a   :  { %1174 = vmax.xlane.f32.xlu0 %v1173_v38 }
 0x41c   :  { %v1066_v39 = vpop.f32.mrb[20].mxu1 }
 0x41d   :  { %v1165_v41 = vmul.f32 0.17677669, %v1066_v39  ;;  %v8471_v44 = vpop.f32.mrb[21].mxu1 }
 0x41e   :  { %v1069_v46 = vpop.f32.mrb[22].mxu1  ;;  %v1158_v48 = vpop.f32.mrb[16].mxu0 }
 0x41f   :  { %v1167_v49 = vmul.f32 0.17677669, %v1158_v48  ;;  %v8472_v50 = vpop.f32.mrb[23].mxu1  ;;  %v8483_v51 = vpop.f32.mrb[17].mxu0  ;;  %v1169_v52 = vadd.f32 %v1165_v41, %v9980_v32  ;;  %v10012_v46 = vpack.c.bf16 %v9921_v57, %v9921_v57  ;;  %v10022_v57 = vpack.c.bf16 %v9925_v62, %v9925_v62 }
 0x420   :  { %v1161_v53 = vpop.f32.mrb[18].mxu0 }
 0x421   :  { %v8484_v54 = vpop.f32.mrb[19].mxu0  ;;  %v1176_v56 = vsel %vm1172_vm3, %v1169_v52, -inf  ;;  %v1171_v58 = vadd.f32 %v1167_v49, %v9980_v32  ;;  %v1318_v51 = vsel %vm1224_vm2, %v10012_v46, 0 }
 0x422   :  { %1177 = vmax.xlane.f32.xlu1 %v1176_v56 }
 0x423   :  { %v1182_v63 = vsel %vm1172_vm3, %v1171_v58, -inf }
 0x424   :  { %v1112_v59 = vpop.f32.mrb[24].mxu1 }
 0x425   :  { %v1166_v60 = vmul.f32 0.17677669, %v1112_v59  ;;  %v8477_v61 = vpop.f32.mrb[25].mxu1 }
 0x426   :  { %1183 = vmax.xlane.f32.xlu1 %v1182_v63  ;;  %v1115_v0 = vpop.f32.mrb[26].mxu1 }
 0x427   :  { %v8478_v1 = vpop.f32.mrb[27].mxu1  ;;  %v1170_v3 = vadd.f32 %v1166_v60, %v9980_v32  ;;  %v1364_v60 = vsel %vm1224_vm2, %v10022_v57, 0 }
 0x429   :  { %v1179_v5 = vsel %vm1172_vm3, %v1170_v3, -inf }
 0x42a   :  { %1180 = vmax.xlane.f32.xlu0 %v1179_v5 }
 0x4a7   :  { %v1175_v6 = vpop.xlane.xlu0 %1174 }
 0x4a8   :  { %v1185_v8 = vsub.f32 %v1168_v37, %v1175_v6 }
 0x4aa   :  { %v1189_v9 = vmul.f32 1.442695, %v1185_v8 }
 0x4ac   :  { %9289 = vpow2.f32 %v1189_v9 }
 0x4af   :  { %v1178_v11 = vpop.xlane.xlu1 %1177 }
 0x4b0   :  { %v1186_v12 = vsub.f32 %v1169_v52, %v1178_v11 }
 0x4b2   :  { %v1191_v13 = vmul.f32 1.442695, %v1186_v12 }
 0x4b3   :  { %v1184_v14 = vpop.xlane.xlu1 %1183 }
 0x4b4   :  { %9291 = vpow2.f32 %v1191_v13  ;;  %v1188_v16 = vsub.f32 %v1171_v58, %v1184_v14 }
 0x4b6   :  { %v9290_v19 = vpop.eup %9289  ;;  %v1195_v22 = vmul.f32 1.442695, %v1188_v16 }
 0x4b7   :  { %v1181_v24 = vpop.xlane.xlu0 %1180  ;;  %v1197_v27 = vsel %vm1172_vm3, %v9290_v19, 0.0 }
 0x4b8   :  { %9293 = vpow2.f32 %v1195_v22  ;;  %v1187_v30 = vsub.f32 %v1170_v3, %v1181_v24  ;;  %1198 = vadd.xlane.f32.xlu0 %v1197_v27 }
 0x4ba   :  { %v1193_v31 = vmul.f32 1.442695, %v1187_v30 }
 0x4bc   :  { %9295 = vpow2.f32 %v1193_v31 }
 0x4be   :  { %v9292_v33 = vpop.eup %9291 }
 0x4bf   :  { %v1200_v34 = vsel %vm1172_vm3, %v9292_v33, 0.0 }
 0x4c0   :  { %1201 = vadd.xlane.f32.xlu1 %v1200_v34 }
 0x4c2   :  { %v9294_v35 = vpop.eup %9293 }
 0x4c3   :  { %v1206_v36 = vsel %vm1172_vm3, %v9294_v35, 0.0 }
 0x4c4   :  { %1207 = vadd.xlane.f32.xlu1 %v1206_v36 }
 0x4c6   :  { %v9296_v37 = vpop.eup %9295 }
 0x4c7   :  { %v1203_v38 = vsel %vm1172_vm3, %v9296_v37, 0.0 }
 0x4c8   :  { %1204 = vadd.xlane.f32.xlu0 %v1203_v38 }
 0x4d5   :  { %1464 = vrot.lane.b32.xlu1 %v9928_v4, %s9519_s27 }
 0x4d9   :  { %1409 = vrot.lane.b32.xlu1 %v9930_v7, %s9519_s27 }
 0x4dd   :  { %1461 = vrot.lane.b32.xlu1 %v9946_v17, %s9519_s27 }
 0x4de   :  { %1412 = vrot.lane.b32.xlu0 %v9919_v55, %s9519_s27 }
 0x4e1   :  { %1568 = vrot.lane.b32.xlu1 %v9932_v10, %s9519_s27 }
 0x4e2   :  { %1516 = vrot.lane.b32.xlu0 %v9943_v15, %s9519_s27 }
 0x4e5   :  { %1565 = vrot.lane.b32.xlu1 %v9950_v21, %s9519_s27 }
 0x4e6   :  { %1513 = vrot.lane.b32.xlu0 %v9968_v29, %s9519_s27 }
 0x545   :  { %v1199_v39 = vpop.xlane.xlu0 %1198 }
 0x546   :  { %9297 = vrcp.f32 %v1199_v39 }
 0x54d   :  { %v1202_v41 = vpop.xlane.xlu1 %1201 }
 0x54e   :  { %9299 = vrcp.f32 %v1202_v41 }
 0x550   :  { %v9298_v44 = vpop.eup %9297 }
 0x551   :  { %v1208_v48 = vpop.xlane.xlu1 %1207  ;;  %v1213_v49 = vmul.f32 %v9298_v44, %v9290_v19 }
 0x552   :  { %9301 = vrcp.f32 %v1208_v48 }
 0x553   :  { %v1217_v50 = vpack.c.bf16 %v1213_v49, %v1213_v49 }
 0x555   :  { %8488 = vmatmul.mubr.msk.bf16.vlgmr.msra.gmra.mrb[28].mxu1 %vm1172_vm3, %v1217_v50  ;;  %v1205_v52 = vpop.xlane.xlu0 %1204  ;;  %v1465_v54 = vpop.permute.xlu1 %1464 }
 0x556   :  { %8498 = vmatpush3.bf16.msra.mxu1 %v1318_v51  ;;  %9303 = vrcp.f32 %v1205_v52  ;;  %8499 = vmatprep.mubr.msk.bf16.mxu1 %vm9518_vm0, %v9517_v40  ;;  %v1470_v9 = vsel %vm979_vm1, %v1465_v54, 0 }
 0x557   :  { %8509 = vmatprep.subr.bf16.mxu1 %v9517_v40 }
 0x558   :  { %v9300_v53 = vpop.eup %9299 }
 0x559   :  { %v1214_v56 = vmul.f32 %v9300_v53, %v9292_v33  ;;  %v1410_v61 = vpop.permute.xlu1 %1409  ;;  %v1413_v1 = vpop.permute.xlu0 %1412 }
 0x55a   :  { %v1418_v6 = vsel %vm979_vm1, %v1413_v1, 0 }
 0x55b   :  { %v1218_v58 = vpack.c.bf16 %v1214_v56, %v1214_v56 }
 0x55c   :  { %v9302_v59 = vpop.eup %9301 }
 0x55d   :  { %8494 = vmatmul.mubr.msk.bf16.vlgmr.msra.gmra.mrb[20].mxu0 %vm1172_vm3, %v1218_v58  ;;  %v1216_v63 = vmul.f32 %v9302_v59, %v9294_v35  ;;  %v1462_v8 = vpop.permute.xlu1 %1461  ;;  %v1517_v11 = vpop.permute.xlu0 %1516 }
 0x55e   :  { %8504 = vmatpush3.bf16.msra.mxu0 %v1364_v60  ;;  %8505 = vmatprep.mubr.msk.bf16.mxu0 %vm9518_vm0, %v9517_v40  ;;  %v1522_v13 = vsel %vm979_vm1, %v1517_v11, 0 }
 0x55f   :  { %8515 = vmatprep.subr.bf16.mxu0 %v9517_v40  ;;  %v1220_v3 = vpack.c.bf16 %v1216_v63, %v1216_v63 }
 0x560   :  { %v9304_v0 = vpop.eup %9303 }
 0x561   :  { %v1215_v62 = vmul.f32 %v9304_v0, %v9296_v37  ;;  %v1569_v12 = vpop.permute.xlu1 %1568  ;;  %v1514_v16 = vpop.permute.xlu0 %1513 }
 0x562   :  { %v1574_v14 = vsel %vm979_vm1, %v1569_v12, 0 }
 0x563   :  { %v1219_v5 = vpack.c.bf16 %v1215_v62, %v1215_v62 }
 0x565   :  { %8506 = vmatmul.mubr.msk.bf16.vlgmr.msra.gmra.mrb[24].mxu0 %vm1172_vm3, %v1220_v3  ;;  %8500 = vmatmul.mubr.msk.bf16.vlgmr.msra.gmra.mrb[32].mxu1 %vm1172_vm3, %v1219_v5  ;;  %v1566_v19 = vpop.permute.xlu1 %1565 }
 0x566   :  { %8510 = vmatpush3.bf16.xpose.msra.mxu1 %v1418_v6  ;;  %8511 = vmatprep.mubr.msk.bf16.mxu1 %vm9518_vm0, %v9517_v40 }
 0x567   :  { %8516 = vmatpush3.bf16.xpose.msra.mxu0 %v1470_v9  ;;  %8517 = vmatprep.mubr.msk.bf16.mxu0 %vm9518_vm0, %v9517_v40 }
 0x568   :  { %8521 = vmatprep.subr.bf16.mxu1 %v9517_v40  ;;  %8527 = vmatprep.subr.bf16.mxu0 %v9517_v40 }
 0x56d   :  { %8512 = vmatmul.mubr.msk.bf16.vlgmr.msra.gmra.mrb[36].mxu1 %vm979_vm1, %v1410_v61 }
 0x56e   :  { %8518 = vmatmul.mubr.msk.bf16.vlgmr.msra.gmra.mrb[28].mxu0 %vm979_vm1, %v1462_v8  ;;  %8522 = vmatpush3.bf16.xpose.msra.mxu1 %v1522_v13 }
 0x56f   :  { %8528 = vmatpush3.bf16.xpose.msra.mxu0 %v1574_v14  ;;  %8523 = vmatprep.mubr.msk.bf16.mxu1 %vm9518_vm0, %v9517_v40 }
 0x570   :  { %8529 = vmatprep.mubr.msk.bf16.mxu0 %vm9518_vm0, %v9517_v40  ;;  %8539 = vmatprep.subr.bf16.mxu0 %v9517_v40 }
 0x571   :  { %8533 = vmatprep.subr.bf16.mxu1 %v9517_v40 }
 0x575   :  { %8524 = vmatmul.mubr.msk.bf16.vlgmr.msra.gmra.mrb[40].mxu1 %vm979_vm1, %v1514_v16 }
 0x576   :  { %8530 = vmatmul.mubr.msk.bf16.vlgmr.msra.gmra.mrb[32].mxu0 %vm979_vm1, %v1566_v19  ;;  %8535 = vmatprep.mubr.msk.bf16.mxu1 %vm9518_vm0, %v9517_v40 }
 0x577   :  { %8541 = vmatprep.mubr.msk.bf16.mxu0 %vm9518_vm0, %v9517_v40 }
 0x628   :  { %v10056_v22 = vpop.f32.mrb[28].mxu1 }
 0x629   :  { %v8489_v24 = vpop.f32.mrb[29].mxu1 }
 0x62a   :  { %v1265_v27 = vpop.f32.mrb[30].mxu1 }
 0x62b   :  { %v8490_v30 = vpop.f32.mrb[31].mxu1 }
 0x630   :  { %v10058_v31 = vpop.f32.mrb[20].mxu0 }
 0x631   :  { %v1406_v33 = vpack.c.bf16 %v10058_v31, %v10056_v22  ;;  %v8495_v34 = vpop.f32.mrb[21].mxu0 }
 0x632   :  { %v1311_v35 = vpop.f32.mrb[22].mxu0 }
 0x633   :  { %v8496_v36 = vpop.f32.mrb[23].mxu0 }
 0x638   :  { %v10062_v37 = vpop.f32.mrb[32].mxu1  ;;  %v10064_v38 = vpop.f32.mrb[24].mxu0 }
 0x639   :  { %v1407_v39 = vpack.c.bf16 %v10064_v38, %v10062_v37  ;;  %v8501_v41 = vpop.f32.mrb[33].mxu1  ;;  %v8507_v44 = vpop.f32.mrb[25].mxu0 }
 0x63a   :  { %v1357_v48 = vpop.f32.mrb[34].mxu1  ;;  %v1403_v49 = vpop.f32.mrb[26].mxu0 }
 0x63b   :  { %v8502_v50 = vpop.f32.mrb[35].mxu1  ;;  %v8508_v51 = vpop.f32.mrb[27].mxu0 }
 0x640   :  { %v1454_v52 = vpop.f32.mrb[36].mxu1 }
 0x641   :  { %v1616_v53 = vmul.f32 0.17677669, %v1454_v52  ;;  %v1506_v54 = vpop.f32.mrb[28].mxu0  ;;  %v8513_v56 = vpop.f32.mrb[37].mxu1 }
 0x642   :  { %v1617_v58 = vmul.f32 0.17677669, %v1506_v54  ;;  %v8519_v59 = vpop.f32.mrb[29].mxu0  ;;  %v1457_v60 = vpop.f32.mrb[38].mxu1 }
 0x643   :  { %v1509_v61 = vpop.f32.mrb[30].mxu0  ;;  %v8514_v63 = vpop.f32.mrb[39].mxu1  ;;  %v1620_v0 = vadd.f32 %v1616_v53, %v9980_v32 }
 0x644   :  { %v8520_v62 = vpop.f32.mrb[31].mxu0  ;;  %v1621_v1 = vadd.f32 %v1617_v58, %v9980_v32 }
 0x645   :  { %v1624_v3 = vsel %vm1172_vm3, %v1620_v0, -inf }
 0x646   :  { %v1627_v5 = vsel %vm1172_vm3, %v1621_v1, -inf  ;;  %1625 = vmax.xlane.f32.xlu0 %v1624_v3 }
 0x647   :  { %1628 = vmax.xlane.f32.xlu1 %v1627_v5 }
 0x648   :  { %v1558_v6 = vpop.f32.mrb[40].mxu1 }
 0x649   :  { %v1618_v8 = vmul.f32 0.17677669, %v1558_v6  ;;  %v1610_v9 = vpop.f32.mrb[32].mxu0  ;;  %v8525_v11 = vpop.f32.mrb[41].mxu1 }
 0x64a   :  { %v1619_v12 = vmul.f32 0.17677669, %v1610_v9  ;;  %v8531_v13 = vpop.f32.mrb[33].mxu0  ;;  %v1561_v14 = vpop.f32.mrb[42].mxu1 }
 0x64b   :  { %v1613_v16 = vpop.f32.mrb[34].mxu0  ;;  %v8526_v19 = vpop.f32.mrb[43].mxu1  ;;  %v1622_v24 = vadd.f32 %v1618_v8, %v9980_v32 }
 0x64c   :  { %v8532_v27 = vpop.f32.mrb[35].mxu0  ;;  %v1623_v34 = vadd.f32 %v1619_v12, %v9980_v32 }
 0x64d   :  { %v1630_v30 = vsel %vm1172_vm3, %v1622_v24, -inf }
 0x64e   :  { %1631 = vmax.xlane.f32.xlu0 %v1630_v30  ;;  %v1633_v35 = vsel %vm1172_vm3, %v1623_v34, -inf }
 0x652   :  { %1634 = vmax.xlane.f32.xlu0 %v1633_v35 }
 0x6d3   :  { %v1626_v36 = vpop.xlane.xlu0 %1625 }
 0x6d4   :  { %v1629_v41 = vpop.xlane.xlu1 %1628  ;;  %v1636_v44 = vsub.f32 %v1620_v0, %v1626_v36 }
 0x6d5   :  { %v1637_v48 = vsub.f32 %v1621_v1, %v1629_v41 }
 0x6d6   :  { %v1640_v49 = vmul.f32 1.442695, %v1636_v44 }
 0x6d7   :  { %v1642_v50 = vmul.f32 1.442695, %v1637_v48 }
 0x6d8   :  { %9305 = vpow2.f32 %v1640_v49 }
 0x6d9   :  { %9307 = vpow2.f32 %v1642_v50 }
 0x6db   :  { %v1632_v51 = vpop.xlane.xlu0 %1631 }
 0x6dc   :  { %v1638_v52 = vsub.f32 %v1622_v24, %v1632_v51 }
 0x6de   :  { %v1644_v53 = vmul.f32 1.442695, %v1638_v52 }
 0x6df   :  { %v1635_v63 = vpop.xlane.xlu0 %1634 }
 0x6e0   :  { %9309 = vpow2.f32 %v1644_v53  ;;  %v1639_v0 = vsub.f32 %v1623_v34, %v1635_v63 }
 0x6e2   :  { %v9306_v54 = vpop.eup %9305  ;;  %v1646_v62 = vmul.f32 1.442695, %v1639_v0 }
 0x6e3   :  { %v9308_v56 = vpop.eup %9307  ;;  %v1648_v58 = vsel %vm1172_vm3, %v9306_v54, 0.0 }
 0x6e4   :  { %v1651_v59 = vsel %vm1172_vm3, %v9308_v56, 0.0  ;;  %1649 = vadd.xlane.f32.xlu0 %v1648_v58  ;;  %9311 = vpow2.f32 %v1646_v62 }
 0x6e5   :  { %1652 = vadd.xlane.f32.xlu1 %v1651_v59 }
 0x6ea   :  { %v9310_v60 = vpop.eup %9309 }
 0x6eb   :  { %v1654_v61 = vsel %vm1172_vm3, %v9310_v60, 0.0 }
 0x6ec   :  { %1655 = vadd.xlane.f32.xlu0 %v1654_v61 }
 0x6ee   :  { %v9312_v1 = vpop.eup %9311 }
 0x6ef   :  { %v1657_v3 = vsel %vm1172_vm3, %v9312_v1, 0.0 }
 0x6f6   :  { %1722 = vrot.lane.b32.xlu1 %v9948_v18, %s9519_s27 }
 0x6fa   :  { %1771 = vrot.lane.b32.xlu1 %v10012_v46, %s9519_s27 }
 0x702   :  { %1673 = vrot.lane.b32.xlu0 %v9965_v28, %s9519_s27 }
 0x706   :  { %2006 = vrot.lane.b32.xlu0 %v9919_v55, %s9520_s4 }
 0x70a   :  { %2056 = vrot.lane.b32.xlu0 %v9928_v4, %s9520_s4 }
 0x70e   :  { %2106 = vrot.lane.b32.xlu0 %v9943_v15, %s9520_s4 }
 0x712   :  { %2104 = vrot.lane.b32.xlu0 %v9968_v29, %s9520_s4 }
 0x71e   :  { %1658 = vadd.xlane.f32.xlu1 %v1657_v3  ;;  %v9066_v3 = vld [vmem:[%s11647_s8 + $0x18] sm:$0xff]  }
 0x72f   :  { %1820 = vrot.lane.b32.xlu1 %v10022_v57, %s9519_s27 }
 0x733   :  { %2004 = vrot.lane.b32.xlu1 %v9930_v7, %s9520_s4 }
 0x737   :  { %2054 = vrot.lane.b32.xlu1 %v9946_v17, %s9520_s4 }
 0x73b   :  { %2156 = vrot.lane.b32.xlu1 %v9932_v10, %s9520_s4 }
 0x73f   :  { %2154 = vrot.lane.b32.xlu1 %v9950_v21, %s9520_s4 }
 0x771   :  { %v1650_v5 = vpop.xlane.xlu0 %1649 }
 0x772   :  { %v1653_v6 = vpop.xlane.xlu1 %1652  ;;  %9313 = vrcp.f32 %v1650_v5  ;;  %v9067_v5 = vld [vmem:[%s11647_s8] sm:$0xff]  }
 0x773   :  { %9315 = vrcp.f32 %v1653_v6 }
 0x776   :  { %v1723_v8 = vpop.permute.xlu1 %1722 }
 0x777   :  { %v1728_v9 = vsel %vm1224_vm2, %v1723_v8, 0 }
 0x778   :  { %8540 = vmatpush3.bf16.msra.mxu0 %v1728_v9 }
 0x779   :  { %v1656_v11 = vpop.xlane.xlu0 %1655  ;;  %8551 = vmatprep.subr.bf16.mxu0 %v9517_v40 }
 0x77a   :  { %9317 = vrcp.f32 %v1656_v11  ;;  %v1772_v27 = vpop.permute.xlu1 %1771 }
 0x77b   :  { %v1777_v35 = vsel %vm1224_vm2, %v1772_v27, 0 }
 0x77c   :  { %v9314_v12 = vpop.eup %9313 }
 0x77d   :  { %v9316_v13 = vpop.eup %9315  ;;  %v1674_v14 = vpop.permute.xlu0 %1673  ;;  %v1664_v16 = vmul.f32 %v9314_v12, %v9306_v54 }
 0x77e   :  { %v1679_v19 = vsel %vm1224_vm2, %v1674_v14, 0  ;;  %v1665_v24 = vmul.f32 %v9316_v13, %v9308_v56 }
 0x77f   :  { %8534 = vmatpush3.bf16.msra.mxu1 %v1679_v19  ;;  %v1668_v30 = vpack.c.bf16 %v1664_v16, %v1664_v16 }
 0x780   :  { %v1669_v34 = vpack.c.bf16 %v1665_v24, %v1665_v24  ;;  %8545 = vmatprep.subr.bf16.mxu1 %v9517_v40 }
 0x781   :  { %v2007_v53 = vpop.permute.xlu0 %2006 }
 0x782   :  { %8542 = vmatmul.mubr.msk.bf16.vlgmr.msra.gmra.mrb[36].mxu0 %vm1172_vm3, %v1669_v34  ;;  %8536 = vmatmul.mubr.msk.bf16.vlgmr.msra.gmra.mrb[44].mxu1 %vm1172_vm3, %v1668_v30  ;;  %v2012_v56 = vsel %vm979_vm1, %v2007_v53, 0 }
 0x783   :  { %8546 = vmatpush3.bf16.msra.mxu1 %v1777_v35  ;;  %8547 = vmatprep.mubr.msk.bf16.mxu1 %vm9518_vm0, %v9517_v40 }
 0x784   :  { %v9318_v36 = vpop.eup %9317  ;;  %8553 = vmatprep.mubr.msk.bf16.mxu0 %vm9518_vm0, %v9517_v40 }
 0x785   :  { %v1666_v41 = vmul.f32 %v9318_v36, %v9310_v60  ;;  %v2057_v59 = vpop.permute.xlu0 %2056 }
 0x786   :  { %v2062_v61 = vsel %vm979_vm1, %v2057_v59, 0 }
 0x787   :  { %v1670_v44 = vpack.c.bf16 %v1666_v41, %v1666_v41 }
 0x78a   :  { %8548 = vmatmul.mubr.msk.bf16.vlgmr.msra.gmra.mrb[48].mxu1 %vm1172_vm3, %v1670_v44  ;;  %v9068_v44 = vld [vmem:[%s11647_s8 + $0x8] sm:$0xff]  }
 0x7ab   :  { %v1659_v48 = vpop.xlane.xlu1 %1658 }
 0x7ac   :  { %9319 = vrcp.f32 %v1659_v48 }
 0x7af   :  { %v1821_v49 = vpop.permute.xlu1 %1820 }
 0x7b0   :  { %v1826_v50 = vsel %vm1224_vm2, %v1821_v49, 0 }
 0x7b1   :  { %8552 = vmatpush3.bf16.msra.mxu0 %v1826_v50 }
 0x7b2   :  { %8573 = vmatprep.subr.bf16.mxu0 %v9517_v40 }
 0x7b3   :  { %v2005_v58 = vpop.permute.xlu1 %2004 }
 0x7b6   :  { %v9320_v51 = vpop.eup %9319 }
 0x7b7   :  { %v1667_v52 = vmul.f32 %v9320_v51, %v9312_v1  ;;  %v2055_v60 = vpop.permute.xlu1 %2054  ;;  %v9065_v1 = vld [vmem:[%s11647_s8 + $0x10] sm:$0xff]  }
 0x7b8   :  { %8557 = vmatprep.subr.bf16.mxu1 %v9065_v1 }
 0x7b9   :  { %v1671_v54 = vpack.c.bf16 %v1667_v52, %v1667_v52  ;;  %8558 = vmatpush3.bf16.msra.mxu1 %v9065_v1 }
 0x7ba   :  { %8559 = vmatprep.subr.bf16.mxu1 %v9066_v3 }
 0x7bb   :  { %8554 = vmatmul.mubr.msk.bf16.vlgmr.msra.gmra.mrb[40].mxu0 %vm1172_vm3, %v1671_v54  ;;  %v2157_v63 = vpop.permute.xlu1 %2156 }
 0x7bc   :  { %8574 = vmatpush3.bf16.xpose.msra.mxu0 %v2012_v56  ;;  %8575 = vmatprep.mubr.msk.bf16.mxu0 %vm9518_vm0, %v9517_v40  ;;  %v2162_v0 = vsel %vm979_vm1, %v2157_v63, 0 }
 0x7bd   :  { %8579 = vmatprep.subr.bf16.mxu0 %v9517_v40  ;;  %8560 = vmatpush3.bf16.msra.mxu1 %v9066_v3 }
 0x7be   :  { %8565 = vmatprep.subr.bf16.mxu1 %v9067_v5 }
 0x7bf   :  { %v2155_v62 = vpop.permute.xlu1 %2154 }
 0x7c3   :  { %8576 = vmatmul.mubr.msk.bf16.vlgmr.msra.gmra.mrb[44].mxu0 %vm979_vm1, %v2005_v58  ;;  %v2107_v58 = vpop.permute.xlu0 %2106 }
 0x7c4   :  { %8580 = vmatpush3.bf16.xpose.msra.mxu0 %v2062_v61  ;;  %8581 = vmatprep.mubr.msk.bf16.mxu0 %vm9518_vm0, %v9517_v40  ;;  %v2112_v22 = vsel %vm979_vm1, %v2107_v58, 0 }
 0x7c5   :  { %8591 = vmatprep.subr.bf16.mxu0 %v9517_v40 }
 0x7c7   :  { %v2105_v37 = vpop.permute.xlu0 %2104 }
 0x7cb   :  { %8582 = vmatmul.mubr.msk.bf16.vlgmr.msra.gmra.mrb[48].mxu0 %vm979_vm1, %v2055_v60 }
 0x7cc   :  { %8592 = vmatpush3.bf16.xpose.msra.mxu0 %v2162_v0  ;;  %8593 = vmatprep.mubr.msk.bf16.mxu0 %vm9518_vm0, %v9517_v40 }
 0x7cd   :  { %8603 = vmatprep.subr.bf16.mxu0 %v9517_v40 }
 0x7d3   :  { %8594 = vmatmul.mubr.msk.bf16.vlgmr.msra.gmra.mrb[52].mxu0 %vm979_vm1, %v2155_v62 }
 0x7d4   :  { %8605 = vmatprep.mubr.msk.bf16.mxu0 %vm9518_vm0, %v9517_v40 }
 0x855   :  { %v1764_v6 = vpop.f32.mrb[36].mxu0  ;;  %v1715_v8 = vpop.f32.mrb[44].mxu1 }
 0x856   :  { %v1868_v9 = vpack.c.bf16 %v1764_v6, %v1715_v8  ;;  %v8543_v11 = vpop.f32.mrb[37].mxu0  ;;  %v8537_v12 = vpop.f32.mrb[45].mxu1 }
 0x857   :  { %v1767_v13 = vpop.f32.mrb[38].mxu0  ;;  %v1718_v14 = vpop.f32.mrb[46].mxu1 }
 0x858   :  { %v8544_v16 = vpop.f32.mrb[39].mxu0  ;;  %v8538_v19 = vpop.f32.mrb[47].mxu1  ;;  %8561 = vmatprep.mubr.msk.bf16.mxu1 %vm979_vm1, %v1868_v9 }
 0x85d   :  { %v1813_v24 = vpop.f32.mrb[48].mxu1 }
 0x85e   :  { %v8549_v27 = vpop.f32.mrb[49].mxu1 }
 0x85f   :  { %v1816_v30 = vpop.f32.mrb[50].mxu1 }
 0x860   :  { %v8550_v34 = vpop.f32.mrb[51].mxu1 }
 0x88e   :  { %v1862_v35 = vpop.f32.mrb[40].mxu0 }
 0x88f   :  { %v1869_v36 = vpack.c.bf16 %v1862_v35, %v1813_v24  ;;  %v8555_v41 = vpop.f32.mrb[41].mxu0 }
 0x890   :  { %v1865_v48 = vpop.f32.mrb[42].mxu0 }
 0x891   :  { %v8556_v49 = vpop.f32.mrb[43].mxu0  ;;  %8562 = vmatmul.mubr.msk.bf16.vlgmr.msra.gmra.mrb[52].mxu1 %vm979_vm1, %v1869_v36 }
 0x892   :  { %8566 = vmatpush3.bf16.msra.mxu1 %v9067_v5  ;;  %8569 = vmatprep.mubr.msk.bf16.mxu1 %vm979_vm1, %v1406_v33 }
 0x893   :  { %8567 = vmatprep.subr.bf16.mxu1 %v9068_v44 }
 0x896   :  { %8568 = vmatpush3.bf16.msra.mxu1 %v9068_v44  ;;  %v2048_v50 = vpop.f32.mrb[44].mxu0 }
 0x897   :  { %v2204_v51 = vmul.f32 0.17677669, %v2048_v50  ;;  %v8577_v52 = vpop.f32.mrb[45].mxu0  ;;  %8585 = vmatprep.subr.bf16.mxu1 %v9517_v40 }
 0x898   :  { %v2051_v53 = vpop.f32.mrb[46].mxu0 }
 0x899   :  { %v8578_v54 = vpop.f32.mrb[47].mxu0  ;;  %v2208_v56 = vadd.f32 %v2204_v51, %v9980_v32 }
 0x89b   :  { %v2212_v59 = vsel %vm1172_vm3, %v2208_v56, -inf }
 0x89c   :  { %2213 = vmax.xlane.f32.xlu0 %v2212_v59 }
 0x89d   :  { %8570 = vmatmul.mubr.msk.bf16.vlgmr.msra.gmra.mrb[52].mxu1 %vm979_vm1, %v1407_v39 }
 0x89e   :  { %v2098_v31 = vpop.f32.mrb[48].mxu0  ;;  %8587 = vmatprep.mubr.msk.bf16.mxu1 %vm9518_vm0, %v9517_v40 }
 0x89f   :  { %v2205_v33 = vmul.f32 0.17677669, %v2098_v31  ;;  %8586 = vmatpush3.bf16.xpose.msra.mxu1 %v2112_v22  ;;  %v8583_v60 = vpop.f32.mrb[49].mxu0 }
 0x8a0   :  { %v2101_v61 = vpop.f32.mrb[50].mxu0  ;;  %8597 = vmatprep.subr.bf16.mxu1 %v9517_v40 }
 0x8a1   :  { %v8584_v63 = vpop.f32.mrb[51].mxu0  ;;  %v2209_v0 = vadd.f32 %v2205_v33, %v9980_v32 }
 0x8a3   :  { %v2215_v62 = vsel %vm1172_vm3, %v2209_v0, -inf }
 0x8a4   :  { %2216 = vmax.xlane.f32.xlu1 %v2215_v62 }
 0x8a6   :  { %8588 = vmatmul.mubr.msk.bf16.vlgmr.msra.gmra.mrb[56].mxu1 %vm979_vm1, %v2105_v37  ;;  %v2198_v38 = vpop.f32.mrb[52].mxu0 }
 0x8a7   :  { %v8595_v39 = vpop.f32.mrb[53].mxu0  ;;  %8599 = vmatprep.mubr.msk.bf16.mxu1 %vm9518_vm0, %v9517_v40  ;;  %v2207_v19 = vmul.f32 0.17677669, %v2198_v38 }
 0x8a8   :  { %v2201_v1 = vpop.f32.mrb[54].mxu0 }
 0x8a9   :  { %v8596_v3 = vpop.f32.mrb[55].mxu0  ;;  %v2211_v41 = vadd.f32 %v2207_v19, %v9980_v32 }
 0x8ab   :  { %v2221_v44 = vsel %vm1172_vm3, %v2211_v41, -inf }
 0x929   :  { %v2214_v12 = vpop.xlane.xlu0 %2213 }
 0x92a   :  { %v2224_v13 = vsub.f32 %v2208_v56, %v2214_v12 }
 0x92c   :  { %v2228_v14 = vmul.f32 1.442695, %v2224_v13 }
 0x931   :  { %v2217_v5 = vpop.xlane.xlu1 %2216 }
 0x932   :  { %v2225_v6 = vsub.f32 %v2209_v0, %v2217_v5 }
 0x934   :  { %v2230_v8 = vmul.f32 1.442695, %v2225_v6 }
 0x936   :  { %9321 = vpow2.f32 %v2230_v8 }
 0x937   :  { %9323 = vpow2.f32 %v2228_v14 }
 0x940   :  { %v10170_v9 = vpop.eup %9321 }
 0x941   :  { %v2239_v11 = vsel %vm1172_vm3, %v10170_v9, 0.0  ;;  %v9324_v48 = vpop.eup %9323 }
 0x942   :  { %2240 = vadd.xlane.f32.xlu1 %v2239_v11  ;;  %v2236_v49 = vsel %vm1172_vm3, %v9324_v48, 0.0 }
 0x979   :  { %v2148_v16 = vpop.f32.mrb[56].mxu1 }
 0x97a   :  { %v2206_v24 = vmul.f32 0.17677669, %v2148_v16  ;;  %v8589_v27 = vpop.f32.mrb[57].mxu1 }
 0x97b   :  { %v2151_v30 = vpop.f32.mrb[58].mxu1  ;;  %v9070_v27 = vld [vmem:[%s11647_s8 + $0x28] sm:$0xff]  }
 0x97c   :  { %v8590_v34 = vpop.f32.mrb[59].mxu1  ;;  %v2210_v35 = vadd.f32 %v2206_v24, %v9980_v32  ;;  %v9069_v24 = vld [vmem:[%s11647_s8 + $0x20] sm:$0xff]  }
 0x97e   :  { %v2218_v36 = vsel %vm1172_vm3, %v2210_v35, -inf }
 0x97f   :  { %2219 = vmax.xlane.f32.xlu0 %v2218_v36 }
 0x983   :  { %2222 = vmax.xlane.f32.xlu0 %v2221_v44 }
 0x987   :  { %2237 = vadd.xlane.f32.xlu0 %v2236_v49 }
 0xa0c   :  { %v2220_v50 = vpop.xlane.xlu0 %2219 }
 0xa0d   :  { %v2226_v51 = vsub.f32 %v2210_v35, %v2220_v50 }
 0xa0f   :  { %v2232_v52 = vmul.f32 1.442695, %v2226_v51 }
 0xa10   :  { %v2223_v53 = vpop.xlane.xlu0 %2222 }
 0xa11   :  { %9325 = vpow2.f32 %v2232_v52  ;;  %v2227_v54 = vsub.f32 %v2211_v41, %v2223_v53 }
 0xa13   :  { %v2234_v56 = vmul.f32 1.442695, %v2227_v54 }
 0xa15   :  { %9327 = vpow2.f32 %v2234_v56 }
 0xa1b   :  { %v9326_v58 = vpop.eup %9325 }
 0xa1c   :  { %v2242_v59 = vsel %vm1172_vm3, %v9326_v58, 0.0 }
 0xa1d   :  { %2243 = vadd.xlane.f32.xlu0 %v2242_v59 }
 0xa1f   :  { %v9328_v32 = vpop.eup %9327 }
 0xa20   :  { %v2245_v22 = vsel %vm1172_vm3, %v9328_v32, 0.0 }
 0xa21   :  { %2246 = vadd.xlane.f32.xlu1 %v2245_v22 }
 0xa32   :  { %2308 = vrot.lane.b32.xlu1 %v9948_v18, %s9520_s4 }
 0xa33   :  { %2260 = vrot.lane.b32.xlu0 %v9965_v28, %s9520_s4 }
 0xa36   :  { %2356 = vrot.lane.b32.xlu1 %v10012_v46, %s9520_s4 }
 0xa37   :  { %2527 = vrot.lane.b32.xlu0 %v9919_v55, %s11664_s29  ;;  %v2238_v55 = vpop.xlane.xlu0 %2237 }
 0xa38   :  { %9329 = vrcp.f32 %v2238_v55 }
 0xa3a   :  { %2404 = vrot.lane.b32.xlu1 %v10022_v57, %s9520_s4 }
 0xa3b   :  { %2525 = vrot.lane.b32.xlu0 %v9930_v7, %s11664_s29  ;;  %v2241_v7 = vpop.xlane.xlu1 %2240 }
 0xa3c   :  { %9331 = vrcp.f32 %v2241_v7 }
 0xa3e   :  { %2577 = vrot.lane.b32.xlu1 %v9928_v4, %s11664_s29 }
 0xa3f   :  { %2627 = vrot.lane.b32.xlu0 %v9943_v15, %s11664_s29 }
 0xa42   :  { %2575 = vrot.lane.b32.xlu1 %v9946_v17, %s11664_s29  ;;  %v9330_v4 = vpop.eup %9329 }
 0xa43   :  { %2625 = vrot.lane.b32.xlu0 %v9968_v29, %s11664_s29  ;;  %v2252_v15 = vmul.f32 %v9330_v4, %v9324_v48 }
 0xa45   :  { %v2256_v61 = vpack.c.bf16 %v2252_v15, %v2252_v15 }
 0xa46   :  { %2677 = vrot.lane.b32.xlu1 %v9932_v10, %s11664_s29  ;;  %v9332_v33 = vpop.eup %9331 }
 0xa47   :  { %v2253_v10 = vmul.f32 %v9332_v33, %v10170_v9 }
 0xa49   :  { %v2257_v62 = vpack.c.bf16 %v2253_v10, %v2253_v10  ;;  %v9513_v10 = vld [vmem:[%s11646_s2] sm:$0xff] }
 0xa4a   :  { %2675 = vrot.lane.b32.xlu1 %v9950_v21, %s11664_s29 }
 0xaaa   :  { %v2244_v31 = vpop.xlane.xlu0 %2243 }
 0xaab   :  { %9333 = vrcp.f32 %v2244_v31 }
 0xaae   :  { %v2247_v60 = vpop.xlane.xlu1 %2246  ;;  %v2261_v17 = vpop.permute.xlu0 %2260 }
 0xaaf   :  { %9335 = vrcp.f32 %v2247_v60  ;;  %v2266_v29 = vsel %vm1224_vm2, %v2261_v17, 0 }
 0xab0   :  { %8598 = vmatpush3.bf16.msra.mxu1 %v2266_v29 }
 0xab1   :  { %8609 = vmatprep.subr.bf16.mxu1 %v9517_v40 }
 0xab2   :  { %v2309_v21 = vpop.permute.xlu1 %2308  ;;  %v2528_v11 = vpop.permute.xlu0 %2527 }
 0xab3   :  { %v2314_v63 = vsel %vm1224_vm2, %v2309_v21, 0  ;;  %8600 = vmatmul.mubr.msk.bf16.vlgmr.msra.gmra.mrb[60].mxu1 %vm1172_vm3, %v2256_v61  ;;  %v2533_v13 = vsel %vm979_vm1, %v2528_v11, 0 }
 0xab4   :  { %8604 = vmatpush3.bf16.msra.mxu0 %v2314_v63  ;;  %8611 = vmatprep.mubr.msk.bf16.mxu1 %vm9518_vm0, %v9517_v40 }
 0xab5   :  { %v9334_v0 = vpop.eup %9333  ;;  %8615 = vmatprep.subr.bf16.mxu0 %v9517_v40 }
 0xab6   :  { %v2357_v37 = vpop.permute.xlu1 %2356  ;;  %v2254_v38 = vmul.f32 %v9334_v0, %v9326_v58  ;;  %v2526_v12 = vpop.permute.xlu0 %2525 }
 0xab7   :  { %v2362_v39 = vsel %vm1224_vm2, %v2357_v37, 0  ;;  %8606 = vmatmul.mubr.msk.bf16.vlgmr.msra.gmra.mrb[56].mxu0 %vm1172_vm3, %v2257_v62 }
 0xab8   :  { %8610 = vmatpush3.bf16.msra.mxu1 %v2362_v39  ;;  %v2258_v1 = vpack.c.bf16 %v2254_v38, %v2254_v38  ;;  %8617 = vmatprep.mubr.msk.bf16.mxu0 %vm9518_vm0, %v9517_v40 }
 0xab9   :  { %v9336_v3 = vpop.eup %9335  ;;  %8621 = vmatprep.subr.bf16.mxu1 %v9069_v24 }
 0xaba   :  { %v2405_v5 = vpop.permute.xlu1 %2404  ;;  %v2255_v6 = vmul.f32 %v9336_v3, %v9328_v32  ;;  %v2628_v14 = vpop.permute.xlu0 %2627 }
 0xabb   :  { %v2410_v8 = vsel %vm1224_vm2, %v2405_v5, 0  ;;  %8612 = vmatmul.mubr.msk.bf16.vlgmr.msra.gmra.mrb[64].mxu1 %vm1172_vm3, %v2258_v1  ;;  %v2633_v16 = vsel %vm979_vm1, %v2628_v14, 0 }
 0xabc   :  { %8616 = vmatpush3.bf16.msra.mxu0 %v2410_v8  ;;  %v2259_v9 = vpack.c.bf16 %v2255_v6, %v2255_v6  ;;  %8622 = vmatpush3.bf16.msra.mxu1 %v9069_v24 }
 0xabd   :  { %8629 = vmatprep.subr.bf16.mxu0 %v9517_v40  ;;  %8623 = vmatprep.subr.bf16.mxu1 %v9070_v27 }
 0xabe   :  { %v2626_v19 = vpop.permute.xlu0 %2625  ;;  %v2578_v51 = vpop.permute.xlu1 %2577 }
 0xabf   :  { %8618 = vmatmul.mubr.msk.bf16.vlgmr.msra.gmra.mrb[60].mxu0 %vm1172_vm3, %v2259_v9  ;;  %v2583_v7 = vsel %vm979_vm1, %v2578_v51, 0 }
 0xac0   :  { %8631 = vmatprep.mubr.msk.bf16.mxu0 %vm9518_vm0, %v9517_v40  ;;  %8624 = vmatpush3.bf16.msra.mxu1 %v9070_v27 }
 0xac1   :  { %8635 = vmatprep.subr.bf16.mxu1 %v9517_v40 }
 0xac2   :  { %v2576_v22 = vpop.permute.xlu1 %2575 }
 0xac5   :  { %8630 = vmatpush3.bf16.xpose.msra.mxu0 %v2533_v13 }
 0xac6   :  { %8641 = vmatprep.subr.bf16.mxu0 %v9517_v40  ;;  %v2678_v31 = vpop.permute.xlu1 %2677 }
 0xac7   :  { %v2683_v15 = vsel %vm979_vm1, %v2678_v31, 0 }
 0xaca   :  { %v2676_v63 = vpop.permute.xlu1 %2675 }
 0xacc   :  { %8632 = vmatmul.mubr.msk.bf16.vlgmr.msra.gmra.mrb[64].mxu0 %vm979_vm1, %v2526_v12 }
 0xacd   :  { %8642 = vmatpush3.bf16.xpose.msra.mxu0 %v2633_v16  ;;  %8643 = vmatprep.mubr.msk.bf16.mxu0 %vm9518_vm0, %v9517_v40 }
 0xace   :  { %8653 = vmatprep.subr.bf16.mxu0 %v9517_v40 }
 0xad4   :  { %8644 = vmatmul.mubr.msk.bf16.vlgmr.msra.gmra.mrb[68].mxu0 %vm979_vm1, %v2626_v19 }
 0xad5   :  { %8655 = vmatprep.mubr.msk.bf16.mxu0 %vm9518_vm0, %v9517_v40 }
 0xb86   :  { %v2302_v30 = vpop.f32.mrb[60].mxu1 }
 0xb87   :  { %v8601_v34 = vpop.f32.mrb[61].mxu1 }
 0xb88   :  { %v2305_v35 = vpop.f32.mrb[62].mxu1 }
 0xb89   :  { %v8602_v36 = vpop.f32.mrb[63].mxu1 }
 0xb8a   :  { %v2350_v41 = vpop.f32.mrb[56].mxu0 }
 0xb8b   :  { %v2452_v44 = vpack.c.bf16 %v2350_v41, %v2302_v30  ;;  %v8607_v48 = vpop.f32.mrb[57].mxu0 }
 0xb8c   :  { %v2353_v49 = vpop.f32.mrb[58].mxu0 }
 0xb8d   :  { %v8608_v50 = vpop.f32.mrb[59].mxu0  ;;  %8625 = vmatprep.mubr.msk.bf16.mxu1 %vm979_vm1, %v2452_v44 }
 0xb8e   :  { %v2398_v52 = vpop.f32.mrb[64].mxu1 }
 0xb8f   :  { %v8613_v53 = vpop.f32.mrb[65].mxu1 }
 0xb90   :  { %v2401_v54 = vpop.f32.mrb[66].mxu1 }
 0xb91   :  { %v8614_v56 = vpop.f32.mrb[67].mxu1 }
 0xb92   :  { %v2446_v58 = vpop.f32.mrb[60].mxu0 }
 0xb93   :  { %v2453_v59 = vpack.c.bf16 %v2446_v58, %v2398_v52  ;;  %v8619_v32 = vpop.f32.mrb[61].mxu0 }
 0xb94   :  { %v2449_v55 = vpop.f32.mrb[62].mxu0 }
 0xb95   :  { %v8620_v4 = vpop.f32.mrb[63].mxu0  ;;  %8626 = vmatmul.mubr.msk.bf16.vlgmr.msra.gmra.mrb[52].mxu1 %vm979_vm1, %v2453_v59 }
 0xb96   :  { %8636 = vmatpush3.bf16.xpose.msra.mxu1 %v2583_v7  ;;  %8637 = vmatprep.mubr.msk.bf16.mxu1 %vm9518_vm0, %v9517_v40 }
 0xb97   :  { %8647 = vmatprep.subr.bf16.mxu1 %v9517_v40 }
 0xb9d   :  { %8638 = vmatmul.mubr.msk.bf16.vlgmr.msra.gmra.mrb[68].mxu1 %vm979_vm1, %v2576_v22 }
 0xb9e   :  { %8648 = vmatpush3.bf16.xpose.msra.mxu1 %v2683_v15  ;;  %8649 = vmatprep.mubr.msk.bf16.mxu1 %vm9518_vm0, %v9517_v40 }
 0xb9f   :  { %v2569_v33 = vpop.f32.mrb[64].mxu0  ;;  %8659 = vmatprep.subr.bf16.mxu1 %v9517_v40 }
 0xba0   :  { %v2725_v60 = vmul.f32 0.17677669, %v2569_v33  ;;  %v8633_v17 = vpop.f32.mrb[65].mxu0 }
 0xba1   :  { %v2572_v29 = vpop.f32.mrb[66].mxu0 }
 0xba2   :  { %v8634_v61 = vpop.f32.mrb[67].mxu0  ;;  %v2729_v21 = vadd.f32 %v9513_v10, %v2725_v60 }
 0xba4   :  { %v2733_v0 = vsel %vm1172_vm3, %v2729_v21, -inf }
 0xba5   :  { %2734 = vmax.xlane.f32.xlu0 %v2733_v0  ;;  %8650 = vmatmul.mubr.msk.bf16.vlgmr.msra.gmra.mrb[72].mxu1 %vm979_vm1, %v2676_v63 }
 0xba6   :  { %8661 = vmatprep.mubr.msk.bf16.mxu1 %vm9518_vm0, %v9517_v40 }
 0xba7   :  { %v2669_v62 = vpop.f32.mrb[68].mxu0 }
 0xba8   :  { %v2727_v37 = vmul.f32 0.17677669, %v2669_v62  ;;  %v8645_v38 = vpop.f32.mrb[69].mxu0 }
 0xba9   :  { %v2672_v39 = vpop.f32.mrb[70].mxu0 }
 0xbaa   :  { %v8646_v1 = vpop.f32.mrb[71].mxu0  ;;  %v2731_v3 = vadd.f32 %v9513_v10, %v2727_v37 }
 0xbac   :  { %v2739_v5 = vsel %vm1172_vm3, %v2731_v3, -inf }
 0xbad   :  { %2740 = vmax.xlane.f32.xlu0 %v2739_v5 }
 0xc32   :  { %v2735_v6 = vpop.xlane.xlu0 %2734 }
 0xc33   :  { %v2745_v8 = vsub.f32 %v2729_v21, %v2735_v6 }
 0xc35   :  { %v2749_v11 = vmul.f32 1.442695, %v2745_v8 }
 0xc37   :  { %9337 = vpow2.f32 %v2749_v11 }
 0xc3a   :  { %v2741_v9 = vpop.xlane.xlu0 %2740 }
 0xc3b   :  { %v2747_v12 = vsub.f32 %v2731_v3, %v2741_v9 }
 0xc3d   :  { %v2753_v30 = vmul.f32 1.442695, %v2747_v12 }
 0xc3f   :  { %9339 = vpow2.f32 %v2753_v30 }
 0xc41   :  { %v9338_v51 = vpop.eup %9337 }
 0xc42   :  { %v2757_v52 = vsel %vm1172_vm3, %v9338_v51, 0.0 }
 0xc49   :  { %v9340_v53 = vpop.eup %9339 }
 0xc4a   :  { %v2763_v54 = vsel %vm1172_vm3, %v9340_v53, 0.0 }
 0xc70   :  { %v2619_v13 = vpop.f32.mrb[68].mxu1 }
 0xc71   :  { %v2726_v14 = vmul.f32 0.17677669, %v2619_v13  ;;  %v8639_v16 = vpop.f32.mrb[69].mxu1 }
 0xc72   :  { %v2622_v19 = vpop.f32.mrb[70].mxu1 }
 0xc73   :  { %v8640_v24 = vpop.f32.mrb[71].mxu1  ;;  %v2730_v27 = vadd.f32 %v9513_v10, %v2726_v14 }
 0xc75   :  { %v2736_v34 = vsel %vm1172_vm3, %v2730_v27, -inf }
 0xc76   :  { %2737 = vmax.xlane.f32.xlu1 %v2736_v34  ;;  %v9071_v34 = vld [vmem:[%s11647_s8 + $0x30] sm:$0xff]  }
 0xc78   :  { %v2719_v35 = vpop.f32.mrb[72].mxu1 }
 0xc79   :  { %v2728_v36 = vmul.f32 0.17677669, %v2719_v35  ;;  %v8651_v41 = vpop.f32.mrb[73].mxu1  ;;  %v9072_v35 = vld [vmem:[%s11647_s8 + $0x38] sm:$0xff]  }
 0xc7a   :  { %v2722_v44 = vpop.f32.mrb[74].mxu1 }
 0xc7b   :  { %v8652_v48 = vpop.f32.mrb[75].mxu1  ;;  %v2732_v49 = vadd.f32 %v9513_v10, %v2728_v36 }
 0xc7d   :  { %v2742_v50 = vsel %vm1172_vm3, %v2732_v49, -inf }
 0xc7e   :  { %2743 = vmax.xlane.f32.xlu0 %v2742_v50 }
 0xc82   :  { %2758 = vadd.xlane.f32.xlu0 %v2757_v52 }
 0xc86   :  { %2764 = vadd.xlane.f32.xlu0 %v2763_v54 }
 0xc87   :  { %2829 = vrot.lane.b32.xlu1 %v9948_v18, %s11664_s29 }
 0xc8b   :  { %2877 = vrot.lane.b32.xlu1 %v10012_v46, %s11664_s29 }
 0xc9c   :  { %2781 = vrot.lane.b32.xlu0 %v9965_v28, %s11664_s29 }
 0xd03   :  { %v2738_v56 = vpop.xlane.xlu1 %2737 }
 0xd04   :  { %v2746_v58 = vsub.f32 %v2730_v27, %v2738_v56 }
 0xd06   :  { %v2751_v59 = vmul.f32 1.442695, %v2746_v58  ;;  %v7669_v58 = vld [vmem:[%s11648_s9] ss:$0 sm:$0xff] }
 0xd07   :  { %v2830_v32 = vpop.permute.xlu1 %2829 }
 0xd08   :  { %9341 = vpow2.f32 %v2751_v59  ;;  %v2835_v22 = vsel %vm1224_vm2, %v2830_v32, 0 }
 0xd09   :  { %8660 = vmatpush3.bf16.msra.mxu1 %v2835_v22 }
 0xd0a   :  { %8671 = vmatprep.subr.bf16.mxu1 %v9517_v40 }
 0xd0b   :  { %v2744_v55 = vpop.xlane.xlu0 %2743  ;;  %v2878_v10 = vpop.permute.xlu1 %2877 }
 0xd0c   :  { %v2748_v7 = vsub.f32 %v2732_v49, %v2744_v55  ;;  %v2883_v0 = vsel %vm1224_vm2, %v2878_v10, 0 }
 0xd0e   :  { %v2755_v4 = vmul.f32 1.442695, %v2748_v7 }
 0xd0f   :  { %v2759_v18 = vpop.xlane.xlu0 %2758 }
 0xd10   :  { %9343 = vpow2.f32 %v2755_v4 }
 0xd11   :  { %9345 = vrcp.f32 %v2759_v18 }
 0xd12   :  { %v9342_v46 = vpop.eup %9341 }
 0xd13   :  { %v2765_v31 = vpop.xlane.xlu0 %2764  ;;  %v2760_v28 = vsel %vm1172_vm3, %v9342_v46, 0.0 }
 0xd14   :  { %2761 = vadd.xlane.f32.xlu1 %v2760_v28  ;;  %9347 = vrcp.f32 %v2765_v31 }
 0xd17   :  { %v2782_v15 = vpop.permute.xlu0 %2781 }
 0xd18   :  { %v2787_v33 = vsel %vm1224_vm2, %v2782_v15, 0  ;;  %v9078_v15 = vld [vmem:[%s11649_s12 + $0xc] ss:$16 sps:$4 sm:$0xff]  }
 0xd19   :  { %8654 = vmatpush3.bf16.msra.mxu0 %v2787_v33  ;;  %v9079_v33 = vld [vmem:[%s11649_s12 + $0x20] ss:$16 sps:$4 sm:$0xff]  }
 0xd1a   :  { %v9344_v60 = vpop.eup %9343  ;;  %8665 = vmatprep.subr.bf16.mxu0 %v9517_v40 }
 0xd1b   :  { %v9346_v17 = vpop.eup %9345  ;;  %v2766_v29 = vsel %vm1172_vm3, %v9344_v60, 0.0 }
 0xd1c   :  { %2767 = vadd.xlane.f32.xlu1 %v2766_v29  ;;  %v2773_v61 = vmul.f32 %v9346_v17, %v9338_v51  ;;  %v9082_v17 = vld [vmem:[%s11649_s12 + $0x28] ss:$16 sps:$4 sm:$0xff]   ;;  %v9084_v29 = vld [vmem:[%s11649_s12 + $0x2c] ss:$16 sps:$4 sm:$0xff]  }
 0xd1e   :  { %v2777_v21 = vpack.c.bf16 %v2773_v61, %v2773_v61  ;;  %v9348_v63 = vpop.eup %9347 }
 0xd1f   :  { %v2775_v62 = vmul.f32 %v9348_v63, %v9340_v53 }
 0xd20   :  { %8656 = vmatmul.mubr.msk.bf16.vlgmr.msra.gmra.mrb[72].mxu0 %vm1172_vm3, %v2777_v21 }
 0xd21   :  { %8666 = vmatpush3.bf16.msra.mxu0 %v2883_v0  ;;  %8667 = vmatprep.mubr.msk.bf16.mxu0 %vm9518_vm0, %v9517_v40  ;;  %v2779_v37 = vpack.c.bf16 %v2775_v62, %v2775_v62 }
 0xd28   :  { %8668 = vmatmul.mubr.msk.bf16.vlgmr.msra.gmra.mrb[76].mxu0 %vm1172_vm3, %v2779_v37 }
 0xd29   :  { %3375 = vmatprep.mubr.bf16.mxu0 %v9516_v2 }
 0xd2d   :  { %2925 = vrot.lane.b32.xlu1 %v10022_v57, %s11664_s29 }
 0xda1   :  { %v2762_v38 = vpop.xlane.xlu1 %2761 }
 0xda2   :  { %9349 = vrcp.f32 %v2762_v38 }
 0xda9   :  { %v2768_v39 = vpop.xlane.xlu1 %2767 }
 0xdaa   :  { %9351 = vrcp.f32 %v2768_v39 }
 0xdac   :  { %v9350_v1 = vpop.eup %9349 }
 0xdad   :  { %v2774_v3 = vmul.f32 %v9350_v1, %v9342_v46  ;;  %v2926_v5 = vpop.permute.xlu1 %2925 }
 0xdae   :  { %v2931_v8 = vsel %vm1224_vm2, %v2926_v5, 0 }
 0xdaf   :  { %v2778_v6 = vpack.c.bf16 %v2774_v3, %v2774_v3 }
 0xdb1   :  { %8662 = vmatmul.mubr.msk.bf16.vlgmr.msra.gmra.mrb[76].mxu1 %vm1172_vm3, %v2778_v6 }
 0xdb2   :  { %8672 = vmatpush3.bf16.msra.mxu1 %v2931_v8  ;;  %8673 = vmatprep.mubr.msk.bf16.mxu1 %vm9518_vm0, %v9517_v40 }
 0xdb3   :  { %8677 = vmatprep.subr.bf16.mxu1 %v9071_v34 }
 0xdb4   :  { %v9352_v9 = vpop.eup %9351 }
 0xdb5   :  { %v2776_v11 = vmul.f32 %v9352_v9, %v9344_v60  ;;  %v9081_v60 = vld [vmem:[%s11649_s12 + $0x24] ss:$16 sps:$4 sm:$0xff]  }
 0xdb7   :  { %v2780_v12 = vpack.c.bf16 %v2776_v11, %v2776_v11 }
 0xdb9   :  { %8674 = vmatmul.mubr.msk.bf16.vlgmr.msra.gmra.mrb[80].mxu1 %vm1172_vm3, %v2780_v12  ;;  %v9087_v12 = vld [vmem:[%s11649_s12 + $0x44] ss:$16 sps:$4 sm:$0xff]  }
 0xdba   :  { %8678 = vmatpush3.bf16.msra.mxu1 %v9071_v34  ;;  %v9102_v34 = vld [vmem:[%s11649_s12 + $0x8c] ss:$16 sps:$4 sm:$0xff]  }
 0xdbb   :  { %8679 = vmatprep.subr.bf16.mxu1 %v9072_v35 }
 0xdbe   :  { %8680 = vmatpush3.bf16.msra.mxu1 %v9072_v35  ;;  %v9097_v35 = vld [vmem:[%s11649_s12 + $0x80] ss:$16 sps:$4 sm:$0xff]  }
 0xdbf   :  { %3396 = vmatprep.subr.bf16.mxu1 %v9078_v15 }
 0xdf3   :  { %v2823_v57 = vpop.f32.mrb[72].mxu0 }
 0xdf4   :  { %v8657_v13 = vpop.f32.mrb[73].mxu0 }
 0xdf5   :  { %v2826_v14 = vpop.f32.mrb[74].mxu0  ;;  %v9085_v13 = vld [vmem:[%s11649_s12 + $0x40] ss:$16 sps:$4 sm:$0xff]  }
 0xdf6   :  { %v8658_v16 = vpop.f32.mrb[75].mxu0  ;;  %v9088_v14 = vld [vmem:[%s11649_s12 + $0x48] ss:$16 sps:$4 sm:$0xff]  }
 0xdf7   :  { %v9093_v16 = vld [vmem:[%s11649_s12 + $0x64] ss:$16 sps:$4 sm:$0xff]  }
 0xdfb   :  { %v2919_v19 = vpop.f32.mrb[76].mxu0 }
 0xdfc   :  { %v8669_v24 = vpop.f32.mrb[77].mxu0 }
 0xdfd   :  { %v2922_v27 = vpop.f32.mrb[78].mxu0  ;;  %v9091_v24 = vld [vmem:[%s11649_s12 + $0x60] ss:$16 sps:$4 sm:$0xff]  }
 0xdfe   :  { %v8670_v30 = vpop.f32.mrb[79].mxu0  ;;  %v9094_v27 = vld [vmem:[%s11649_s12 + $0x68] ss:$16 sps:$4 sm:$0xff]  }
 0xdff   :  { %v9099_v30 = vld [vmem:[%s11649_s12 + $0x84] ss:$16 sps:$4 sm:$0xff]  }
 0xe84   :  { %v2871_v36 = vpop.f32.mrb[76].mxu1 }
 0xe85   :  { %v2973_v41 = vpack.c.bf16 %v2871_v36, %v2823_v57  ;;  %v8663_v44 = vpop.f32.mrb[77].mxu1  ;;  %v9090_v57 = vld [vmem:[%s11649_s12 + $0x4c] ss:$16 sps:$4 sm:$0xff]   ;;  %v9100_v36 = vld [vmem:[%s11649_s12 + $0x88] ss:$16 sps:$4 sm:$0xff]  }
 0xe86   :  { %v2874_v48 = vpop.f32.mrb[78].mxu1  ;;  %v9108_v44 = vld [vmem:[%s11649_s12 + $0xac] ss:$16 sps:$4 sm:$0xff]  }
 0xe87   :  { %v8664_v49 = vpop.f32.mrb[79].mxu1  ;;  %8681 = vmatprep.mubr.msk.bf16.mxu1 %vm979_vm1, %v2973_v41  ;;  %v9105_v41 = vld [vmem:[%s11649_s12 + $0xa4] ss:$16 sps:$4 sm:$0xff]   ;;  %v9103_v48 = vld [vmem:[%s11649_s12 + $0xa0] ss:$16 sps:$4 sm:$0xff]  }
 0xe88   :  { %v9106_v49 = vld [vmem:[%s11649_s12 + $0xa8] ss:$16 sps:$4 sm:$0xff]  }
 0xe8c   :  { %v2967_v50 = vpop.f32.mrb[80].mxu1 }
 0xe8d   :  { %v2974_v51 = vpack.c.bf16 %v2967_v50, %v2919_v19  ;;  %v8675_v52 = vpop.f32.mrb[81].mxu1  ;;  %v9096_v19 = vld [vmem:[%s11649_s12 + $0x6c] ss:$16 sps:$4 sm:$0xff]   ;;  %v9109_v50 = vld [vmem:[%s11649_s12 + $0xc0] ss:$16 sps:$4 sm:$0xff]  }
 0xe8e   :  { %v2970_v53 = vpop.f32.mrb[82].mxu1  ;;  %v9112_v52 = vld [vmem:[%s11649_s12 + $0xc8] ss:$16 sps:$4 sm:$0xff]  }
 0xe8f   :  { %v8676_v54 = vpop.f32.mrb[83].mxu1  ;;  %8682 = vmatmul.mubr.msk.bf16.vlgmr.msra.gmra.mrb[52].mxu1 %vm979_vm1, %v2974_v51  ;;  %v9111_v51 = vld [vmem:[%s11649_s12 + $0xc4] ss:$16 sps:$4 sm:$0xff]   ;;  %v9114_v53 = vld [vmem:[%s11649_s12 + $0xcc] ss:$16 sps:$4 sm:$0xff]  }
 0xe90   :  { %3428 = vmatprep.mubr.bf16.mxu1 %v9516_v2  ;;  %v9117_v54 = vld [vmem:[%s11649_s12 + $0xe4] ss:$16 sps:$4 sm:$0xff]  }
 0xf62   :  { %v8683_v56 = vpop.f32.mrb[52].mxu1 }
 0xf63   :  { %v3027_v59 = vpop.f32.mrb[53].mxu1  ;;  %v3048_v7 = vadd.f32 %v8683_v56, %v9780_v20  ;;  %v9073_v20 = vld [vmem:[%s11649_s12] ss:$16 sps:$4 sm:$0xff]   ;;  %v9120_v56 = vld [vmem:[%s11649_s12 + $0xec] ss:$16 sps:$4 sm:$0xff]  }
 0xf64   :  { %v3046_v32 = vadd.f32 %v3027_v59, %v9782_v23  ;;  %v8684_v22 = vpop.f32.mrb[54].mxu1  ;;  %v9118_v59 = vld [vmem:[%s11649_s12 + $0xe8] ss:$16 sps:$4 sm:$0xff]  }
 0xf65   :  { %v3030_v55 = vpop.f32.mrb[55].mxu1  ;;  %v10308_v31 = vadd.f32 %v7669_v58, %v3048_v7  ;;  %v3049_v28 = vadd.f32 %v8684_v22, %v9786_v25  ;;  %v9076_v25 = vld [vmem:[%s11649_s12 + $0x8] ss:$16 sps:$4 sm:$0xff]  }
 0xf66   :  { %v10302_v4 = vadd.f32 %v7669_v58, %v3046_v32  ;;  %v3047_v18 = vadd.f32 %v3030_v55, %v9788_v26  ;;  %v9075_v26 = vld [vmem:[%s11649_s12 + $0x4] ss:$16 sps:$4 sm:$0xff]   ;;  %3397 = vmatpush1.bf16.msra.mxu1 %v9076_v25 }
 0xf67   :  { %v10313_v23 = vadd.f32 %v7669_v58, %v3049_v28  ;;  %3343 = vmatprep.subr.bf16.mxu0 %v9075_v26  ;;  %3398 = vmatprep.subr.bf16.mxu1 %v9084_v29  ;;  %v7670_v29 = vld [vmem:[%s11650_s10] ss:$0 sm:$0xff] }
 0xf68   :  { %v10305_v46 = vadd.f32 %v7669_v58, %v3047_v18  ;;  %3063 = vadd.xlane.f32.xlu0 %v10302_v4  ;;  %3344 = vmatpush1.bf16.msra.mxu0 %v9073_v20  ;;  %v9115_v58 = vld [vmem:[%s11649_s12 + $0xe0] ss:$16 sps:$4 sm:$0xff]  }
 0xf69   :  { %3345 = vmatprep.subr.bf16.mxu0 %v9081_v60 }
 0xf6a   :  { %3065 = vadd.xlane.f32.xlu1 %v10305_v46  ;;  %3399 = vmatpush1.bf16.msra.mxu1 %v9082_v17 }
 0xf6b   :  { %3400 = vmatprep.subr.bf16.mxu1 %v9090_v57 }
 0xf6c   :  { %3067 = vadd.xlane.f32.xlu0 %v10308_v31  ;;  %3346 = vmatpush1.bf16.msra.mxu0 %v9079_v33 }
 0xf6d   :  { %3347 = vmatprep.subr.bf16.mxu0 %v9087_v12 }
 0xf6e   :  { %3401 = vmatpush1.bf16.msra.mxu1 %v9088_v14 }
 0xf6f   :  { %3402 = vmatprep.subr.bf16.mxu1 %v9096_v19  ;;  %v9124_v19 = vld [vmem:[%s11652_s14 + $0x80] sm:$0xff]  }
 0xf70   :  { %3069 = vadd.xlane.f32.xlu0 %v10313_v23  ;;  %3348 = vmatpush1.bf16.msra.mxu0 %v9085_v13 }
 0xf71   :  { %3349 = vmatprep.subr.bf16.mxu0 %v9093_v16  ;;  %v9123_v16 = vld [vmem:[%s11652_s14] sm:$0xff]  }
 0xf72   :  { %3403 = vmatpush1.bf16.msra.mxu1 %v9094_v27  ;;  %v9126_v27 = vld [vmem:[%s11652_s14 + $0xc8] sm:$0xff]  }
 0xf73   :  { %3404 = vmatprep.subr.bf16.mxu1 %v9102_v34  ;;  %v9128_v34 = vld [vmem:[%s11652_s14 + $0x88] sm:$0xff]  }
 0xf74   :  { %3350 = vmatpush1.bf16.msra.mxu0 %v9091_v24  ;;  %v9125_v24 = vld [vmem:[%s11652_s14 + $0x48] sm:$0xff]  }
 0xf75   :  { %3351 = vmatprep.subr.bf16.mxu0 %v9099_v30  ;;  %v9127_v30 = vld [vmem:[%s11652_s14 + $0x8] sm:$0xff]  }
 0xf76   :  { %3405 = vmatpush1.bf16.msra.mxu1 %v9100_v36  ;;  %v9130_v36 = vld [vmem:[%s11652_s14 + $0xd0] sm:$0xff]  }
 0xf77   :  { %3406 = vmatprep.subr.bf16.mxu1 %v9108_v44  ;;  %v9132_v44 = vld [vmem:[%s11652_s14 + $0x90] sm:$0xff]  }
 0xf78   :  { %3352 = vmatpush1.bf16.msra.mxu0 %v9097_v35  ;;  %v9129_v35 = vld [vmem:[%s11652_s14 + $0x50] sm:$0xff]  }
 0xf79   :  { %3353 = vmatprep.subr.bf16.mxu0 %v9105_v41  ;;  %v9131_v41 = vld [vmem:[%s11652_s14 + $0x10] sm:$0xff]  }
 0xf7a   :  { %3407 = vmatpush1.bf16.msra.mxu1 %v9106_v49  ;;  %v9134_v49 = vld [vmem:[%s11652_s14 + $0xd8] sm:$0xff]  }
 0xf7b   :  { %3408 = vmatprep.subr.bf16.mxu1 %v9114_v53  ;;  %v9138_v53 = vld [vmem:[%s11652_s14 + $0xe0] sm:$0xff]  }
 0xf7c   :  { %3354 = vmatpush1.bf16.msra.mxu0 %v9103_v48  ;;  %v9133_v48 = vld [vmem:[%s11652_s14 + $0x58] sm:$0xff]  }
 0xf7d   :  { %3355 = vmatprep.subr.bf16.mxu0 %v9111_v51  ;;  %v9136_v51 = vld [vmem:[%s11652_s14 + $0x98] sm:$0xff]  }
 0xf7e   :  { %3409 = vmatpush1.bf16.msra.mxu1 %v9112_v52  ;;  %v9137_v52 = vld [vmem:[%s11652_s14 + $0x60] sm:$0xff]  }
 0xf7f   :  { %3410 = vmatprep.subr.bf16.mxu1 %v9120_v56  ;;  %v9140_v56 = vld [vmem:[%s11652_s14 + $0xa0] sm:$0xff]  }
 0xf80   :  { %3356 = vmatpush1.bf16.msra.mxu0 %v9109_v50  ;;  %v9135_v50 = vld [vmem:[%s11652_s14 + $0x18] sm:$0xff]  }
 0xf81   :  { %3357 = vmatprep.subr.bf16.mxu0 %v9117_v54  ;;  %v9139_v54 = vld [vmem:[%s11652_s14 + $0x20] sm:$0xff]  }
 0xf82   :  { %3411 = vmatpush1.bf16.msra.mxu1 %v9118_v59  ;;  %v9142_v59 = vld [vmem:[%s11652_s14 + $0xe8] sm:$0xff]  }
 0xf84   :  { %3358 = vmatpush1.bf16.msra.mxu0 %v9115_v58  ;;  %v9141_v58 = vld [vmem:[%s11652_s14 + $0x68] sm:$0xff]  }
 0xff5   :  { %v3064_v61 = vpop.xlane.xlu0 %3063 }
 0xff6   :  { %v3071_v10 = vmul.f32 0.0078125, %v3064_v61 }
 0xff7   :  { %v3066_v21 = vpop.xlane.xlu1 %3065 }
 0xff8   :  { %v3072_v63 = vmul.f32 0.0078125, %v3066_v21  ;;  %v10341_v0 = vsub.f32 %v10302_v4, %v3071_v10 }
 0xff9   :  { %v3068_v62 = vpop.xlane.xlu0 %3067 }
 0xffa   :  { %v10344_v37 = vsub.f32 %v10305_v46, %v3072_v63  ;;  %v3073_v38 = vmul.f32 0.0078125, %v3068_v62  ;;  %v3079_v39 = vmul.f32 %v10341_v0, %v10341_v0 }
 0xffc   :  { %3083 = vadd.xlane.f32.xlu0 %v3079_v39  ;;  %v3080_v1 = vmul.f32 %v10344_v37, %v10344_v37  ;;  %v10351_v3 = vsub.f32 %v10308_v31, %v3073_v38  ;;  %v7671_v38 = vld [vmem:[%s11651_s11] ss:$0 sm:$0xff] }
 0xffd   :  { %v3070_v5 = vpop.xlane.xlu0 %3069 }
 0xffe   :  { %v3074_v6 = vmul.f32 0.0078125, %v3070_v5  ;;  %3085 = vadd.xlane.f32.xlu1 %v3080_v1  ;;  %v3081_v8 = vmul.f32 %v10351_v3, %v10351_v3 }
0x1000   :  { %v10356_v9 = vsub.f32 %v10313_v23, %v3074_v6  ;;  %3087 = vadd.xlane.f32.xlu0 %v3081_v8 }
0x1002   :  { %v3082_v11 = vmul.f32 %v10356_v9, %v10356_v9 }
0x1004   :  { %3089 = vadd.xlane.f32.xlu1 %v3082_v11 }
0x1089   :  { %v3084_v32 = vpop.xlane.xlu0 %3083 }
0x108a   :  { %v3091_v22 = vmul.f32 0.0078125, %v3084_v32  ;;  %v9143_v32 = vld [vmem:[%s11652_s14 + $0x28] sm:$0xff]  }
0x108b   :  { %v3086_v55 = vpop.xlane.xlu1 %3085 }
0x108c   :  { %v3095_v7 = vadd.f32 1e-06, %v3091_v22  ;;  %v3092_v18 = vmul.f32 0.0078125, %v3086_v55  ;;  %v9144_v22 = vld [vmem:[%s11652_s14 + $0xa8] sm:$0xff]   ;;  %v9145_v55 = vld [vmem:[%s11652_s14 + $0x70] sm:$0xff]  }
0x108d   :  { %v3088_v28 = vpop.xlane.xlu0 %3087 }
0x108e   :  { %9353 = vrsqrt.f32 %v3095_v7  ;;  %v3096_v20 = vadd.f32 1e-06, %v3092_v18  ;;  %v3093_v26 = vmul.f32 0.0078125, %v3088_v28  ;;  %v9146_v7 = vld [vmem:[%s11652_s14 + $0xf0] sm:$0xff]  }
0x108f   :  { %v9147_v18 = vld [vmem:[%s11652_s14 + $0x30] sm:$0xff]  }
0x1090   :  { %9355 = vrsqrt.f32 %v3096_v20  ;;  %v3097_v25 = vadd.f32 1e-06, %v3093_v26  ;;  %v9148_v28 = vld [vmem:[%s11652_s14 + $0xb0] sm:$0xff]   ;;  %v9149_v20 = vld [vmem:[%s11652_s14 + $0x78] sm:$0xff]  }
0x1091   :  { %v3090_v15 = vpop.xlane.xlu1 %3089  ;;  %v9150_v26 = vld [vmem:[%s11652_s14 + $0xf8] sm:$0xff]  }
0x1092   :  { %9357 = vrsqrt.f32 %v3097_v25  ;;  %v3094_v33 = vmul.f32 0.0078125, %v3090_v15  ;;  %v9151_v25 = vld [vmem:[%s11652_s14 + $0x38] sm:$0xff]  }
0x1093   :  { %v9152_v15 = vld [vmem:[%s11652_s14 + $0xb8] sm:$0xff]  }
0x1094   :  { %v3098_v60 = vadd.f32 1e-06, %v3094_v33  ;;  %v3161_v33 = vld [vmem:[%s11653_s13] sm:$0xf] }
0x1096   :  { %9359 = vrsqrt.f32 %v3098_v60  ;;  %v3177_v60 = vsub.s32 3, %v9902_v42 }
0x1098   :  { %v9354_v17 = vpop.eup %9353 }
0x1099   :  { %v3103_v61 = vmul.f32 %v9354_v17, %v10341_v0  ;;  %v10545_v17 = vrot.slane %v3161_v33, %v9915_v47 }
0x109a   :  { %v9356_v10 = vpop.eup %9355 }
0x109b   :  { %v3104_v21 = vmul.f32 %v9356_v10, %v10344_v37  ;;  %v3113_v63 = vmul.f32 %v7670_v29, %v3103_v61  ;;  %v10551_v61 = vrot.slane %v3161_v33, %v9905_v43  ;;  %v10555_v10 = vrot.slane %v3161_v33, %v3177_v60 }
0x109c   :  { %v9358_v62 = vpop.eup %9357 }
0x109d   :  { %v3114_v39 = vmul.f32 %v7670_v29, %v3104_v21  ;;  %v3123_v1 = vadd.f32 %v7671_v38, %v3113_v63  ;;  %v3105_v6 = vmul.f32 %v9358_v62, %v10351_v3  ;;  %v9121_v3 = vld [vmem:[%s11652_s14 + $0x40] sm:$0xff]  }
0x109e   :  { %8209 = vmatprep.subr.bf16.mxu0 %v9121_v3 }
0x109f   :  { %v3124_v5 = vadd.f32 %v7671_v38, %v3114_v39  ;;  %v3115_v0 = vmul.f32 %v7670_v29, %v3105_v6 }
0x10a0   :  { %v9360_v8 = vpop.eup %9359 }
0x10a1   :  { %v3127_v11 = vpack.c.bf16 %v3124_v5, %v3123_v1  ;;  %v3106_v12 = vmul.f32 %v9360_v8, %v10356_v9  ;;  %v3125_v13 = vadd.f32 %v7671_v38, %v3115_v0  ;;  %v9122_v9 = vld [vmem:[%s11652_s14 + $0xc0] sm:$0xff]  }
0x10a2   :  { %8237 = vmatprep.subr.bf16.mxu1 %v9122_v9 }
0x10a3   :  { %3376 = vmatmul.mubr.bf16.vlgmr.msra.gmra.mrb[80].mxu0 %v3127_v11  ;;  %3429 = vmatmul.mubr.bf16.vlgmr.msra.gmra.mrb[84].mxu1 %v3127_v11  ;;  %v3116_v57 = vmul.f32 %v7670_v29, %v3106_v12  ;;  %v10548_v29 = vrot.slane %v3161_v33, %v9911_v45 }
0x10a4   :  { %3385 = vmatprep.mubr.bf16.mxu0 %v9516_v2  ;;  %3438 = vmatprep.mubr.bf16.mxu1 %v9516_v2 }
0x10a5   :  { %v3126_v37 = vadd.f32 %v7671_v38, %v3116_v57  ;;  %8210 = vmatpush3.bf16.msra.mxu0 %v9123_v16  ;;  %8238 = vmatpush3.bf16.msra.mxu1 %v9124_v19 }
0x10a6   :  { %8211 = vmatprep.subr.bf16.mxu0 %v9125_v24  ;;  %8239 = vmatprep.subr.bf16.mxu1 %v9126_v27 }
0x10a7   :  { %v3128_v14 = vpack.c.bf16 %v3126_v37, %v3125_v13 }
0x10a9   :  { %8212 = vmatpush3.bf16.msra.mxu0 %v9127_v30  ;;  %8240 = vmatpush3.bf16.msra.mxu1 %v9128_v34 }
0x10aa   :  { %8213 = vmatprep.subr.bf16.mxu0 %v9129_v35  ;;  %8241 = vmatprep.subr.bf16.mxu1 %v9130_v36 }
0x10ab   :  { %3386 = vmatmul.mubr.bf16.gmra.mrb[84].mxu0 %v3128_v14  ;;  %3439 = vmatmul.mubr.bf16.gmra.mrb[88].mxu1 %v3128_v14 }
0x10ad   :  { %8214 = vmatpush3.bf16.msra.mxu0 %v9131_v41  ;;  %8242 = vmatpush3.bf16.msra.mxu1 %v9132_v44 }
0x10ae   :  { %8215 = vmatprep.subr.bf16.mxu0 %v9133_v48  ;;  %8243 = vmatprep.subr.bf16.mxu1 %v9134_v49 }
0x10b1   :  { %8216 = vmatpush3.bf16.msra.mxu0 %v9135_v50  ;;  %8244 = vmatpush3.bf16.msra.mxu1 %v9136_v51 }
0x10b2   :  { %8217 = vmatprep.subr.bf16.mxu0 %v9137_v52  ;;  %8245 = vmatprep.subr.bf16.mxu1 %v9138_v53 }
0x10b5   :  { %8218 = vmatpush3.bf16.msra.mxu0 %v9139_v54  ;;  %8246 = vmatpush3.bf16.msra.mxu1 %v9140_v56 }
0x10b6   :  { %8219 = vmatprep.subr.bf16.mxu0 %v9141_v58  ;;  %8247 = vmatprep.subr.bf16.mxu1 %v9142_v59 }
0x10b9   :  { %8220 = vmatpush3.bf16.msra.mxu0 %v9143_v32  ;;  %8248 = vmatpush3.bf16.msra.mxu1 %v9144_v22 }
0x10ba   :  { %8221 = vmatprep.subr.bf16.mxu0 %v9145_v55  ;;  %8249 = vmatprep.subr.bf16.mxu1 %v9146_v7 }
0x10bd   :  { %8222 = vmatpush3.bf16.msra.mxu0 %v9147_v18  ;;  %8250 = vmatpush3.bf16.msra.mxu1 %v9148_v28 }
0x10be   :  { %8223 = vmatprep.subr.bf16.mxu0 %v9149_v20  ;;  %8251 = vmatprep.subr.bf16.mxu1 %v9150_v26 }
0x10c1   :  { %8224 = vmatpush3.bf16.msra.mxu0 %v9151_v25  ;;  %8252 = vmatpush3.bf16.msra.mxu1 %v9152_v15 }
0x1176   :  { %v3377_v21 = vpop.f32.mrb[80].mxu0  ;;  %v3430_v63 = vpop.f32.mrb[84].mxu1 }
0x1177   :  { %v10558_v62 = vadd.f32 %v3377_v21, %v10545_v17  ;;  %v10561_v38 = vadd.f32 %v3430_v63, %v10548_v29  ;;  %v3379_v39 = vpop.f32.mrb[81].mxu0  ;;  %v3432_v1 = vpop.f32.mrb[85].mxu1 }
0x1178   :  { %v10564_v5 = vadd.f32 %v3379_v39, %v10551_v61  ;;  %v10567_v6 = vadd.f32 %v3432_v1, %v10555_v10  ;;  %v3381_v8 = vpop.f32.mrb[82].mxu0  ;;  %v3434_v11 = vpop.f32.mrb[86].mxu1 }
0x1179   :  { %v3449_v12 = vmul.f32 %v10558_v62, %v10558_v62  ;;  %v3451_v0 = vmul.f32 %v10561_v38, %v10561_v38  ;;  %v10574_v57 = vadd.f32 %v3381_v8, %v10545_v17  ;;  %v10577_v37 = vadd.f32 %v3434_v11, %v10548_v29  ;;  %v3383_v13 = vpop.f32.mrb[83].mxu0  ;;  %v3436_v14 = vpop.f32.mrb[87].mxu1 }
0x117a   :  { %v3450_v3 = vmul.f32 %v10564_v5, %v10564_v5  ;;  %v3452_v9 = vmul.f32 %v10567_v6, %v10567_v6  ;;  %v10584_v16 = vadd.f32 %v3383_v13, %v10551_v61  ;;  %v10587_v19 = vadd.f32 %v3436_v14, %v10555_v10 }
0x117b   :  { %v3465_v24 = vmul.f32 %v3449_v12, %v10558_v62  ;;  %v3467_v27 = vmul.f32 %v3451_v0, %v10561_v38  ;;  %v3453_v30 = vmul.f32 %v10574_v57, %v10574_v57  ;;  %v3455_v34 = vmul.f32 %v10577_v37, %v10577_v37 }
0x117c   :  { %v3466_v35 = vmul.f32 %v3450_v3, %v10564_v5  ;;  %v3468_v36 = vmul.f32 %v3452_v9, %v10567_v6  ;;  %v3454_v41 = vmul.f32 %v10584_v16, %v10584_v16  ;;  %v3456_v44 = vmul.f32 %v10587_v19, %v10587_v19 }
0x117d   :  { %v3481_v48 = vmul.f32 0.044715, %v3465_v24  ;;  %v3483_v49 = vmul.f32 0.044715, %v3467_v27  ;;  %v3469_v50 = vmul.f32 %v3453_v30, %v10574_v57  ;;  %v3471_v51 = vmul.f32 %v3455_v34, %v10577_v37 }
0x117e   :  { %v3482_v52 = vmul.f32 0.044715, %v3466_v35  ;;  %v3484_v53 = vmul.f32 0.044715, %v3468_v36  ;;  %v3470_v54 = vmul.f32 %v3454_v41, %v10584_v16  ;;  %v3472_v56 = vmul.f32 %v3456_v44, %v10587_v19  ;;  %v3387_v58 = vpop.f32.mrb[84].mxu0  ;;  %v3440_v59 = vpop.f32.mrb[88].mxu1 }
0x117f   :  { %v3497_v32 = vadd.f32 %v3481_v48, %v10558_v62  ;;  %v3499_v22 = vadd.f32 %v3483_v49, %v10561_v38  ;;  %v3485_v55 = vmul.f32 0.044715, %v3469_v50  ;;  %v3487_v7 = vmul.f32 0.044715, %v3471_v51  ;;  %v3389_v18 = vpop.f32.mrb[85].mxu0  ;;  %v3442_v28 = vpop.f32.mrb[89].mxu1 }
0x1180   :  { %v3498_v20 = vadd.f32 %v3482_v52, %v10564_v5  ;;  %v3500_v26 = vadd.f32 %v3484_v53, %v10567_v6  ;;  %v3486_v25 = vmul.f32 0.044715, %v3470_v54  ;;  %v3488_v15 = vmul.f32 0.044715, %v3472_v56  ;;  %v3391_v33 = vpop.f32.mrb[86].mxu0  ;;  %v3444_v21 = vpop.f32.mrb[90].mxu1 }
0x1181   :  { %v3513_v63 = vmul.f32 0.7978846, %v3497_v32  ;;  %v3515_v39 = vmul.f32 0.7978846, %v3499_v22  ;;  %v3501_v1 = vadd.f32 %v3485_v55, %v10574_v57  ;;  %v3503_v8 = vadd.f32 %v3487_v7, %v10577_v37  ;;  %v3393_v11 = vpop.f32.mrb[87].mxu0  ;;  %v3446_v12 = vpop.f32.mrb[91].mxu1 }
0x1182   :  { %v3514_v0 = vmul.f32 0.7978846, %v3498_v20  ;;  %v3516_v13 = vmul.f32 0.7978846, %v3500_v26  ;;  %v3502_v14 = vadd.f32 %v3486_v25, %v10584_v16  ;;  %v3504_v3 = vadd.f32 %v3488_v15, %v10587_v19 }
0x1183   :  { %9361 = vtanh.f32 %v3513_v63  ;;  %v3517_v9 = vmul.f32 0.7978846, %v3501_v1  ;;  %v3519_v24 = vmul.f32 0.7978846, %v3503_v8  ;;  %v10614_v27 = vadd.f32 %v3387_v58, %v10545_v17 }
0x1184   :  { %9363 = vtanh.f32 %v3515_v39  ;;  %v3518_v30 = vmul.f32 0.7978846, %v3502_v14  ;;  %v3520_v34 = vmul.f32 0.7978846, %v3504_v3  ;;  %v10617_v35 = vadd.f32 %v3440_v59, %v10548_v29 }
0x1185   :  { %9365 = vtanh.f32 %v3514_v0  ;;  %v3457_v36 = vmul.f32 %v10614_v27, %v10614_v27  ;;  %v10622_v41 = vadd.f32 %v3389_v18, %v10551_v61  ;;  %v10625_v44 = vadd.f32 %v3442_v28, %v10555_v10 }
0x1186   :  { %9367 = vtanh.f32 %v3516_v13  ;;  %v3459_v48 = vmul.f32 %v10617_v35, %v10617_v35  ;;  %v10630_v49 = vadd.f32 %v3391_v33, %v10545_v17  ;;  %v10633_v50 = vadd.f32 %v3444_v21, %v10548_v29 }
0x1187   :  { %9369 = vtanh.f32 %v3517_v9  ;;  %v3473_v51 = vmul.f32 %v3457_v36, %v10614_v27  ;;  %v3458_v52 = vmul.f32 %v10622_v41, %v10622_v41  ;;  %v3460_v53 = vmul.f32 %v10625_v44, %v10625_v44 }
0x1188   :  { %9371 = vtanh.f32 %v3519_v24  ;;  %v3475_v54 = vmul.f32 %v3459_v48, %v10617_v35  ;;  %v3461_v56 = vmul.f32 %v10630_v49, %v10630_v49  ;;  %v3463_v17 = vmul.f32 %v10633_v50, %v10633_v50 }
0x1189   :  { %9373 = vtanh.f32 %v3518_v30  ;;  %v3489_v29 = vmul.f32 0.044715, %v3473_v51  ;;  %v3474_v58 = vmul.f32 %v3458_v52, %v10622_v41  ;;  %v3476_v59 = vmul.f32 %v3460_v53, %v10625_v44 }
0x118a   :  { %9375 = vtanh.f32 %v3520_v34  ;;  %v3491_v32 = vmul.f32 0.044715, %v3475_v54  ;;  %v3477_v22 = vmul.f32 %v3461_v56, %v10630_v49  ;;  %v3479_v55 = vmul.f32 %v3463_v17, %v10633_v50 }
0x118b   :  { %v3505_v7 = vadd.f32 %v3489_v29, %v10614_v27  ;;  %v3490_v18 = vmul.f32 0.044715, %v3474_v58  ;;  %v3492_v28 = vmul.f32 0.044715, %v3476_v59  ;;  %v10651_v20 = vadd.f32 %v3393_v11, %v10551_v61 }
0x118c   :  { %v3507_v26 = vadd.f32 %v3491_v32, %v10617_v35  ;;  %v3493_v25 = vmul.f32 0.044715, %v3477_v22  ;;  %v3495_v15 = vmul.f32 0.044715, %v3479_v55  ;;  %v10655_v33 = vadd.f32 %v3446_v12, %v10555_v10 }
0x118d   :  { %v9362_v21 = vpop.eup %9361  ;;  %v3521_v63 = vmul.f32 0.7978846, %v3505_v7  ;;  %v3506_v39 = vadd.f32 %v3490_v18, %v10622_v41  ;;  %v3508_v1 = vadd.f32 %v3492_v28, %v10625_v44  ;;  %v3462_v8 = vmul.f32 %v10651_v20, %v10651_v20 }
0x118e   :  { %v9364_v0 = vpop.eup %9363  ;;  %v3545_v13 = vadd.f32 1.0, %v9362_v21  ;;  %v3523_v61 = vmul.f32 0.7978846, %v3507_v26  ;;  %v3509_v11 = vadd.f32 %v3493_v25, %v10630_v49  ;;  %v3511_v14 = vadd.f32 %v3495_v15, %v10633_v50 }
0x118f   :  { %v9366_v3 = vpop.eup %9365  ;;  %v3547_v9 = vadd.f32 1.0, %v9364_v0  ;;  %9377 = vtanh.f32 %v3521_v63  ;;  %v3522_v10 = vmul.f32 0.7978846, %v3506_v39  ;;  %v3524_v12 = vmul.f32 0.7978846, %v3508_v1 }
0x1190   :  { %v9368_v24 = vpop.eup %9367  ;;  %v3561_v30 = vmul.f32 0.5, %v3545_v13  ;;  %9379 = vtanh.f32 %v3523_v61  ;;  %v3525_v34 = vmul.f32 0.7978846, %v3509_v11  ;;  %v3527_v36 = vmul.f32 0.7978846, %v3511_v14 }
0x1191   :  { %v9370_v48 = vpop.eup %9369  ;;  %v3563_v51 = vmul.f32 0.5, %v3547_v9  ;;  %9381 = vtanh.f32 %v3522_v10  ;;  %v3478_v52 = vmul.f32 %v3462_v8, %v10651_v20  ;;  %v3464_v53 = vmul.f32 %v10655_v33, %v10655_v33 }
0x1192   :  { %v9372_v54 = vpop.eup %9371  ;;  %v3577_v56 = vmul.f32 %v3561_v30, %v10558_v62  ;;  %v3549_v17 = vadd.f32 1.0, %v9370_v48  ;;  %9383 = vtanh.f32 %v3524_v12  ;;  %v3546_v29 = vadd.f32 1.0, %v9366_v3 }
0x1193   :  { %v9374_v58 = vpop.eup %9373  ;;  %v3579_v59 = vmul.f32 %v3563_v51, %v10561_v38  ;;  %v3551_v32 = vadd.f32 1.0, %v9372_v54  ;;  %9385 = vtanh.f32 %v3525_v34  ;;  %v3494_v22 = vmul.f32 0.044715, %v3478_v52 }
0x1194   :  { %v9376_v55 = vpop.eup %9375  ;;  %v3565_v7 = vmul.f32 0.5, %v3549_v17  ;;  %9387 = vtanh.f32 %v3527_v36  ;;  %v3480_v18 = vmul.f32 %v3464_v53, %v10655_v33  ;;  %v3550_v28 = vadd.f32 1.0, %v9374_v58 }
0x1195   :  { %v3567_v26 = vmul.f32 0.5, %v3551_v32  ;;  %v3510_v25 = vadd.f32 %v3494_v22, %v10651_v20  ;;  %v3562_v15 = vmul.f32 0.5, %v3546_v29  ;;  %v3548_v62 = vadd.f32 1.0, %v9368_v24 }
0x1196   :  { %v3581_v21 = vmul.f32 %v3565_v7, %v10574_v57  ;;  %v3496_v63 = vmul.f32 0.044715, %v3480_v18  ;;  %v3566_v39 = vmul.f32 0.5, %v3550_v28  ;;  %v3552_v1 = vadd.f32 1.0, %v9376_v55 }
0x1197   :  { %v3583_v38 = vmul.f32 %v3567_v26, %v10577_v37  ;;  %v3526_v8 = vmul.f32 0.7978846, %v3510_v25  ;;  %v3578_v0 = vmul.f32 %v3562_v15, %v10564_v5  ;;  %v3564_v13 = vmul.f32 0.5, %v3548_v62 }
0x1198   :  { %v3593_v61 = vpack.c.bf16 %v3581_v21, %v3577_v56  ;;  %v3512_v11 = vadd.f32 %v3496_v63, %v10655_v33  ;;  %v3582_v14 = vmul.f32 %v3566_v39, %v10584_v16  ;;  %v3568_v3 = vmul.f32 0.5, %v3552_v1 }
0x1199   :  { %v9378_v9 = vpop.eup %9377  ;;  %v3595_v10 = vpack.c.bf16 %v3583_v38, %v3579_v59  ;;  %9389 = vtanh.f32 %v3526_v8  ;;  %v3580_v57 = vmul.f32 %v3564_v13, %v10567_v6 }
0x119a   :  { %v9380_v12 = vpop.eup %9379  ;;  %v3528_v24 = vmul.f32 0.7978846, %v3512_v11  ;;  %v3594_v30 = vpack.c.bf16 %v3582_v14, %v3578_v0  ;;  %v3584_v37 = vmul.f32 %v3568_v3, %v10587_v19  ;;  %v3553_v34 = vadd.f32 1.0, %v9378_v9 }
0x119b   :  { %v9382_v36 = vpop.eup %9381  ;;  %v3555_v5 = vadd.f32 1.0, %v9380_v12 }
0x119c   :  { %v9384_v48 = vpop.eup %9383  ;;  %9391 = vtanh.f32 %v3528_v24  ;;  %3889 = vmatprep.mubr.bf16.mxu0 %v3594_v30  ;;  %v3596_v51 = vpack.c.bf16 %v3584_v37, %v3580_v57  ;;  %v3569_v54 = vmul.f32 0.5, %v3553_v34  ;;  %v3554_v17 = vadd.f32 1.0, %v9382_v36  ;;  %v7736_v57 = vld [vmem:[%s11654_s15] ss:$0 sm:$0xff] }
0x119d   :  { %v9386_v52 = vpop.eup %9385  ;;  %3890 = vmatmul.mubr.bf16.vlgmr.msra.gmra.mrb[88].mxu0 %v3593_v61  ;;  %v3571_v56 = vmul.f32 0.5, %v3555_v5  ;;  %v3556_v22 = vadd.f32 1.0, %v9384_v48 }
0x119e   :  { %v9388_v16 = vpop.eup %9387  ;;  %3938 = vmatprep.mubr.bf16.mxu1 %v3596_v51  ;;  %v3557_v53 = vadd.f32 1.0, %v9386_v52  ;;  %v3585_v19 = vmul.f32 %v3569_v54, %v10614_v27  ;;  %v3570_v28 = vmul.f32 0.5, %v3554_v17 }
0x119f   :  { %3939 = vmatmul.mubr.bf16.vlgmr.msra.gmra.mrb[92].mxu1 %v3595_v10  ;;  %v3559_v6 = vadd.f32 1.0, %v9388_v16  ;;  %v3587_v55 = vmul.f32 %v3571_v56, %v10617_v35  ;;  %v3572_v63 = vmul.f32 0.5, %v3556_v22  ;;  %v9153_v22 = vld [vmem:[%s11674_s28 + $0xc0] ss:$12 sps:$4 sm:$0xff]  }
0x11a0   :  { %v3573_v29 = vmul.f32 0.5, %v3557_v53  ;;  %v3586_v39 = vmul.f32 %v3570_v28, %v10622_v41 }
0x11a1   :  { %v3575_v58 = vmul.f32 0.5, %v3559_v6  ;;  %v3588_v38 = vmul.f32 %v3572_v63, %v10625_v44 }
0x11a2   :  { %v3589_v59 = vmul.f32 %v3573_v29, %v10630_v49 }
0x11a3   :  { %v9390_v32 = vpop.eup %9389  ;;  %v3591_v7 = vmul.f32 %v3575_v58, %v10633_v50 }
0x11a4   :  { %v3558_v18 = vadd.f32 1.0, %v9390_v32  ;;  %v3597_v26 = vpack.c.bf16 %v3589_v59, %v3585_v19 }
0x11a5   :  { %v3599_v25 = vpack.c.bf16 %v3591_v7, %v3587_v55  ;;  %v9155_v55 = vld [vmem:[%s11674_s28 + $0xc4] ss:$12 sps:$4 sm:$0xff]  }
0x11a6   :  { %v9392_v15 = vpop.eup %9391  ;;  %v3574_v62 = vmul.f32 0.5, %v3558_v18  ;;  %4219 = vmatprep.subr.bf16.mxu0 %v9155_v55 }
0x11a7   :  { %v3560_v21 = vadd.f32 1.0, %v9392_v15  ;;  %4220 = vmatpush1.bf16.msra.mxu0 %v9153_v22 }
0x11a8   :  { %v3590_v27 = vmul.f32 %v3574_v62, %v10651_v20 }
0x11a9   :  { %v3576_v1 = vmul.f32 0.5, %v3560_v21 }
0x11aa   :  { %v3598_v49 = vpack.c.bf16 %v3590_v27, %v3586_v39 }
0x11ab   :  { %v3592_v35 = vmul.f32 %v3576_v1, %v10655_v33 }
0x11ac   :  { %3897 = vmatprep.mubr.bf16.mxu0 %v3598_v49 }
0x11ad   :  { %v3600_v50 = vpack.c.bf16 %v3592_v35, %v3588_v38  ;;  %3898 = vmatmul.mubr.bf16.gmra.mrb[92].mxu0 %v3597_v26 }
0x11ae   :  { %4251 = vmatprep.mubr.bf16.mxu0 %v9516_v2 }
0x11af   :  { %3946 = vmatprep.mubr.bf16.mxu1 %v3600_v50 }
0x11b0   :  { %3947 = vmatmul.mubr.bf16.gmra.mrb[96].mxu1 %v3599_v25 }
0x1270   :  { %v8225_v8 = vpop.f32.mrb[88].mxu0 }
0x1271   :  { %v8226_v0 = vpop.f32.mrb[89].mxu0 }
0x1272   :  { %v8253_v13 = vpop.f32.mrb[92].mxu1  ;;  %v8227_v61 = vadd.f32 %v8226_v0, %v8225_v8  ;;  %v8228_v41 = vpop.f32.mrb[90].mxu0  ;;  %v9161_v8 = vld [vmem:[%s11674_s28 + $0xf4] ss:$12 sps:$4 sm:$0xff]  }
0x1273   :  { %v8254_v11 = vpop.f32.mrb[93].mxu1  ;;  %v8229_v20 = vpop.f32.mrb[91].mxu0  ;;  %v9162_v0 = vld [vmem:[%s11674_s28 + $0xc8] ss:$12 sps:$4 sm:$0xff]  }
0x1274   :  { %v8255_v14 = vadd.f32 %v8254_v11, %v8253_v13  ;;  %v8256_v3 = vpop.f32.mrb[94].mxu1  ;;  %v8230_v9 = vadd.f32 %v8229_v20, %v8228_v41  ;;  %v9159_v13 = vld [vmem:[%s11674_s28 + $0xf0] ss:$12 sps:$4 sm:$0xff]   ;;  %8685 = vmatprep.subr.bf16.mxu1 %v9162_v0  ;;  %v9166_v41 = vld [vmem:[%s11674_s28 + $0xe0] ss:$12 sps:$4 sm:$0xff]  }
0x1275   :  { %v8257_v44 = vpop.f32.mrb[95].mxu1  ;;  %8686 = vmatpush3.bf16.msra.mxu1 %v9162_v0  ;;  %v9163_v11 = vld [vmem:[%s11674_s28 + $0x108] ss:$12 sps:$4 sm:$0xff]   ;;  %v9169_v20 = vld [vmem:[%s11674_s28 + $0x124] ss:$12 sps:$4 sm:$0xff]  }
0x1276   :  { %v3941_v10 = vadd.f32 %v8255_v14, %v8227_v61  ;;  %v8258_v33 = vadd.f32 %v8257_v44, %v8256_v3  ;;  %v9165_v61 = vld [vmem:[%s11674_s28 + $0x10c] ss:$12 sps:$4 sm:$0xff]   ;;  %8687 = vmatprep.subr.bf16.mxu1 %v9166_v41  ;;  %v9174_v44 = vld [vmem:[%s11674_s28 + $0x110] ss:$12 sps:$4 sm:$0xff]  }
0x1277   :  { %v9170_v14 = vld [vmem:[%s11674_s28 + $0xf8] ss:$12 sps:$4 sm:$0xff]   ;;  %v9167_v3 = vld [vmem:[%s11674_s28 + $0x120] ss:$12 sps:$4 sm:$0xff]  }
0x1278   :  { %v3955_v12 = vadd.f32 %v3941_v10, %v10302_v4  ;;  %v3944_v24 = vadd.f32 %v8258_v33, %v8230_v9  ;;  %v9173_v9 = vld [vmem:[%s11674_s28 + $0x13c] ss:$12 sps:$4 sm:$0xff]   ;;  %v9171_v10 = vld [vmem:[%s11674_s28 + $0x138] ss:$12 sps:$4 sm:$0xff]  }
0x1279   :  { %8688 = vmatpush3.bf16.msra.mxu1 %v9166_v41  ;;  %v9175_v33 = vld [vmem:[%s11674_s28 + $0x150] ss:$12 sps:$4 sm:$0xff]  }
0x127a   :  { %v3956_v30 = vadd.f32 %v3944_v24, %v10305_v46  ;;  %v10691_v37 = vadd.f32 %v7736_v57, %v3955_v12  ;;  %8689 = vmatprep.subr.bf16.mxu1 %v9170_v14  ;;  %v9178_v12 = vld [vmem:[%s11674_s28 + $0x128] ss:$12 sps:$4 sm:$0xff]   ;;  %v9181_v24 = vld [vmem:[%s11674_s28 + $0x16c] ss:$12 sps:$4 sm:$0xff]  }
0x127c   :  { %3974 = vadd.xlane.f32.xlu0 %v10691_v37  ;;  %v10694_v34 = vadd.f32 %v7736_v57, %v3956_v30  ;;  %v9182_v30 = vld [vmem:[%s11674_s28 + $0x140] ss:$12 sps:$4 sm:$0xff]  }
0x127d   :  { %8690 = vmatpush3.bf16.msra.mxu1 %v9170_v14 }
0x127e   :  { %3976 = vadd.xlane.f32.xlu1 %v10694_v34  ;;  %8691 = vmatprep.subr.bf16.mxu1 %v9174_v44 }
0x1280   :  { %v8231_v36 = vpop.f32.mrb[92].mxu0 }
0x1281   :  { %v8232_v5 = vpop.f32.mrb[93].mxu0  ;;  %8692 = vmatpush3.bf16.msra.mxu1 %v9174_v44 }
0x1282   :  { %v8233_v48 = vadd.f32 %v8232_v5, %v8231_v36  ;;  %v8234_v51 = vpop.f32.mrb[94].mxu0  ;;  %8693 = vmatprep.subr.bf16.mxu1 %v9178_v12  ;;  %v9179_v36 = vld [vmem:[%s11674_s28 + $0x168] ss:$12 sps:$4 sm:$0xff]   ;;  %v9183_v5 = vld [vmem:[%s11674_s28 + $0x158] ss:$12 sps:$4 sm:$0xff]  }
0x1283   :  { %v8259_v52 = vpop.f32.mrb[96].mxu1  ;;  %v8235_v16 = vpop.f32.mrb[95].mxu0 }
0x1284   :  { %v8260_v53 = vpop.f32.mrb[97].mxu1  ;;  %v8236_v54 = vadd.f32 %v8235_v16, %v8234_v51 }
0x1285   :  { %v8261_v4 = vadd.f32 %v8260_v53, %v8259_v52  ;;  %v8262_v6 = vpop.f32.mrb[98].mxu1  ;;  %8694 = vmatpush3.bf16.msra.mxu1 %v9178_v12 }
0x1286   :  { %v8263_v56 = vpop.f32.mrb[99].mxu1  ;;  %8695 = vmatprep.subr.bf16.mxu1 %v9182_v30 }
0x1287   :  { %v3949_v46 = vadd.f32 %v8261_v4, %v8233_v48  ;;  %v8264_v17 = vadd.f32 %v8263_v56, %v8262_v6  ;;  %v9184_v48 = vld [vmem:[%s11674_s28 + $0x170] ss:$12 sps:$4 sm:$0xff]   ;;  %v7739_v56 = vld [vmem:[%s11675_s24 + $0x1] ss:$0 sm:$0xff] }
0x1289   :  { %v3957_v29 = vadd.f32 %v3949_v46, %v10308_v31  ;;  %v3952_v58 = vadd.f32 %v8264_v17, %v8236_v54  ;;  %v9158_v31 = vld [vmem:[%s11674_s28 + $0xdc] ss:$12 sps:$4 sm:$0xff]   ;;  %8696 = vmatpush3.bf16.msra.mxu1 %v9182_v30 }
0x128a   :  { %4221 = vmatprep.subr.bf16.mxu0 %v9158_v31  ;;  %8697 = vmatprep.subr.bf16.mxu1 %v9183_v5  ;;  %v7740_v31 = vld [vmem:[%s11644_s5 + $0x1] ss:$0 sm:$0xff] }
0x128b   :  { %v3958_v19 = vadd.f32 %v3952_v58, %v10313_v23  ;;  %v10699_v59 = vadd.f32 %v7736_v57, %v3957_v29  ;;  %v9156_v23 = vld [vmem:[%s11674_s28 + $0xd8] ss:$12 sps:$4 sm:$0xff]  }
0x128c   :  { %4222 = vmatpush1.bf16.msra.mxu0 %v9156_v23 }
0x128d   :  { %3978 = vadd.xlane.f32.xlu0 %v10699_v59  ;;  %v10702_v32 = vadd.f32 %v7736_v57, %v3958_v19  ;;  %4223 = vmatprep.subr.bf16.mxu0 %v9161_v8  ;;  %v9177_v57 = vld [vmem:[%s11674_s28 + $0x154] ss:$12 sps:$4 sm:$0xff]  }
0x128e   :  { %8698 = vmatpush3.bf16.msra.mxu1 %v9183_v5 }
0x128f   :  { %3980 = vadd.xlane.f32.xlu1 %v10702_v32  ;;  %8699 = vmatprep.subr.bf16.mxu1 %v9184_v48 }
0x1290   :  { %4224 = vmatpush1.bf16.msra.mxu0 %v9159_v13 }
0x1291   :  { %4225 = vmatprep.subr.bf16.mxu0 %v9165_v61 }
0x1292   :  { %8700 = vmatpush3.bf16.msra.mxu1 %v9184_v48 }
0x1293   :  { %8711 = vmatprep.subr.bf16.mxu1 %v9517_v40 }
0x1294   :  { %4226 = vmatpush1.bf16.msra.mxu0 %v9163_v11 }
0x1295   :  { %4227 = vmatprep.subr.bf16.mxu0 %v9169_v20 }
0x1298   :  { %4228 = vmatpush1.bf16.msra.mxu0 %v9167_v3 }
0x1299   :  { %4229 = vmatprep.subr.bf16.mxu0 %v9173_v9 }
0x129c   :  { %4230 = vmatpush1.bf16.msra.mxu0 %v9171_v10 }
0x129d   :  { %4231 = vmatprep.subr.bf16.mxu0 %v9177_v57 }
0x12a0   :  { %4232 = vmatpush1.bf16.msra.mxu0 %v9175_v33 }
0x12a1   :  { %4233 = vmatprep.subr.bf16.mxu0 %v9181_v24 }
0x12a4   :  { %4234 = vmatpush1.bf16.msra.mxu0 %v9179_v36 }
0x12a5   :  { %8705 = vmatprep.subr.bf16.mxu0 %v9517_v40 }
0x1309   :  { %v3975_v7 = vpop.xlane.xlu0 %3974 }
0x130a   :  { %v3982_v18 = vmul.f32 0.0078125, %v3975_v7 }
0x130b   :  { %v3977_v28 = vpop.xlane.xlu1 %3976 }
0x130c   :  { %v10718_v26 = vsub.f32 %v10691_v37, %v3982_v18  ;;  %v3983_v25 = vmul.f32 0.0078125, %v3977_v28 }
0x130e   :  { %v10721_v15 = vsub.f32 %v10694_v34, %v3983_v25  ;;  %v3990_v62 = vmul.f32 %v10718_v26, %v10718_v26 }
0x1310   :  { %3994 = vadd.xlane.f32.xlu0 %v3990_v62  ;;  %v3991_v21 = vmul.f32 %v10721_v15, %v10721_v15 }
0x1312   :  { %3996 = vadd.xlane.f32.xlu1 %v3991_v21 }
0x131a   :  { %v3979_v63 = vpop.xlane.xlu0 %3978 }
0x131b   :  { %v3984_v39 = vmul.f32 0.0078125, %v3979_v63 }
0x131c   :  { %v3981_v27 = vpop.xlane.xlu1 %3980 }
0x131d   :  { %v10728_v1 = vsub.f32 %v10699_v59, %v3984_v39  ;;  %v3985_v49 = vmul.f32 0.0078125, %v3981_v27 }
0x131f   :  { %v10731_v38 = vsub.f32 %v10702_v32, %v3985_v49  ;;  %v3992_v35 = vmul.f32 %v10728_v1, %v10728_v1 }
0x1321   :  { %3998 = vadd.xlane.f32.xlu0 %v3992_v35  ;;  %v3993_v50 = vmul.f32 %v10731_v38, %v10731_v38 }
0x1323   :  { %4000 = vadd.xlane.f32.xlu1 %v3993_v50 }
0x139d   :  { %v3995_v51 = vpop.xlane.xlu0 %3994 }
0x139e   :  { %v4002_v52 = vmul.f32 0.0078125, %v3995_v51 }
0x139f   :  { %v3997_v16 = vpop.xlane.xlu1 %3996 }
0x13a0   :  { %v4006_v53 = vadd.f32 1e-06, %v4002_v52  ;;  %v4003_v54 = vmul.f32 0.0078125, %v3997_v16 }
0x13a2   :  { %9393 = vrsqrt.f32 %v4006_v53  ;;  %v4007_v4 = vadd.f32 1e-06, %v4003_v54 }
0x13a4   :  { %9395 = vrsqrt.f32 %v4007_v4 }
0x13ac   :  { %v9394_v6 = vpop.eup %9393 }
0x13ad   :  { %v4014_v46 = vmul.f32 %v9394_v6, %v10718_v26 }
0x13ae   :  { %v9396_v17 = vpop.eup %9395  ;;  %v3999_v29 = vpop.xlane.xlu0 %3998 }
0x13af   :  { %v4024_v58 = vmul.f32 %v7739_v56, %v4014_v46  ;;  %v4015_v19 = vmul.f32 %v9396_v17, %v10721_v15  ;;  %v4004_v22 = vmul.f32 0.0078125, %v3999_v29 }
0x13b0   :  { %v4001_v55 = vpop.xlane.xlu1 %4000 }
0x13b1   :  { %v4025_v23 = vmul.f32 %v7739_v56, %v4015_v19  ;;  %v4008_v7 = vadd.f32 1e-06, %v4004_v22  ;;  %v4005_v18 = vmul.f32 0.0078125, %v4001_v55  ;;  %v4034_v25 = vadd.f32 %v7740_v31, %v4024_v58 }
0x13b3   :  { %9397 = vrsqrt.f32 %v4008_v7  ;;  %v4009_v28 = vadd.f32 1e-06, %v4005_v18  ;;  %v4035_v62 = vadd.f32 %v7740_v31, %v4025_v23 }
0x13b5   :  { %9399 = vrsqrt.f32 %v4009_v28  ;;  %v4038_v26 = vpack.c.bf16 %v4035_v62, %v4034_v25 }
0x13b7   :  { %4252 = vmatmul.mubr.bf16.vlgmr.msra.gmra.mrb[96].mxu0 %v4038_v26  ;;  %8701 = vmatprep.mubr.bf16.mxu1 %v4038_v26 }
0x13b8   :  { %4261 = vmatprep.mubr.bf16.mxu0 %v9516_v2 }
0x13bd   :  { %v9398_v15 = vpop.eup %9397 }
0x13be   :  { %v4016_v21 = vmul.f32 %v9398_v15, %v10728_v1  ;;  %v7773_v1 = vld [vmem:[%s11645_s7 + $0x3] sm:$0x7] }
0x13bf   :  { %v9400_v63 = vpop.eup %9399  ;;  %v4083_v0 = vrot.slane %v7773_v1, %v9905_v43  ;;  %v4079_v20 = vrot.slane %v7773_v1, %v9915_v47  ;;  %v4087_v30 = vrot.slane %v7773_v1, %v9911_v45 }
0x13c0   :  { %v4017_v39 = vmul.f32 %v9400_v63, %v10731_v38  ;;  %v4026_v27 = vmul.f32 %v7739_v56, %v4016_v21 }
0x13c2   :  { %v4027_v49 = vmul.f32 %v7739_v56, %v4017_v39  ;;  %v4036_v35 = vadd.f32 %v7740_v31, %v4026_v27 }
0x13c4   :  { %v4037_v50 = vadd.f32 %v7740_v31, %v4027_v49 }
0x13c6   :  { %v4039_v8 = vpack.c.bf16 %v4037_v50, %v4036_v35 }
0x13c8   :  { %4262 = vmatmul.mubr.bf16.gmra.mrb[100].mxu0 %v4039_v8  ;;  %8702 = vmatmul.mubr.bf16.vlgmr.msra.gmra.mrb[100].mxu1 %v4039_v8  ;;  %v10881_v8 = vld [vmem:[%s11646_s2] sm:$0xff] }
0x13c9   :  { %8707 = vmatprep.mubr.msk.bf16.mxu0 %vm9518_vm0, %v9517_v40  ;;  %8713 = vmatprep.mubr.msk.bf16.mxu1 %vm9518_vm0, %v9517_v40 }
0x148a   :  { %v4253_v38 = vpop.f32.mrb[96].mxu0 }
0x148b   :  { %v4255_v13 = vpop.f32.mrb[97].mxu0  ;;  %v4254_v10 = vadd.f32 %v4253_v38, %v4079_v20 }
0x148c   :  { %v4256_v61 = vadd.f32 %v4255_v13, %v4083_v0  ;;  %v4257_v41 = vpop.f32.mrb[98].mxu0 }
0x148d   :  { %v4259_v11 = vpop.f32.mrb[99].mxu0  ;;  %v4258_v57 = vadd.f32 %v4257_v41, %v4079_v20  ;;  %v10829_v12 = vpack.c.bf16 %v4254_v10, %v4254_v10 }
0x148e   :  { %v10819_v14 = vpack.c.bf16 %v4256_v61, %v4256_v61  ;;  %v4260_v3 = vadd.f32 %v4259_v11, %v4083_v0 }
0x148f   :  { %v10831_v24 = vpack.c.bf16 %v4258_v57, %v4258_v57 }
0x1490   :  { %v10821_v9 = vpack.c.bf16 %v4260_v3, %v4260_v3  ;;  %v4354_v44 = vsel %vm979_vm1, %v10819_v14, 0 }
0x1491   :  { %8706 = vmatpush3.bf16.xpose.msra.mxu0 %v4354_v44 }
0x1492   :  { %v4400_v33 = vsel %vm979_vm1, %v10821_v9, 0  ;;  %8717 = vmatprep.subr.bf16.mxu0 %v9517_v40 }
0x1493   :  { %8712 = vmatpush3.bf16.xpose.msra.mxu1 %v4400_v33 }
0x1494   :  { %8723 = vmatprep.subr.bf16.mxu1 %v9517_v40 }
0x1498   :  { %8708 = vmatmul.mubr.msk.bf16.vlgmr.msra.gmra.mrb[104].mxu0 %vm979_vm1, %v10829_v12 }
0x1499   :  { %8719 = vmatprep.mubr.msk.bf16.mxu0 %vm9518_vm0, %v9517_v40 }
0x149a   :  { %8714 = vmatmul.mubr.msk.bf16.vlgmr.msra.gmra.mrb[104].mxu1 %vm979_vm1, %v10831_v24 }
0x149b   :  { %v4263_v36 = vpop.f32.mrb[100].mxu0  ;;  %v8703_v5 = vpop.f32.mrb[100].mxu1  ;;  %8725 = vmatprep.mubr.msk.bf16.mxu1 %vm9518_vm0, %v9517_v40 }
0x149c   :  { %v10842_v48 = vadd.f32 %v8703_v5, %v4087_v30  ;;  %v4265_v51 = vpop.f32.mrb[101].mxu0  ;;  %v4306_v52 = vpop.f32.mrb[101].mxu1  ;;  %v4264_v22 = vadd.f32 %v4263_v36, %v4079_v20 }
0x149d   :  { %v4266_v16 = vadd.f32 %v4265_v51, %v4083_v0  ;;  %v4267_v53 = vpop.f32.mrb[102].mxu0  ;;  %v8704_v54 = vpop.f32.mrb[102].mxu1  ;;  %v4307_v29 = vadd.f32 %v4306_v52, %v4087_v30 }
0x149e   :  { %v10844_v4 = vadd.f32 %v8704_v54, %v4087_v30  ;;  %v4269_v6 = vpop.f32.mrb[103].mxu0  ;;  %v4309_v56 = vpop.f32.mrb[103].mxu1  ;;  %v4268_v7 = vadd.f32 %v4267_v53, %v4079_v20  ;;  %v10858_v18 = vpack.c.bf16 %v4264_v22, %v4264_v22 }
0x149f   :  { %v10846_v46 = vpack.c.bf16 %v4266_v16, %v4266_v16  ;;  %v4270_v17 = vadd.f32 %v4269_v6, %v4083_v0  ;;  %v4310_v55 = vadd.f32 %v4309_v56, %v4087_v30  ;;  %v10855_v23 = vpack.c.bf16 %v4307_v29, %v4307_v29 }
0x14a0   :  { %v10862_v25 = vpack.c.bf16 %v4268_v7, %v4268_v7 }
0x14a1   :  { %v10848_v58 = vpack.c.bf16 %v4270_v17, %v4270_v17  ;;  %v4446_v19 = vsel %vm979_vm1, %v10846_v46, 0  ;;  %v10860_v28 = vpack.c.bf16 %v4310_v55, %v4310_v55  ;;  %v4594_v62 = vsel %vm1224_vm2, %v10855_v23, 0 }
0x14a2   :  { %8718 = vmatpush3.bf16.xpose.msra.mxu0 %v4446_v19 }
0x14a3   :  { %v4492_v31 = vsel %vm979_vm1, %v10848_v58, 0  ;;  %8729 = vmatprep.subr.bf16.mxu0 %v9517_v40  ;;  %v4640_v26 = vsel %vm1224_vm2, %v10860_v28, 0 }
0x14a4   :  { %8724 = vmatpush3.bf16.xpose.msra.mxu1 %v4492_v31 }
0x14a5   :  { %8735 = vmatprep.subr.bf16.mxu1 %v9517_v40 }
0x14a9   :  { %8720 = vmatmul.mubr.msk.bf16.vlgmr.msra.gmra.mrb[108].mxu0 %vm979_vm1, %v10858_v18 }
0x14aa   :  { %8730 = vmatpush3.bf16.msra.mxu0 %v4594_v62  ;;  %8731 = vmatprep.mubr.msk.bf16.mxu0 %vm9518_vm0, %v9517_v40 }
0x14ab   :  { %8726 = vmatmul.mubr.msk.bf16.vlgmr.msra.gmra.mrb[108].mxu1 %vm979_vm1, %v10862_v25  ;;  %8741 = vmatprep.subr.bf16.mxu0 %v9517_v40 }
0x14ac   :  { %8736 = vmatpush3.bf16.msra.mxu1 %v4640_v26  ;;  %8737 = vmatprep.mubr.msk.bf16.mxu1 %vm9518_vm0, %v9517_v40 }
0x14ad   :  { %8747 = vmatprep.subr.bf16.mxu1 %v9517_v40 }
0x156b   :  { %v4390_v15 = vpop.f32.mrb[104].mxu0 }
0x156c   :  { %v4534_v21 = vmul.f32 0.17677669, %v4390_v15  ;;  %v8709_v63 = vpop.f32.mrb[105].mxu0 }
0x156d   :  { %v4393_v39 = vpop.f32.mrb[106].mxu0  ;;  %v4436_v27 = vpop.f32.mrb[104].mxu1 }
0x156e   :  { %v4535_v49 = vmul.f32 0.17677669, %v4436_v27  ;;  %v8710_v35 = vpop.f32.mrb[107].mxu0  ;;  %v8715_v50 = vpop.f32.mrb[105].mxu1  ;;  %v4538_v1 = vadd.f32 %v10881_v8, %v4534_v21 }
0x156f   :  { %v4439_v0 = vpop.f32.mrb[106].mxu1 }
0x1570   :  { %v8716_v38 = vpop.f32.mrb[107].mxu1  ;;  %v4542_v13 = vsel %vm1172_vm3, %v4538_v1, -inf  ;;  %v4539_v61 = vadd.f32 %v10881_v8, %v4535_v49 }
0x1571   :  { %4543 = vmax.xlane.f32.xlu0 %v4542_v13  ;;  %v10913_v13 = vpack.c.bf16 %v10842_v48, %v10842_v48 }
0x1572   :  { %v4545_v41 = vsel %vm1172_vm3, %v4539_v61, -inf }
0x1573   :  { %4546 = vmax.xlane.f32.xlu1 %v4545_v41 }
0x157c   :  { %v4482_v11 = vpop.f32.mrb[108].mxu0 }
0x157d   :  { %v4536_v20 = vmul.f32 0.17677669, %v4482_v11  ;;  %v8721_v3 = vpop.f32.mrb[109].mxu0  ;;  %v10917_v11 = vpack.c.bf16 %v10844_v4, %v10844_v4 }
0x157e   :  { %v4485_v44 = vpop.f32.mrb[110].mxu0  ;;  %v4528_v10 = vpop.f32.mrb[108].mxu1 }
0x157f   :  { %v4537_v33 = vmul.f32 0.17677669, %v4528_v10  ;;  %v8722_v57 = vpop.f32.mrb[111].mxu0  ;;  %v8727_v30 = vpop.f32.mrb[109].mxu1  ;;  %v4540_v36 = vadd.f32 %v10881_v8, %v4536_v20  ;;  %v4686_v44 = vsel %vm1224_vm2, %v10913_v13, 0  ;;  %v4732_v48 = vsel %vm1224_vm2, %v10917_v11, 0 }
0x1580   :  { %v4531_v5 = vpop.f32.mrb[110].mxu1 }
0x1581   :  { %v8728_v51 = vpop.f32.mrb[111].mxu1  ;;  %v4548_v52 = vsel %vm1172_vm3, %v4540_v36, -inf  ;;  %v4541_v16 = vadd.f32 %v10881_v8, %v4537_v33 }
0x1582   :  { %4549 = vmax.xlane.f32.xlu0 %v4548_v52 }
0x1583   :  { %v4551_v53 = vsel %vm1172_vm3, %v4541_v16, -inf }
0x1584   :  { %4552 = vmax.xlane.f32.xlu1 %v4551_v53 }
0x15fe   :  { %v4544_v54 = vpop.xlane.xlu0 %4543 }
0x15ff   :  { %v4554_v6 = vsub.f32 %v4538_v1, %v4544_v54 }
0x1600   :  { %v4547_v56 = vpop.xlane.xlu1 %4546 }
0x1601   :  { %v4558_v17 = vmul.f32 1.442695, %v4554_v6  ;;  %v4555_v29 = vsub.f32 %v4539_v61, %v4547_v56 }
0x1603   :  { %9401 = vpow2.f32 %v4558_v17  ;;  %v4560_v19 = vmul.f32 1.442695, %v4555_v29 }
0x1605   :  { %9403 = vpow2.f32 %v4560_v19 }
0x160d   :  { %v9402_v22 = vpop.eup %9401 }
0x160e   :  { %v4566_v55 = vsel %vm1172_vm3, %v9402_v22, 0.0 }
0x160f   :  { %v9404_v31 = vpop.eup %9403  ;;  %v4550_v7 = vpop.xlane.xlu0 %4549  ;;  %4567 = vadd.xlane.f32.xlu0 %v4566_v55 }
0x1610   :  { %v4556_v62 = vsub.f32 %v4540_v36, %v4550_v7  ;;  %v4569_v26 = vsel %vm1172_vm3, %v9404_v31, 0.0 }
0x1611   :  { %4570 = vadd.xlane.f32.xlu1 %v4569_v26  ;;  %v4553_v39 = vpop.xlane.xlu1 %4552 }
0x1612   :  { %v4562_v15 = vmul.f32 1.442695, %v4556_v62  ;;  %v4557_v27 = vsub.f32 %v4541_v16, %v4553_v39 }
0x1614   :  { %9405 = vpow2.f32 %v4562_v15  ;;  %v4564_v49 = vmul.f32 1.442695, %v4557_v27 }
0x1616   :  { %9407 = vpow2.f32 %v4564_v49 }
0x161e   :  { %v9406_v21 = vpop.eup %9405 }
0x161f   :  { %v4572_v63 = vsel %vm1172_vm3, %v9406_v21, 0.0 }
0x1620   :  { %4573 = vadd.xlane.f32.xlu0 %v4572_v63  ;;  %v9408_v35 = vpop.eup %9407 }
0x1621   :  { %v4575_v50 = vsel %vm1172_vm3, %v9408_v35, 0.0 }
0x1622   :  { %4832 = vrot.lane.b32.xlu1 %v10821_v9, %s9519_s27 }
0x1626   :  { %4777 = vrot.lane.b32.xlu1 %v10829_v12, %s9519_s27 }
0x1636   :  { %4780 = vrot.lane.b32.xlu0 %v10819_v14, %s9519_s27 }
0x163a   :  { %4884 = vrot.lane.b32.xlu0 %v10846_v46, %s9519_s27 }
0x163e   :  { %4881 = vrot.lane.b32.xlu0 %v10858_v18, %s9519_s27 }
0x164a   :  { %4576 = vadd.xlane.f32.xlu1 %v4575_v50 }
0x165b   :  { %4829 = vrot.lane.b32.xlu1 %v10831_v24, %s9519_s27 }
0x165f   :  { %4936 = vrot.lane.b32.xlu1 %v10848_v58, %s9519_s27 }
0x1663   :  { %4933 = vrot.lane.b32.xlu1 %v10862_v25, %s9519_s27 }
0x169c   :  { %v4568_v1 = vpop.xlane.xlu0 %4567 }
0x169d   :  { %9409 = vrcp.f32 %v4568_v1 }
0x169e   :  { %v4571_v0 = vpop.xlane.xlu1 %4570 }
0x169f   :  { %9411 = vrcp.f32 %v4571_v0 }
0x16a2   :  { %v4833_v51 = vpop.permute.xlu1 %4832 }
0x16a6   :  { %v4778_v16 = vpop.permute.xlu1 %4777 }
0x16a7   :  { %v9410_v38 = vpop.eup %9409 }
0x16a8   :  { %v4582_v61 = vmul.f32 %v9410_v38, %v9402_v22  ;;  %v4838_v22 = vsel %vm979_vm1, %v4833_v51, 0 }
0x16a9   :  { %v9412_v41 = vpop.eup %9411 }
0x16aa   :  { %v4583_v20 = vmul.f32 %v9412_v41, %v9404_v31  ;;  %v4586_v3 = vpack.c.bf16 %v4582_v61, %v4582_v61 }
0x16ac   :  { %8732 = vmatmul.mubr.msk.bf16.vlgmr.msra.gmra.mrb[112].mxu0 %vm1172_vm3, %v4586_v3  ;;  %v4587_v10 = vpack.c.bf16 %v4583_v20, %v4583_v20 }
0x16ad   :  { %v4574_v33 = vpop.xlane.xlu0 %4573  ;;  %8742 = vmatpush3.bf16.msra.mxu0 %v4686_v44  ;;  %8743 = vmatprep.mubr.msk.bf16.mxu0 %vm9518_vm0, %v9517_v40 }
0x16ae   :  { %9413 = vrcp.f32 %v4574_v33  ;;  %8738 = vmatmul.mubr.msk.bf16.vlgmr.msra.gmra.mrb[112].mxu1 %vm1172_vm3, %v4587_v10  ;;  %8753 = vmatprep.subr.bf16.mxu0 %v9517_v40 }
0x16af   :  { %8748 = vmatpush3.bf16.msra.mxu1 %v4732_v48  ;;  %8749 = vmatprep.mubr.msk.bf16.mxu1 %vm9518_vm0, %v9517_v40 }
0x16b0   :  { %8759 = vmatprep.subr.bf16.mxu1 %v9517_v40 }
0x16b1   :  { %v4781_v30 = vpop.permute.xlu0 %4780 }
0x16b2   :  { %v4786_v5 = vsel %vm979_vm1, %v4781_v30, 0 }
0x16b5   :  { %v4885_v52 = vpop.permute.xlu0 %4884 }
0x16b6   :  { %v4890_v53 = vsel %vm979_vm1, %v4885_v52, 0 }
0x16b8   :  { %v9414_v4 = vpop.eup %9413 }
0x16b9   :  { %v4584_v57 = vmul.f32 %v9414_v4, %v9406_v21  ;;  %v4882_v54 = vpop.permute.xlu0 %4881 }
0x16bb   :  { %v4588_v36 = vpack.c.bf16 %v4584_v57, %v4584_v57 }
0x16bd   :  { %8744 = vmatmul.mubr.msk.bf16.vlgmr.msra.gmra.mrb[116].mxu0 %vm1172_vm3, %v4588_v36 }
0x16be   :  { %8754 = vmatpush3.bf16.xpose.msra.mxu0 %v4786_v5  ;;  %8755 = vmatprep.mubr.msk.bf16.mxu0 %vm9518_vm0, %v9517_v40 }
0x16bf   :  { %8765 = vmatprep.subr.bf16.mxu0 %v9517_v40 }
0x16c5   :  { %8756 = vmatmul.mubr.msk.bf16.vlgmr.msra.gmra.mrb[120].mxu0 %vm979_vm1, %v4778_v16 }
0x16c6   :  { %8766 = vmatpush3.bf16.xpose.msra.mxu0 %v4890_v53  ;;  %8767 = vmatprep.mubr.msk.bf16.mxu0 %vm9518_vm0, %v9517_v40 }
0x16c7   :  { %8777 = vmatprep.subr.bf16.mxu0 %v9517_v40 }
0x16cd   :  { %8768 = vmatmul.mubr.msk.bf16.vlgmr.msra.gmra.mrb[124].mxu0 %vm979_vm1, %v4882_v54 }
0x16ce   :  { %8779 = vmatprep.mubr.msk.bf16.mxu0 %vm9518_vm0, %v9517_v40 }
0x16d7   :  { %v4577_v6 = vpop.xlane.xlu1 %4576 }
0x16d8   :  { %9415 = vrcp.f32 %v4577_v6 }
0x16db   :  { %v4830_v19 = vpop.permute.xlu1 %4829 }
0x16df   :  { %v4937_v55 = vpop.permute.xlu1 %4936 }
0x16e0   :  { %v4942_v31 = vsel %vm979_vm1, %v4937_v55, 0 }
0x16e2   :  { %v9416_v56 = vpop.eup %9415 }
0x16e3   :  { %v4585_v17 = vmul.f32 %v9416_v56, %v9408_v35  ;;  %v4934_v7 = vpop.permute.xlu1 %4933 }
0x16e5   :  { %v4589_v29 = vpack.c.bf16 %v4585_v17, %v4585_v17 }
0x16e7   :  { %8750 = vmatmul.mubr.msk.bf16.vlgmr.msra.gmra.mrb[116].mxu1 %vm1172_vm3, %v4589_v29 }
0x16e8   :  { %8760 = vmatpush3.bf16.xpose.msra.mxu1 %v4838_v22  ;;  %8761 = vmatprep.mubr.msk.bf16.mxu1 %vm9518_vm0, %v9517_v40 }
0x16e9   :  { %8771 = vmatprep.subr.bf16.mxu1 %v9517_v40 }
0x16ef   :  { %8762 = vmatmul.mubr.msk.bf16.vlgmr.msra.gmra.mrb[120].mxu1 %vm979_vm1, %v4830_v19 }
0x16f0   :  { %8772 = vmatpush3.bf16.xpose.msra.mxu1 %v4942_v31  ;;  %8773 = vmatprep.mubr.msk.bf16.mxu1 %vm9518_vm0, %v9517_v40 }
0x16f1   :  { %8783 = vmatprep.subr.bf16.mxu1 %v9517_v40 }
0x16f7   :  { %8774 = vmatmul.mubr.msk.bf16.vlgmr.msra.gmra.mrb[124].mxu1 %vm979_vm1, %v4934_v7 }
0x16f8   :  { %8785 = vmatprep.mubr.msk.bf16.mxu1 %vm9518_vm0, %v9517_v40 }
0x177f   :  { %v10957_v62 = vpop.f32.mrb[112].mxu0 }
0x1780   :  { %v8733_v26 = vpop.f32.mrb[113].mxu0 }
0x1781   :  { %v4633_v15 = vpop.f32.mrb[114].mxu0  ;;  %v10959_v21 = vpop.f32.mrb[112].mxu1 }
0x1782   :  { %v4774_v63 = vpack.c.bf16 %v10959_v21, %v10957_v62  ;;  %v8734_v39 = vpop.f32.mrb[115].mxu0  ;;  %v8739_v27 = vpop.f32.mrb[113].mxu1 }
0x1783   :  { %v4679_v49 = vpop.f32.mrb[114].mxu1 }
0x1784   :  { %v8740_v35 = vpop.f32.mrb[115].mxu1 }
0x1790   :  { %v10963_v50 = vpop.f32.mrb[116].mxu0 }
0x1791   :  { %v8745_v1 = vpop.f32.mrb[117].mxu0 }
0x1792   :  { %v4725_v0 = vpop.f32.mrb[118].mxu0 }
0x1793   :  { %v8746_v38 = vpop.f32.mrb[119].mxu0 }
0x1798   :  { %v4822_v61 = vpop.f32.mrb[120].mxu0 }
0x1799   :  { %v4984_v41 = vmul.f32 0.17677669, %v4822_v61  ;;  %v8757_v20 = vpop.f32.mrb[121].mxu0 }
0x179a   :  { %v4825_v3 = vpop.f32.mrb[122].mxu0 }
0x179b   :  { %v4988_v44 = vadd.f32 %v10881_v8, %v4984_v41  ;;  %v8758_v10 = vpop.f32.mrb[123].mxu0 }
0x179d   :  { %v4992_v33 = vsel %vm1172_vm3, %v4988_v44, -inf }
0x179e   :  { %4993 = vmax.xlane.f32.xlu0 %v4992_v33 }
0x17a0   :  { %v4926_v48 = vpop.f32.mrb[124].mxu0 }
0x17a1   :  { %v4986_v4 = vmul.f32 0.17677669, %v4926_v48  ;;  %v8769_v57 = vpop.f32.mrb[125].mxu0 }
0x17a2   :  { %v4929_v30 = vpop.f32.mrb[126].mxu0 }
0x17a3   :  { %v4990_v36 = vadd.f32 %v10881_v8, %v4986_v4  ;;  %v8770_v5 = vpop.f32.mrb[127].mxu0 }
0x17a5   :  { %v4998_v51 = vsel %vm1172_vm3, %v4990_v36, -inf }
0x17a6   :  { %4999 = vmax.xlane.f32.xlu0 %v4998_v51 }
0x17ba   :  { %v10969_v52 = vpop.f32.mrb[116].mxu1 }
0x17bb   :  { %v4775_v16 = vpack.c.bf16 %v10969_v52, %v10963_v50  ;;  %v8751_v53 = vpop.f32.mrb[117].mxu1 }
0x17bc   :  { %v4771_v54 = vpop.f32.mrb[118].mxu1 }
0x17bd   :  { %v8752_v6 = vpop.f32.mrb[119].mxu1 }
0x17c2   :  { %v4874_v56 = vpop.f32.mrb[120].mxu1 }
0x17c3   :  { %v4985_v17 = vmul.f32 0.17677669, %v4874_v56  ;;  %v8763_v29 = vpop.f32.mrb[121].mxu1 }
0x17c4   :  { %v4877_v19 = vpop.f32.mrb[122].mxu1 }
0x17c5   :  { %v4989_v22 = vadd.f32 %v10881_v8, %v4985_v17  ;;  %v8764_v55 = vpop.f32.mrb[123].mxu1 }
0x17c7   :  { %v4995_v31 = vsel %vm1172_vm3, %v4989_v22, -inf }
0x17c8   :  { %4996 = vmax.xlane.f32.xlu1 %v4995_v31 }
0x17ca   :  { %v4978_v7 = vpop.f32.mrb[124].mxu1 }
0x17cb   :  { %v4987_v26 = vmul.f32 0.17677669, %v4978_v7  ;;  %v8775_v15 = vpop.f32.mrb[125].mxu1 }
0x17cc   :  { %v4981_v39 = vpop.f32.mrb[126].mxu1 }
0x17cd   :  { %v4991_v27 = vadd.f32 %v10881_v8, %v4987_v26  ;;  %v8776_v49 = vpop.f32.mrb[127].mxu1 }
0x17cf   :  { %v5001_v35 = vsel %vm1172_vm3, %v4991_v27, -inf }
0x17d0   :  { %5002 = vmax.xlane.f32.xlu0 %v5001_v35 }
0x182b   :  { %v4994_v1 = vpop.xlane.xlu0 %4993 }
0x182c   :  { %v5004_v0 = vsub.f32 %v4988_v44, %v4994_v1 }
0x182e   :  { %v5008_v38 = vmul.f32 1.442695, %v5004_v0 }
0x1830   :  { %9417 = vpow2.f32 %v5008_v38 }
0x1833   :  { %v5000_v61 = vpop.xlane.xlu0 %4999 }
0x1834   :  { %v5006_v41 = vsub.f32 %v4990_v36, %v5000_v61 }
0x1836   :  { %v5012_v20 = vmul.f32 1.442695, %v5006_v41 }
0x1838   :  { %9419 = vpow2.f32 %v5012_v20 }
0x183a   :  { %v9418_v3 = vpop.eup %9417 }
0x183b   :  { %v5016_v10 = vsel %vm1172_vm3, %v9418_v3, 0.0 }
0x183c   :  { %5017 = vadd.xlane.f32.xlu0 %v5016_v10 }
0x1842   :  { %v9420_v33 = vpop.eup %9419 }
0x1843   :  { %v5022_v48 = vsel %vm1172_vm3, %v9420_v33, 0.0 }
0x1844   :  { %5023 = vadd.xlane.f32.xlu0 %v5022_v48 }
0x1855   :  { %v4997_v4 = vpop.xlane.xlu1 %4996 }
0x1856   :  { %v5005_v57 = vsub.f32 %v4989_v22, %v4997_v4 }
0x1858   :  { %v5010_v30 = vmul.f32 1.442695, %v5005_v57 }
0x185a   :  { %5041 = vrot.lane.b32.xlu0 %v10855_v23, %s9519_s27  ;;  %9421 = vpow2.f32 %v5010_v30 }
0x185d   :  { %v5003_v5 = vpop.xlane.xlu0 %5002 }
0x185e   :  { %5374 = vrot.lane.b32.xlu0 %v10819_v14, %s9520_s4  ;;  %v5007_v51 = vsub.f32 %v4991_v27, %v5003_v5 }
0x1860   :  { %v5014_v53 = vmul.f32 1.442695, %v5007_v51 }
0x1862   :  { %5424 = vrot.lane.b32.xlu0 %v10821_v9, %s9520_s4  ;;  %9423 = vpow2.f32 %v5014_v53 }
0x1864   :  { %v9422_v44 = vpop.eup %9421 }
0x1865   :  { %v5019_v36 = vsel %vm1172_vm3, %v9422_v44, 0.0 }
0x1866   :  { %5474 = vrot.lane.b32.xlu0 %v10846_v46, %s9520_s4  ;;  %5020 = vadd.xlane.f32.xlu1 %v5019_v36 }
0x186a   :  { %5472 = vrot.lane.b32.xlu0 %v10858_v18, %s9520_s4 }
0x186c   :  { %v9424_v54 = vpop.eup %9423 }
0x186d   :  { %v5025_v6 = vsel %vm1172_vm3, %v9424_v54, 0.0 }
0x1877   :  { %5090 = vrot.lane.b32.xlu1 %v10860_v28, %s9519_s27 }
0x187b   :  { %5139 = vrot.lane.b32.xlu1 %v10913_v13, %s9519_s27 }
0x189f   :  { %5026 = vadd.xlane.f32.xlu1 %v5025_v6  ;;  %v9185_v6 = vld [vmem:[%s11647_s8 + $0x50] sm:$0xff]  }
0x18b0   :  { %5188 = vrot.lane.b32.xlu1 %v10917_v11, %s9519_s27 }
0x18b4   :  { %5372 = vrot.lane.b32.xlu1 %v10829_v12, %s9520_s4 }
0x18b8   :  { %5422 = vrot.lane.b32.xlu1 %v10831_v24, %s9520_s4 }
0x18bc   :  { %5524 = vrot.lane.b32.xlu1 %v10848_v58, %s9520_s4 }
0x18c0   :  { %5522 = vrot.lane.b32.xlu1 %v10862_v25, %s9520_s4 }
0x18c9   :  { %v5018_v56 = vpop.xlane.xlu0 %5017 }
0x18ca   :  { %9425 = vrcp.f32 %v5018_v56  ;;  %v9186_v56 = vld [vmem:[%s11647_s8 + $0x58] sm:$0xff]  }
0x18d1   :  { %v5024_v17 = vpop.xlane.xlu0 %5023 }
0x18d2   :  { %9427 = vrcp.f32 %v5024_v17  ;;  %v9187_v17 = vld [vmem:[%s11647_s8 + $0x40] sm:$0xff]  }
0x18d4   :  { %v9426_v29 = vpop.eup %9425 }
0x18d5   :  { %v5032_v19 = vmul.f32 %v9426_v29, %v9418_v3  ;;  %v5042_v22 = vpop.permute.xlu0 %5041 }
0x18d6   :  { %v5047_v55 = vsel %vm1224_vm2, %v5042_v22, 0 }
0x18d7   :  { %8778 = vmatpush3.bf16.msra.mxu0 %v5047_v55  ;;  %v5036_v31 = vpack.c.bf16 %v5032_v19, %v5032_v19 }
0x18d8   :  { %8789 = vmatprep.subr.bf16.mxu0 %v9517_v40 }
0x18d9   :  { %v5375_v48 = vpop.permute.xlu0 %5374 }
0x18da   :  { %8780 = vmatmul.mubr.msk.bf16.vlgmr.msra.gmra.mrb[128].mxu0 %vm1172_vm3, %v5036_v31  ;;  %v5380_v57 = vsel %vm979_vm1, %v5375_v48, 0 }
0x18db   :  { %8791 = vmatprep.mubr.msk.bf16.mxu0 %vm9518_vm0, %v9517_v40 }
0x18dc   :  { %v9428_v26 = vpop.eup %9427 }
0x18dd   :  { %v5034_v27 = vmul.f32 %v9428_v26, %v9420_v33 }
0x18df   :  { %v5038_v0 = vpack.c.bf16 %v5034_v27, %v5034_v27 }
0x18f3   :  { %v5021_v7 = vpop.xlane.xlu1 %5020 }
0x18f4   :  { %9429 = vrcp.f32 %v5021_v7 }
0x18f7   :  { %v5091_v15 = vpop.permute.xlu1 %5090 }
0x18f8   :  { %v5096_v39 = vsel %vm1224_vm2, %v5091_v15, 0 }
0x18f9   :  { %8784 = vmatpush3.bf16.msra.mxu1 %v5096_v39 }
0x18fa   :  { %8795 = vmatprep.subr.bf16.mxu1 %v9517_v40 }
0x18fb   :  { %v5140_v49 = vpop.permute.xlu1 %5139 }
0x18fc   :  { %v5145_v35 = vsel %vm1224_vm2, %v5140_v49, 0 }
0x18fd   :  { %8790 = vmatpush3.bf16.msra.mxu0 %v5145_v35 }
0x18fe   :  { %v9430_v1 = vpop.eup %9429  ;;  %8801 = vmatprep.subr.bf16.mxu0 %v9185_v6 }
0x18ff   :  { %v5033_v38 = vmul.f32 %v9430_v1, %v9422_v44  ;;  %v5425_v44 = vpop.permute.xlu0 %5424 }
0x1900   :  { %8792 = vmatmul.mubr.msk.bf16.vlgmr.msra.gmra.mrb[132].mxu0 %vm1172_vm3, %v5038_v0  ;;  %v5430_v5 = vsel %vm979_vm1, %v5425_v44, 0 }
0x1901   :  { %v5037_v61 = vpack.c.bf16 %v5033_v38, %v5033_v38  ;;  %8802 = vmatpush3.bf16.msra.mxu0 %v9185_v6 }
0x1902   :  { %8803 = vmatprep.subr.bf16.mxu0 %v9186_v56 }
0x1903   :  { %8786 = vmatmul.mubr.msk.bf16.vlgmr.msra.gmra.mrb[128].mxu1 %vm1172_vm3, %v5037_v61  ;;  %v5475_v44 = vpop.permute.xlu0 %5474 }
0x1904   :  { %8797 = vmatprep.mubr.msk.bf16.mxu1 %vm9518_vm0, %v9517_v40  ;;  %v5480_v62 = vsel %vm979_vm1, %v5475_v44, 0 }
0x1905   :  { %8804 = vmatpush3.bf16.msra.mxu0 %v9186_v56 }
0x1906   :  { %8809 = vmatprep.subr.bf16.mxu0 %v9187_v17 }
0x1907   :  { %v5473_v50 = vpop.permute.xlu0 %5472 }
0x192c   :  { %v5027_v41 = vpop.xlane.xlu1 %5026 }
0x192d   :  { %9431 = vrcp.f32 %v5027_v41  ;;  %v9188_v41 = vld [vmem:[%s11647_s8 + $0x48] sm:$0xff]  }
0x1930   :  { %v5189_v20 = vpop.permute.xlu1 %5188 }
0x1931   :  { %v5194_v3 = vsel %vm1224_vm2, %v5189_v20, 0 }
0x1932   :  { %8796 = vmatpush3.bf16.msra.mxu1 %v5194_v3 }
0x1933   :  { %8817 = vmatprep.subr.bf16.mxu1 %v9517_v40 }
0x1934   :  { %v5373_v30 = vpop.permute.xlu1 %5372 }
0x1937   :  { %v9432_v10 = vpop.eup %9431 }
0x1938   :  { %v5035_v33 = vmul.f32 %v9432_v10, %v9424_v54  ;;  %v5423_v36 = vpop.permute.xlu1 %5422 }
0x193a   :  { %v5039_v4 = vpack.c.bf16 %v5035_v33, %v5035_v33 }
0x193c   :  { %8798 = vmatmul.mubr.msk.bf16.vlgmr.msra.gmra.mrb[132].mxu1 %vm1172_vm3, %v5039_v4  ;;  %v5525_v51 = vpop.permute.xlu1 %5524 }
0x193d   :  { %8818 = vmatpush3.bf16.xpose.msra.mxu1 %v5380_v57  ;;  %8819 = vmatprep.mubr.msk.bf16.mxu1 %vm9518_vm0, %v9517_v40  ;;  %v5530_v53 = vsel %vm979_vm1, %v5525_v51, 0 }
0x193e   :  { %8823 = vmatprep.subr.bf16.mxu1 %v9517_v40 }
0x1940   :  { %v5523_v54 = vpop.permute.xlu1 %5522 }
0x1944   :  { %8820 = vmatmul.mubr.msk.bf16.vlgmr.msra.gmra.mrb[136].mxu1 %vm979_vm1, %v5373_v30 }
0x1945   :  { %8824 = vmatpush3.bf16.xpose.msra.mxu1 %v5430_v5  ;;  %8825 = vmatprep.mubr.msk.bf16.mxu1 %vm9518_vm0, %v9517_v40 }
0x1946   :  { %8835 = vmatprep.subr.bf16.mxu1 %v9517_v40 }
0x194c   :  { %8826 = vmatmul.mubr.msk.bf16.vlgmr.msra.gmra.mrb[140].mxu1 %vm979_vm1, %v5423_v36 }
0x194d   :  { %8836 = vmatpush3.bf16.xpose.msra.mxu1 %v5530_v53  ;;  %8837 = vmatprep.mubr.msk.bf16.mxu1 %vm9518_vm0, %v9517_v40 }
0x194e   :  { %8847 = vmatprep.subr.bf16.mxu1 %v9517_v40 }
0x1954   :  { %8838 = vmatmul.mubr.msk.bf16.vlgmr.msra.gmra.mrb[144].mxu1 %vm979_vm1, %v5523_v54 }
0x1955   :  { %8849 = vmatprep.mubr.msk.bf16.mxu1 %vm9518_vm0, %v9517_v40 }
0x19ad   :  { %v5083_v29 = vpop.f32.mrb[128].mxu0 }
0x19ae   :  { %v8781_v19 = vpop.f32.mrb[129].mxu0 }
0x19af   :  { %v5086_v22 = vpop.f32.mrb[130].mxu0 }
0x19b0   :  { %v8782_v55 = vpop.f32.mrb[131].mxu0 }
0x19d3   :  { %v5181_v31 = vpop.f32.mrb[132].mxu0 }
0x19d4   :  { %v8793_v7 = vpop.f32.mrb[133].mxu0 }
0x19d5   :  { %v5184_v26 = vpop.f32.mrb[134].mxu0 }
0x19d6   :  { %v5132_v15 = vpop.f32.mrb[128].mxu1  ;;  %v8794_v39 = vpop.f32.mrb[135].mxu0 }
0x19d7   :  { %v5236_v27 = vpack.c.bf16 %v5132_v15, %v5083_v29  ;;  %v8787_v49 = vpop.f32.mrb[129].mxu1 }
0x19d8   :  { %v5135_v35 = vpop.f32.mrb[130].mxu1 }
0x19d9   :  { %v8788_v1 = vpop.f32.mrb[131].mxu1  ;;  %8805 = vmatprep.mubr.msk.bf16.mxu0 %vm979_vm1, %v5236_v27 }
0x1a0f   :  { %v5230_v0 = vpop.f32.mrb[132].mxu1 }
0x1a10   :  { %v5237_v38 = vpack.c.bf16 %v5230_v0, %v5181_v31  ;;  %v8799_v61 = vpop.f32.mrb[133].mxu1 }
0x1a11   :  { %v5233_v20 = vpop.f32.mrb[134].mxu1 }
0x1a12   :  { %v8800_v3 = vpop.f32.mrb[135].mxu1  ;;  %8806 = vmatmul.mubr.msk.bf16.vlgmr.msra.gmra.mrb[136].mxu0 %vm979_vm1, %v5237_v38 }
0x1a13   :  { %8810 = vmatpush3.bf16.msra.mxu0 %v9187_v17  ;;  %8813 = vmatprep.mubr.msk.bf16.mxu0 %vm979_vm1, %v4774_v63 }
0x1a14   :  { %8811 = vmatprep.subr.bf16.mxu0 %v9188_v41 }
0x1a17   :  { %8812 = vmatpush3.bf16.msra.mxu0 %v9188_v41  ;;  %v5416_v10 = vpop.f32.mrb[136].mxu1 }
0x1a18   :  { %v5572_v33 = vmul.f32 0.17677669, %v5416_v10  ;;  %v8821_v48 = vpop.f32.mrb[137].mxu1  ;;  %8829 = vmatprep.subr.bf16.mxu0 %v9517_v40 }
0x1a19   :  { %v5419_v4 = vpop.f32.mrb[138].mxu1 }
0x1a1a   :  { %v5576_v57 = vadd.f32 %v10881_v8, %v5572_v33  ;;  %v8822_v30 = vpop.f32.mrb[139].mxu1 }
0x1a1c   :  { %v5580_v36 = vsel %vm1172_vm3, %v5576_v57, -inf }
0x1a1d   :  { %5581 = vmax.xlane.f32.xlu0 %v5580_v36 }
0x1a1e   :  { %8814 = vmatmul.mubr.msk.bf16.vlgmr.msra.gmra.mrb[136].mxu0 %vm979_vm1, %v4775_v16 }
0x1a1f   :  { %v5466_v21 = vpop.f32.mrb[140].mxu1  ;;  %8831 = vmatprep.mubr.msk.bf16.mxu0 %vm9518_vm0, %v9517_v40 }
0x1a20   :  { %v5573_v63 = vmul.f32 0.17677669, %v5466_v21  ;;  %8830 = vmatpush3.bf16.xpose.msra.mxu0 %v5480_v62  ;;  %v8827_v5 = vpop.f32.mrb[141].mxu1 }
0x1a21   :  { %v5469_v51 = vpop.f32.mrb[142].mxu1  ;;  %8841 = vmatprep.subr.bf16.mxu0 %v9517_v40 }
0x1a22   :  { %v5577_v53 = vadd.f32 %v10881_v8, %v5573_v63  ;;  %v8828_v54 = vpop.f32.mrb[143].mxu1 }
0x1a24   :  { %v5583_v6 = vsel %vm1172_vm3, %v5577_v53, -inf }
0x1a25   :  { %5584 = vmax.xlane.f32.xlu1 %v5583_v6 }
0x1a27   :  { %8832 = vmatmul.mubr.msk.bf16.vlgmr.msra.gmra.mrb[140].mxu0 %vm979_vm1, %v5473_v50  ;;  %v5566_v52 = vpop.f32.mrb[144].mxu1 }
0x1a28   :  { %v8839_v16 = vpop.f32.mrb[145].mxu1  ;;  %8843 = vmatprep.mubr.msk.bf16.mxu0 %vm9518_vm0, %v9517_v40  ;;  %v5575_v27 = vmul.f32 0.17677669, %v5566_v52 }
0x1a29   :  { %v5569_v56 = vpop.f32.mrb[146].mxu1 }
0x1a2a   :  { %v8840_v17 = vpop.f32.mrb[147].mxu1  ;;  %v5579_v61 = vadd.f32 %v10881_v8, %v5575_v27 }
0x1a2c   :  { %v5589_v20 = vsel %vm1172_vm3, %v5579_v61, -inf }
0x1aaa   :  { %v5582_v7 = vpop.xlane.xlu0 %5581 }
0x1aab   :  { %v5592_v26 = vsub.f32 %v5576_v57, %v5582_v7 }
0x1aad   :  { %v5596_v15 = vmul.f32 1.442695, %v5592_v26 }
0x1ab2   :  { %v5585_v29 = vpop.xlane.xlu1 %5584 }
0x1ab3   :  { %v5593_v19 = vsub.f32 %v5577_v53, %v5585_v29 }
0x1ab5   :  { %v5598_v22 = vmul.f32 1.442695, %v5593_v19 }
0x1ab7   :  { %9433 = vpow2.f32 %v5598_v22 }
0x1ab8   :  { %9435 = vpow2.f32 %v5596_v15 }
0x1ac1   :  { %v9434_v55 = vpop.eup %9433 }
0x1ac2   :  { %v5607_v31 = vsel %vm1172_vm3, %v9434_v55, 0.0  ;;  %v9436_v3 = vpop.eup %9435 }
0x1ac3   :  { %5608 = vadd.xlane.f32.xlu1 %v5607_v31  ;;  %v5604_v10 = vsel %vm1172_vm3, %v9436_v3, 0.0 }
0x1afa   :  { %v5516_v39 = vpop.f32.mrb[140].mxu0 }
0x1afb   :  { %v5574_v49 = vmul.f32 0.17677669, %v5516_v39  ;;  %v8833_v35 = vpop.f32.mrb[141].mxu0 }
0x1afc   :  { %v5519_v1 = vpop.f32.mrb[142].mxu0 }
0x1afd   :  { %v5578_v0 = vadd.f32 %v10881_v8, %v5574_v49  ;;  %v8834_v38 = vpop.f32.mrb[143].mxu0  ;;  %v9189_v1 = vld [vmem:[%s11647_s8 + $0x60] sm:$0xff]  }
0x1aff   :  { %v5586_v41 = vsel %vm1172_vm3, %v5578_v0, -inf }
0x1b00   :  { %5587 = vmax.xlane.f32.xlu0 %v5586_v41 }
0x1b04   :  { %5590 = vmax.xlane.f32.xlu0 %v5589_v20 }
0x1b08   :  { %5605 = vadd.xlane.f32.xlu0 %v5604_v10 }
0x1b8d   :  { %v5588_v33 = vpop.xlane.xlu0 %5587 }
0x1b8e   :  { %v5594_v48 = vsub.f32 %v5578_v0, %v5588_v33  ;;  %v9190_v0 = vld [vmem:[%s11647_s8 + $0x68] sm:$0xff]  }
0x1b90   :  { %v5600_v4 = vmul.f32 1.442695, %v5594_v48 }
0x1b91   :  { %v5591_v57 = vpop.xlane.xlu0 %5590 }
0x1b92   :  { %9437 = vpow2.f32 %v5600_v4  ;;  %v5595_v30 = vsub.f32 %v5579_v61, %v5591_v57 }
0x1b94   :  { %v5602_v44 = vmul.f32 1.442695, %v5595_v30 }
0x1b96   :  { %9439 = vpow2.f32 %v5602_v44 }
0x1b9c   :  { %v9438_v36 = vpop.eup %9437 }
0x1b9d   :  { %v5610_v62 = vsel %vm1172_vm3, %v9438_v36, 0.0 }
0x1b9e   :  { %5611 = vadd.xlane.f32.xlu0 %v5610_v62 }
0x1ba0   :  { %v9440_v21 = vpop.eup %9439 }
0x1ba1   :  { %v5613_v63 = vsel %vm1172_vm3, %v9440_v21, 0.0 }
0x1ba2   :  { %5614 = vadd.xlane.f32.xlu1 %v5613_v63 }
0x1bb3   :  { %5676 = vrot.lane.b32.xlu1 %v10860_v28, %s9520_s4 }
0x1bb4   :  { %5628 = vrot.lane.b32.xlu0 %v10855_v23, %s9520_s4 }
0x1bb7   :  { %5724 = vrot.lane.b32.xlu1 %v10913_v13, %s9520_s4 }
0x1bb8   :  { %5895 = vrot.lane.b32.xlu0 %v10819_v14, %s11676_s23  ;;  %v5606_v14 = vpop.xlane.xlu0 %5605 }
0x1bb9   :  { %9441 = vrcp.f32 %v5606_v14 }
0x1bbb   :  { %5772 = vrot.lane.b32.xlu1 %v10917_v11, %s9520_s4 }
0x1bbc   :  { %5893 = vrot.lane.b32.xlu0 %v10829_v12, %s11676_s23  ;;  %v5609_v12 = vpop.xlane.xlu1 %5608 }
0x1bbd   :  { %9443 = vrcp.f32 %v5609_v12 }
0x1bbf   :  { %5945 = vrot.lane.b32.xlu1 %v10821_v9, %s11676_s23 }
0x1bc0   :  { %5995 = vrot.lane.b32.xlu0 %v10846_v46, %s11676_s23 }
0x1bc3   :  { %5943 = vrot.lane.b32.xlu1 %v10831_v24, %s11676_s23  ;;  %v9442_v9 = vpop.eup %9441 }
0x1bc4   :  { %5993 = vrot.lane.b32.xlu0 %v10858_v18, %s11676_s23  ;;  %v5620_v46 = vmul.f32 %v9442_v9, %v9436_v3 }
0x1bc7   :  { %6045 = vrot.lane.b32.xlu1 %v10848_v58, %s11676_s23  ;;  %v9444_v51 = vpop.eup %9443  ;;  %v5624_v58 = vpack.c.bf16 %v5620_v46, %v5620_v46 }
0x1bc8   :  { %v5621_v54 = vmul.f32 %v9444_v51, %v9434_v55 }
0x1bca   :  { %v5625_v52 = vpack.c.bf16 %v5621_v54, %v5621_v54 }
0x1bcb   :  { %6043 = vrot.lane.b32.xlu1 %v10862_v25, %s11676_s23 }
0x1c2b   :  { %v5612_v5 = vpop.xlane.xlu0 %5611 }
0x1c2c   :  { %9445 = vrcp.f32 %v5612_v5 }
0x1c2f   :  { %v5615_v53 = vpop.xlane.xlu1 %5614  ;;  %v5629_v24 = vpop.permute.xlu0 %5628 }
0x1c30   :  { %9447 = vrcp.f32 %v5615_v53  ;;  %v5634_v18 = vsel %vm1224_vm2, %v5629_v24, 0 }
0x1c31   :  { %8842 = vmatpush3.bf16.msra.mxu0 %v5634_v18 }
0x1c32   :  { %8853 = vmatprep.subr.bf16.mxu0 %v9517_v40 }
0x1c33   :  { %v5677_v25 = vpop.permute.xlu1 %5676  ;;  %v5896_v26 = vpop.permute.xlu0 %5895 }
0x1c34   :  { %v5682_v6 = vsel %vm1224_vm2, %v5677_v25, 0  ;;  %8844 = vmatmul.mubr.msk.bf16.vlgmr.msra.gmra.mrb[144].mxu0 %vm1172_vm3, %v5624_v58  ;;  %v5901_v39 = vsel %vm979_vm1, %v5896_v26, 0 }
0x1c35   :  { %8848 = vmatpush3.bf16.msra.mxu1 %v5682_v6  ;;  %8855 = vmatprep.mubr.msk.bf16.mxu0 %vm9518_vm0, %v9517_v40 }
0x1c36   :  { %v9446_v50 = vpop.eup %9445  ;;  %8859 = vmatprep.subr.bf16.mxu1 %v9517_v40 }
0x1c37   :  { %v5622_v16 = vmul.f32 %v9446_v50, %v9438_v36  ;;  %v5725_v56 = vpop.permute.xlu1 %5724  ;;  %v5894_v15 = vpop.permute.xlu0 %5893 }
0x1c38   :  { %v5730_v17 = vsel %vm1224_vm2, %v5725_v56, 0  ;;  %8850 = vmatmul.mubr.msk.bf16.vlgmr.msra.gmra.mrb[148].mxu1 %vm1172_vm3, %v5625_v52 }
0x1c39   :  { %8854 = vmatpush3.bf16.msra.mxu0 %v5730_v17  ;;  %v5626_v29 = vpack.c.bf16 %v5622_v16, %v5622_v16  ;;  %8861 = vmatprep.mubr.msk.bf16.mxu1 %vm9518_vm0, %v9517_v40 }
0x1c3a   :  { %v9448_v19 = vpop.eup %9447  ;;  %8865 = vmatprep.subr.bf16.mxu0 %v9189_v1 }
0x1c3b   :  { %v5623_v22 = vmul.f32 %v9448_v19, %v9440_v21  ;;  %v5773_v55 = vpop.permute.xlu1 %5772  ;;  %v5996_v27 = vpop.permute.xlu0 %5995 }
0x1c3c   :  { %v5778_v31 = vsel %vm1224_vm2, %v5773_v55, 0  ;;  %8856 = vmatmul.mubr.msk.bf16.vlgmr.msra.gmra.mrb[148].mxu0 %vm1172_vm3, %v5626_v29  ;;  %v6001_v49 = vsel %vm979_vm1, %v5996_v27, 0 }
0x1c3d   :  { %8860 = vmatpush3.bf16.msra.mxu1 %v5778_v31  ;;  %v5627_v7 = vpack.c.bf16 %v5623_v22, %v5623_v22  ;;  %8866 = vmatpush3.bf16.msra.mxu0 %v9189_v1 }
0x1c3e   :  { %8873 = vmatprep.subr.bf16.mxu1 %v9517_v40  ;;  %8867 = vmatprep.subr.bf16.mxu0 %v9190_v0 }
0x1c3f   :  { %v5994_v35 = vpop.permute.xlu0 %5993  ;;  %v5946_v57 = vpop.permute.xlu1 %5945 }
0x1c40   :  { %8862 = vmatmul.mubr.msk.bf16.vlgmr.msra.gmra.mrb[152].mxu1 %vm1172_vm3, %v5627_v7  ;;  %v5951_v5 = vsel %vm979_vm1, %v5946_v57, 0 }
0x1c41   :  { %8875 = vmatprep.mubr.msk.bf16.mxu1 %vm9518_vm0, %v9517_v40  ;;  %8868 = vmatpush3.bf16.msra.mxu0 %v9190_v0  ;;  %v9515_v0 = vld [vmem:[%s11646_s2] sm:$0xff] }
0x1c42   :  { %8879 = vmatprep.subr.bf16.mxu0 %v9517_v40 }
0x1c43   :  { %v5944_v12 = vpop.permute.xlu1 %5943 }
0x1c46   :  { %8874 = vmatpush3.bf16.xpose.msra.mxu1 %v5901_v39 }
0x1c47   :  { %8885 = vmatprep.subr.bf16.mxu1 %v9517_v40  ;;  %v6046_v51 = vpop.permute.xlu1 %6045 }
0x1c48   :  { %v6051_v53 = vsel %vm979_vm1, %v6046_v51, 0 }
0x1c4b   :  { %v6044_v50 = vpop.permute.xlu1 %6043 }
0x1c4d   :  { %8876 = vmatmul.mubr.msk.bf16.vlgmr.msra.gmra.mrb[156].mxu1 %vm979_vm1, %v5894_v15 }
0x1c4e   :  { %8886 = vmatpush3.bf16.xpose.msra.mxu1 %v6001_v49  ;;  %8887 = vmatprep.mubr.msk.bf16.mxu1 %vm9518_vm0, %v9517_v40 }
0x1c4f   :  { %8897 = vmatprep.subr.bf16.mxu1 %v9517_v40 }
0x1c55   :  { %8888 = vmatmul.mubr.msk.bf16.vlgmr.msra.gmra.mrb[160].mxu1 %vm979_vm1, %v5994_v35 }
0x1c56   :  { %8899 = vmatprep.mubr.msk.bf16.mxu1 %vm9518_vm0, %v9517_v40 }
0x1d07   :  { %v5670_v38 = vpop.f32.mrb[144].mxu0 }
0x1d08   :  { %v8845_v61 = vpop.f32.mrb[145].mxu0 }
0x1d09   :  { %v5673_v41 = vpop.f32.mrb[146].mxu0 }
0x1d0a   :  { %v8846_v20 = vpop.f32.mrb[147].mxu0 }
0x1d0b   :  { %v5718_v3 = vpop.f32.mrb[148].mxu1 }
0x1d0c   :  { %v5820_v10 = vpack.c.bf16 %v5718_v3, %v5670_v38  ;;  %v8851_v33 = vpop.f32.mrb[149].mxu1 }
0x1d0d   :  { %v5721_v48 = vpop.f32.mrb[150].mxu1 }
0x1d0e   :  { %v8852_v4 = vpop.f32.mrb[151].mxu1  ;;  %8869 = vmatprep.mubr.msk.bf16.mxu0 %vm979_vm1, %v5820_v10 }
0x1d0f   :  { %v5766_v30 = vpop.f32.mrb[148].mxu0 }
0x1d10   :  { %v8857_v44 = vpop.f32.mrb[149].mxu0 }
0x1d11   :  { %v5769_v36 = vpop.f32.mrb[150].mxu0 }
0x1d12   :  { %v8858_v62 = vpop.f32.mrb[151].mxu0 }
0x1d13   :  { %v5814_v21 = vpop.f32.mrb[152].mxu1 }
0x1d14   :  { %v5821_v63 = vpack.c.bf16 %v5814_v21, %v5766_v30  ;;  %v8863_v14 = vpop.f32.mrb[153].mxu1 }
0x1d15   :  { %v5817_v9 = vpop.f32.mrb[154].mxu1 }
0x1d16   :  { %v8864_v46 = vpop.f32.mrb[155].mxu1  ;;  %8870 = vmatmul.mubr.msk.bf16.vlgmr.msra.gmra.mrb[136].mxu0 %vm979_vm1, %v5821_v63 }
0x1d17   :  { %8880 = vmatpush3.bf16.xpose.msra.mxu0 %v5951_v5  ;;  %8881 = vmatprep.mubr.msk.bf16.mxu0 %vm9518_vm0, %v9517_v40 }
0x1d18   :  { %8891 = vmatprep.subr.bf16.mxu0 %v9517_v40 }
0x1d1e   :  { %8882 = vmatmul.mubr.msk.bf16.vlgmr.msra.gmra.mrb[152].mxu0 %vm979_vm1, %v5944_v12 }
0x1d1f   :  { %8892 = vmatpush3.bf16.xpose.msra.mxu0 %v6051_v53  ;;  %8893 = vmatprep.mubr.msk.bf16.mxu0 %vm9518_vm0, %v9517_v40 }
0x1d20   :  { %v5937_v24 = vpop.f32.mrb[156].mxu1  ;;  %8903 = vmatprep.subr.bf16.mxu0 %v9517_v40 }
0x1d21   :  { %v6093_v18 = vmul.f32 0.17677669, %v5937_v24  ;;  %v8877_v54 = vpop.f32.mrb[157].mxu1 }
0x1d22   :  { %v5940_v58 = vpop.f32.mrb[158].mxu1 }
0x1d23   :  { %v6097_v25 = vadd.f32 %v10881_v8, %v6093_v18  ;;  %v8878_v6 = vpop.f32.mrb[159].mxu1 }
0x1d25   :  { %v6101_v52 = vsel %vm1172_vm3, %v6097_v25, -inf }
0x1d26   :  { %6102 = vmax.xlane.f32.xlu0 %v6101_v52  ;;  %8894 = vmatmul.mubr.msk.bf16.vlgmr.msra.gmra.mrb[156].mxu0 %vm979_vm1, %v6044_v50 }
0x1d27   :  { %8905 = vmatprep.mubr.msk.bf16.mxu0 %vm9518_vm0, %v9517_v40 }
0x1d28   :  { %v6037_v16 = vpop.f32.mrb[160].mxu1 }
0x1d29   :  { %v6095_v56 = vmul.f32 0.17677669, %v6037_v16  ;;  %v8889_v17 = vpop.f32.mrb[161].mxu1 }
0x1d2a   :  { %v6040_v29 = vpop.f32.mrb[162].mxu1 }
0x1d2b   :  { %v6099_v19 = vadd.f32 %v10881_v8, %v6095_v56  ;;  %v8890_v22 = vpop.f32.mrb[163].mxu1 }
0x1d2d   :  { %v6107_v55 = vsel %vm1172_vm3, %v6099_v19, -inf }
0x1d2e   :  { %6108 = vmax.xlane.f32.xlu0 %v6107_v55 }
0x1db3   :  { %v6103_v31 = vpop.xlane.xlu0 %6102 }
0x1db4   :  { %v6113_v7 = vsub.f32 %v6097_v25, %v6103_v31 }
0x1db6   :  { %v6117_v15 = vmul.f32 1.442695, %v6113_v7 }
0x1db8   :  { %9449 = vpow2.f32 %v6117_v15 }
0x1dbb   :  { %v6109_v26 = vpop.xlane.xlu0 %6108 }
0x1dbc   :  { %v6115_v39 = vsub.f32 %v6099_v19, %v6109_v26 }
0x1dbe   :  { %v6121_v8 = vmul.f32 1.442695, %v6115_v39 }
0x1dc0   :  { %9451 = vpow2.f32 %v6121_v8 }
0x1dc2   :  { %v9450_v30 = vpop.eup %9449 }
0x1dc3   :  { %v6125_v44 = vsel %vm1172_vm3, %v9450_v30, 0.0 }
0x1dca   :  { %v9452_v36 = vpop.eup %9451 }
0x1dcb   :  { %v6131_v62 = vsel %vm1172_vm3, %v9452_v36, 0.0 }
0x1df1   :  { %v5987_v27 = vpop.f32.mrb[152].mxu0 }
0x1df2   :  { %v6094_v49 = vmul.f32 0.17677669, %v5987_v27  ;;  %v8883_v35 = vpop.f32.mrb[153].mxu0 }
0x1df3   :  { %v5990_v1 = vpop.f32.mrb[154].mxu0 }
0x1df4   :  { %v6098_v38 = vadd.f32 %v9515_v0, %v6094_v49  ;;  %v8884_v61 = vpop.f32.mrb[155].mxu0 }
0x1df6   :  { %v6104_v41 = vsel %vm1172_vm3, %v6098_v38, -inf }
0x1df7   :  { %6105 = vmax.xlane.f32.xlu1 %v6104_v41 }
0x1df9   :  { %v6087_v20 = vpop.f32.mrb[156].mxu0 }
0x1dfa   :  { %v6096_v3 = vmul.f32 0.17677669, %v6087_v20  ;;  %v8895_v10 = vpop.f32.mrb[157].mxu0  ;;  %v9191_v20 = vld [vmem:[%s11647_s8 + $0x70] sm:$0xff]  }
0x1dfb   :  { %v6090_v33 = vpop.f32.mrb[158].mxu0 }
0x1dfc   :  { %v6100_v48 = vadd.f32 %v9515_v0, %v6096_v3  ;;  %v8896_v4 = vpop.f32.mrb[159].mxu0 }
0x1dfe   :  { %v6110_v57 = vsel %vm1172_vm3, %v6100_v48, -inf }
0x1dff   :  { %6111 = vmax.xlane.f32.xlu0 %v6110_v57 }
0x1e03   :  { %6126 = vadd.xlane.f32.xlu0 %v6125_v44 }
0x1e07   :  { %6132 = vadd.xlane.f32.xlu0 %v6131_v62 }
0x1e08   :  { %6197 = vrot.lane.b32.xlu1 %v10860_v28, %s11676_s23 }
0x1e0c   :  { %6245 = vrot.lane.b32.xlu1 %v10913_v13, %s11676_s23 }
0x1e1d   :  { %6149 = vrot.lane.b32.xlu0 %v10855_v23, %s11676_s23 }
0x1e84   :  { %v6106_v21 = vpop.xlane.xlu1 %6105 }
0x1e85   :  { %v6114_v63 = vsub.f32 %v6098_v38, %v6106_v21 }
0x1e87   :  { %v6119_v14 = vmul.f32 1.442695, %v6114_v63  ;;  %v7863_v63 = vld [vmem:[%s11648_s9 + $0x1] ss:$0 sm:$0xff] }
0x1e88   :  { %v6198_v12 = vpop.permute.xlu1 %6197 }
0x1e89   :  { %9453 = vpow2.f32 %v6119_v14  ;;  %v6203_v9 = vsel %vm1224_vm2, %v6198_v12, 0 }
0x1e8a   :  { %8904 = vmatpush3.bf16.msra.mxu0 %v6203_v9 }
0x1e8b   :  { %8915 = vmatprep.subr.bf16.mxu0 %v9517_v40 }
0x1e8c   :  { %v6112_v5 = vpop.xlane.xlu0 %6111  ;;  %v6246_v50 = vpop.permute.xlu1 %6245 }
0x1e8d   :  { %v6116_v46 = vsub.f32 %v6100_v48, %v6112_v5  ;;  %v6251_v56 = vsel %vm1224_vm2, %v6246_v50, 0 }
0x1e8f   :  { %v6123_v51 = vmul.f32 1.442695, %v6116_v46 }
0x1e90   :  { %v6127_v28 = vpop.xlane.xlu0 %6126 }
0x1e91   :  { %9455 = vpow2.f32 %v6123_v51 }
0x1e92   :  { %9457 = vrcp.f32 %v6127_v28 }
0x1e93   :  { %v9454_v13 = vpop.eup %9453 }
0x1e94   :  { %v6133_v53 = vpop.xlane.xlu0 %6132  ;;  %v6128_v23 = vsel %vm1172_vm3, %v9454_v13, 0.0 }
0x1e95   :  { %6129 = vadd.xlane.f32.xlu1 %v6128_v23  ;;  %9459 = vrcp.f32 %v6133_v53 }
0x1e98   :  { %v6150_v24 = vpop.permute.xlu0 %6149 }
0x1e99   :  { %v6155_v18 = vsel %vm1224_vm2, %v6150_v24, 0  ;;  %v9198_v24 = vld [vmem:[%s11649_s12 + $0x10c] ss:$16 sps:$4 sm:$0xff]  }
0x1e9a   :  { %8898 = vmatpush3.bf16.msra.mxu1 %v6155_v18  ;;  %v9201_v18 = vld [vmem:[%s11649_s12 + $0x124] ss:$16 sps:$4 sm:$0xff]  }
0x1e9b   :  { %v9456_v54 = vpop.eup %9455  ;;  %8909 = vmatprep.subr.bf16.mxu1 %v9517_v40 }
0x1e9c   :  { %v9458_v58 = vpop.eup %9457  ;;  %v6134_v25 = vsel %vm1172_vm3, %v9456_v54, 0.0 }
0x1e9d   :  { %v6141_v6 = vmul.f32 %v9458_v58, %v9450_v30  ;;  %6135 = vadd.xlane.f32.xlu1 %v6134_v25  ;;  %v9199_v58 = vld [vmem:[%s11649_s12 + $0x120] ss:$16 sps:$4 sm:$0xff]   ;;  %v9202_v25 = vld [vmem:[%s11649_s12 + $0x128] ss:$16 sps:$4 sm:$0xff]  }
0x1e9f   :  { %v6145_v52 = vpack.c.bf16 %v6141_v6, %v6141_v6  ;;  %v9460_v16 = vpop.eup %9459 }
0x1ea0   :  { %v6143_v17 = vmul.f32 %v9460_v16, %v9452_v36 }
0x1ea1   :  { %8900 = vmatmul.mubr.msk.bf16.vlgmr.msra.gmra.mrb[164].mxu1 %vm1172_vm3, %v6145_v52 }
0x1ea2   :  { %8910 = vmatpush3.bf16.msra.mxu1 %v6251_v56  ;;  %8911 = vmatprep.mubr.msk.bf16.mxu1 %vm9518_vm0, %v9517_v40  ;;  %v6147_v29 = vpack.c.bf16 %v6143_v17, %v6143_v17 }
0x1ea9   :  { %8912 = vmatmul.mubr.msk.bf16.vlgmr.msra.gmra.mrb[168].mxu1 %vm1172_vm3, %v6147_v29 }
0x1eaa   :  { %6748 = vmatprep.mubr.bf16.mxu1 %v9516_v2 }
0x1eae   :  { %6293 = vrot.lane.b32.xlu1 %v10917_v11, %s11676_s23 }
0x1f22   :  { %v6130_v19 = vpop.xlane.xlu1 %6129 }
0x1f23   :  { %9461 = vrcp.f32 %v6130_v19 }
0x1f2a   :  { %v6136_v22 = vpop.xlane.xlu1 %6135 }
0x1f2b   :  { %9463 = vrcp.f32 %v6136_v22 }
0x1f2d   :  { %v9462_v55 = vpop.eup %9461 }
0x1f2e   :  { %v6142_v31 = vmul.f32 %v9462_v55, %v9454_v13  ;;  %v6294_v7 = vpop.permute.xlu1 %6293 }
0x1f2f   :  { %v6299_v15 = vsel %vm1224_vm2, %v6294_v7, 0 }
0x1f30   :  { %v6146_v26 = vpack.c.bf16 %v6142_v31, %v6142_v31 }
0x1f32   :  { %8906 = vmatmul.mubr.msk.bf16.vlgmr.msra.gmra.mrb[160].mxu0 %vm1172_vm3, %v6146_v26 }
0x1f33   :  { %8916 = vmatpush3.bf16.msra.mxu0 %v6299_v15  ;;  %8917 = vmatprep.mubr.msk.bf16.mxu0 %vm9518_vm0, %v9517_v40  ;;  %v9192_v40 = vld [vmem:[%s11647_s8 + $0x78] sm:$0xff]  }
0x1f34   :  { %8921 = vmatprep.subr.bf16.mxu0 %v9191_v20 }
0x1f35   :  { %v9464_v39 = vpop.eup %9463 }
0x1f36   :  { %v6144_v27 = vmul.f32 %v9464_v39, %v9456_v54  ;;  %v9204_v54 = vld [vmem:[%s11649_s12 + $0x12c] ss:$16 sps:$4 sm:$0xff]  }
0x1f38   :  { %v6148_v49 = vpack.c.bf16 %v6144_v27, %v6144_v27 }
0x1f3a   :  { %8918 = vmatmul.mubr.msk.bf16.vlgmr.msra.gmra.mrb[164].mxu0 %vm1172_vm3, %v6148_v49  ;;  %v9207_v49 = vld [vmem:[%s11649_s12 + $0x144] ss:$16 sps:$4 sm:$0xff]  }
0x1f3b   :  { %8922 = vmatpush3.bf16.msra.mxu0 %v9191_v20  ;;  %v9222_v20 = vld [vmem:[%s11649_s12 + $0x18c] ss:$16 sps:$4 sm:$0xff]  }
0x1f3c   :  { %8923 = vmatprep.subr.bf16.mxu0 %v9192_v40 }
0x1f3f   :  { %8924 = vmatpush3.bf16.msra.mxu0 %v9192_v40  ;;  %v9217_v40 = vld [vmem:[%s11649_s12 + $0x180] ss:$16 sps:$4 sm:$0xff]  }
0x1f40   :  { %6769 = vmatprep.subr.bf16.mxu0 %v9198_v24 }
0x1f74   :  { %v6191_v11 = vpop.f32.mrb[164].mxu1 }
0x1f75   :  { %v8901_v35 = vpop.f32.mrb[165].mxu1 }
0x1f76   :  { %v6194_v1 = vpop.f32.mrb[166].mxu1  ;;  %v9205_v35 = vld [vmem:[%s11649_s12 + $0x140] ss:$16 sps:$4 sm:$0xff]  }
0x1f77   :  { %v8902_v0 = vpop.f32.mrb[167].mxu1  ;;  %v9208_v1 = vld [vmem:[%s11649_s12 + $0x148] ss:$16 sps:$4 sm:$0xff]  }
0x1f78   :  { %v9213_v0 = vld [vmem:[%s11649_s12 + $0x164] ss:$16 sps:$4 sm:$0xff]  }
0x1f7c   :  { %v6287_v38 = vpop.f32.mrb[168].mxu1 }
0x1f7d   :  { %v8913_v61 = vpop.f32.mrb[169].mxu1 }
0x1f7e   :  { %v6290_v8 = vpop.f32.mrb[170].mxu1  ;;  %v9211_v61 = vld [vmem:[%s11649_s12 + $0x160] ss:$16 sps:$4 sm:$0xff]  }
0x1f7f   :  { %v8914_v41 = vpop.f32.mrb[171].mxu1  ;;  %v9214_v8 = vld [vmem:[%s11649_s12 + $0x168] ss:$16 sps:$4 sm:$0xff]  }
0x1f80   :  { %v9219_v41 = vld [vmem:[%s11649_s12 + $0x184] ss:$16 sps:$4 sm:$0xff]  }
0x2005   :  { %v6239_v3 = vpop.f32.mrb[160].mxu0 }
0x2006   :  { %v6341_v10 = vpack.c.bf16 %v6239_v3, %v6191_v11  ;;  %v8907_v33 = vpop.f32.mrb[161].mxu0  ;;  %v9210_v11 = vld [vmem:[%s11649_s12 + $0x14c] ss:$16 sps:$4 sm:$0xff]   ;;  %v9220_v3 = vld [vmem:[%s11649_s12 + $0x188] ss:$16 sps:$4 sm:$0xff]  }
0x2007   :  { %v6242_v48 = vpop.f32.mrb[162].mxu0  ;;  %v9223_v33 = vld [vmem:[%s11649_s12 + $0x1a0] ss:$16 sps:$4 sm:$0xff]  }
0x2008   :  { %v8908_v4 = vpop.f32.mrb[163].mxu0  ;;  %8925 = vmatprep.mubr.msk.bf16.mxu0 %vm979_vm1, %v6341_v10  ;;  %v9225_v10 = vld [vmem:[%s11649_s12 + $0x1a4] ss:$16 sps:$4 sm:$0xff]   ;;  %v9226_v48 = vld [vmem:[%s11649_s12 + $0x1a8] ss:$16 sps:$4 sm:$0xff]  }
0x2009   :  { %v9228_v4 = vld [vmem:[%s11649_s12 + $0x1ac] ss:$16 sps:$4 sm:$0xff]  }
0x200d   :  { %v6335_v57 = vpop.f32.mrb[164].mxu0 }
0x200e   :  { %v6342_v30 = vpack.c.bf16 %v6335_v57, %v6287_v38  ;;  %v8919_v44 = vpop.f32.mrb[165].mxu0  ;;  %v9216_v38 = vld [vmem:[%s11649_s12 + $0x16c] ss:$16 sps:$4 sm:$0xff]   ;;  %v9231_v57 = vld [vmem:[%s11649_s12 + $0x1c4] ss:$16 sps:$4 sm:$0xff]  }
0x200f   :  { %v6338_v36 = vpop.f32.mrb[166].mxu0  ;;  %v9229_v44 = vld [vmem:[%s11649_s12 + $0x1c0] ss:$16 sps:$4 sm:$0xff]  }
0x2010   :  { %v8920_v62 = vpop.f32.mrb[167].mxu0  ;;  %8926 = vmatmul.mubr.msk.bf16.vlgmr.msra.gmra.mrb[136].mxu0 %vm979_vm1, %v6342_v30  ;;  %v9234_v30 = vld [vmem:[%s11649_s12 + $0x1cc] ss:$16 sps:$4 sm:$0xff]   ;;  %v9232_v36 = vld [vmem:[%s11649_s12 + $0x1c8] ss:$16 sps:$4 sm:$0xff]  }
0x2011   :  { %6801 = vmatprep.mubr.bf16.mxu0 %v9516_v2  ;;  %v9237_v62 = vld [vmem:[%s11649_s12 + $0x1e4] ss:$16 sps:$4 sm:$0xff]  }
0x20e3   :  { %v8927_v21 = vpop.f32.mrb[136].mxu0 }
0x20e4   :  { %v6395_v14 = vpop.f32.mrb[137].mxu0  ;;  %v6416_v46 = vadd.f32 %v8927_v21, %v10699_v59  ;;  %v9195_v59 = vld [vmem:[%s11649_s12 + $0x104] ss:$16 sps:$4 sm:$0xff]   ;;  %v9240_v21 = vld [vmem:[%s11649_s12 + $0x1ec] ss:$16 sps:$4 sm:$0xff]  }
0x20e5   :  { %v6414_v12 = vadd.f32 %v6395_v14, %v10691_v37  ;;  %v8928_v9 = vpop.f32.mrb[138].mxu0  ;;  %6716 = vmatprep.subr.bf16.mxu1 %v9195_v59  ;;  %v9238_v14 = vld [vmem:[%s11649_s12 + $0x1e8] ss:$16 sps:$4 sm:$0xff]  }
0x20e6   :  { %v6398_v5 = vpop.f32.mrb[139].mxu0  ;;  %v11207_v53 = vadd.f32 %v7863_v63, %v6416_v46  ;;  %v6417_v23 = vadd.f32 %v8928_v9, %v10702_v32  ;;  %v9196_v32 = vld [vmem:[%s11649_s12 + $0x108] ss:$16 sps:$4 sm:$0xff]  }
0x20e7   :  { %v11201_v51 = vadd.f32 %v7863_v63, %v6414_v12  ;;  %v6415_v28 = vadd.f32 %v6398_v5, %v10694_v34  ;;  %v9193_v34 = vld [vmem:[%s11649_s12 + $0x100] ss:$16 sps:$4 sm:$0xff]   ;;  %6770 = vmatpush1.bf16.msra.mxu0 %v9196_v32 }
0x20e8   :  { %v11212_v37 = vadd.f32 %v7863_v63, %v6417_v23  ;;  %6717 = vmatpush1.bf16.msra.mxu1 %v9193_v34  ;;  %6771 = vmatprep.subr.bf16.mxu0 %v9204_v54 }
0x20e9   :  { %v11204_v13 = vadd.f32 %v7863_v63, %v6415_v28  ;;  %6434 = vadd.xlane.f32.xlu0 %v11201_v51  ;;  %6718 = vmatprep.subr.bf16.mxu1 %v9201_v18  ;;  %v9235_v63 = vld [vmem:[%s11649_s12 + $0x1e0] ss:$16 sps:$4 sm:$0xff]  }
0x20eb   :  { %6436 = vadd.xlane.f32.xlu1 %v11204_v13  ;;  %6772 = vmatpush1.bf16.msra.mxu0 %v9202_v25  ;;  %v7866_v25 = vld [vmem:[%s11650_s10 + $0x1] ss:$0 sm:$0xff] }
0x20ec   :  { %6719 = vmatpush1.bf16.msra.mxu1 %v9199_v58  ;;  %6773 = vmatprep.subr.bf16.mxu0 %v9210_v11 }
0x20ed   :  { %6438 = vadd.xlane.f32.xlu0 %v11207_v53  ;;  %6720 = vmatprep.subr.bf16.mxu1 %v9207_v49 }
0x20ef   :  { %6774 = vmatpush1.bf16.msra.mxu0 %v9208_v1 }
0x20f0   :  { %6721 = vmatpush1.bf16.msra.mxu1 %v9205_v35  ;;  %6775 = vmatprep.subr.bf16.mxu0 %v9216_v38  ;;  %v9245_v38 = vld [vmem:[%s11652_s14 + $0x148] sm:$0xff]  }
0x20f1   :  { %6440 = vadd.xlane.f32.xlu0 %v11212_v37  ;;  %6722 = vmatprep.subr.bf16.mxu1 %v9213_v0  ;;  %v9243_v0 = vld [vmem:[%s11652_s14 + $0x100] sm:$0xff]  }
0x20f3   :  { %6776 = vmatpush1.bf16.msra.mxu0 %v9214_v8  ;;  %v9247_v8 = vld [vmem:[%s11652_s14 + $0x108] sm:$0xff]  }
0x20f4   :  { %6723 = vmatpush1.bf16.msra.mxu1 %v9211_v61  ;;  %6777 = vmatprep.subr.bf16.mxu0 %v9222_v20  ;;  %v9246_v61 = vld [vmem:[%s11652_s14 + $0x1c8] sm:$0xff]   ;;  %v9249_v20 = vld [vmem:[%s11652_s14 + $0x150] sm:$0xff]  }
0x20f5   :  { %6724 = vmatprep.subr.bf16.mxu1 %v9219_v41  ;;  %v9248_v41 = vld [vmem:[%s11652_s14 + $0x188] sm:$0xff]  }
0x20f7   :  { %6778 = vmatpush1.bf16.msra.mxu0 %v9220_v3  ;;  %v9251_v3 = vld [vmem:[%s11652_s14 + $0x110] sm:$0xff]  }
0x20f8   :  { %6725 = vmatpush1.bf16.msra.mxu1 %v9217_v40  ;;  %6779 = vmatprep.subr.bf16.mxu0 %v9228_v4  ;;  %v9250_v40 = vld [vmem:[%s11652_s14 + $0x1d0] sm:$0xff]   ;;  %v9255_v4 = vld [vmem:[%s11652_s14 + $0x118] sm:$0xff]  }
0x20f9   :  { %6726 = vmatprep.subr.bf16.mxu1 %v9225_v10  ;;  %v9252_v10 = vld [vmem:[%s11652_s14 + $0x190] sm:$0xff]  }
0x20fb   :  { %6780 = vmatpush1.bf16.msra.mxu0 %v9226_v48  ;;  %v9254_v48 = vld [vmem:[%s11652_s14 + $0x1d8] sm:$0xff]  }
0x20fc   :  { %6727 = vmatpush1.bf16.msra.mxu1 %v9223_v33  ;;  %6781 = vmatprep.subr.bf16.mxu0 %v9234_v30  ;;  %v9253_v33 = vld [vmem:[%s11652_s14 + $0x158] sm:$0xff]   ;;  %v9257_v30 = vld [vmem:[%s11652_s14 + $0x160] sm:$0xff]  }
0x20fd   :  { %6728 = vmatprep.subr.bf16.mxu1 %v9231_v57  ;;  %v9256_v57 = vld [vmem:[%s11652_s14 + $0x198] sm:$0xff]  }
0x20ff   :  { %6782 = vmatpush1.bf16.msra.mxu0 %v9232_v36  ;;  %v9259_v36 = vld [vmem:[%s11652_s14 + $0x120] sm:$0xff]  }
0x2100   :  { %6729 = vmatpush1.bf16.msra.mxu1 %v9229_v44  ;;  %6783 = vmatprep.subr.bf16.mxu0 %v9240_v21  ;;  %v9258_v44 = vld [vmem:[%s11652_s14 + $0x1e0] sm:$0xff]   ;;  %v9261_v21 = vld [vmem:[%s11652_s14 + $0x168] sm:$0xff]  }
0x2101   :  { %6730 = vmatprep.subr.bf16.mxu1 %v9237_v62  ;;  %v9260_v62 = vld [vmem:[%s11652_s14 + $0x1a0] sm:$0xff]  }
0x2103   :  { %6784 = vmatpush1.bf16.msra.mxu0 %v9238_v14  ;;  %v9263_v14 = vld [vmem:[%s11652_s14 + $0x128] sm:$0xff]  }
0x2104   :  { %6731 = vmatpush1.bf16.msra.mxu1 %v9235_v63  ;;  %v9262_v63 = vld [vmem:[%s11652_s14 + $0x1e8] sm:$0xff]  }
0x2176   :  { %v6435_v6 = vpop.xlane.xlu0 %6434 }
0x2177   :  { %v6442_v50 = vmul.f32 0.0078125, %v6435_v6 }
0x2178   :  { %v6437_v52 = vpop.xlane.xlu1 %6436 }
0x2179   :  { %v11240_v16 = vsub.f32 %v11201_v51, %v6442_v50  ;;  %v6443_v56 = vmul.f32 0.0078125, %v6437_v52 }
0x217a   :  { %v6439_v17 = vpop.xlane.xlu0 %6438 }
0x217b   :  { %v11243_v29 = vsub.f32 %v11204_v13, %v6443_v56  ;;  %v6444_v19 = vmul.f32 0.0078125, %v6439_v17  ;;  %v6450_v22 = vmul.f32 %v11240_v16, %v11240_v16 }
0x217d   :  { %v11248_v55 = vsub.f32 %v11207_v53, %v6444_v19  ;;  %6454 = vadd.xlane.f32.xlu0 %v6450_v22  ;;  %v6451_v31 = vmul.f32 %v11243_v29, %v11243_v29  ;;  %v7867_v19 = vld [vmem:[%s11651_s11 + $0x1] ss:$0 sm:$0xff] }
0x217e   :  { %v6441_v7 = vpop.xlane.xlu0 %6440 }
0x217f   :  { %v6445_v26 = vmul.f32 0.0078125, %v6441_v7  ;;  %6456 = vadd.xlane.f32.xlu1 %v6451_v31  ;;  %v6452_v15 = vmul.f32 %v11248_v55, %v11248_v55 }
0x2181   :  { %v11255_v39 = vsub.f32 %v11212_v37, %v6445_v26  ;;  %6458 = vadd.xlane.f32.xlu0 %v6452_v15 }
0x2183   :  { %v6453_v27 = vmul.f32 %v11255_v39, %v11255_v39 }
0x2185   :  { %6460 = vadd.xlane.f32.xlu1 %v6453_v27 }
0x220a   :  { %v6455_v12 = vpop.xlane.xlu0 %6454 }
0x220b   :  { %v6462_v9 = vmul.f32 0.0078125, %v6455_v12  ;;  %v9264_v12 = vld [vmem:[%s11652_s14 + $0x1a8] sm:$0xff]  }
0x220c   :  { %v6457_v5 = vpop.xlane.xlu1 %6456 }
0x220d   :  { %v6466_v46 = vadd.f32 1e-06, %v6462_v9  ;;  %v6463_v28 = vmul.f32 0.0078125, %v6457_v5  ;;  %v9265_v9 = vld [vmem:[%s11652_s14 + $0x170] sm:$0xff]  }
0x220e   :  { %v6459_v23 = vpop.xlane.xlu0 %6458  ;;  %v9266_v5 = vld [vmem:[%s11652_s14 + $0x1f0] sm:$0xff]  }
0x220f   :  { %9465 = vrsqrt.f32 %v6466_v46  ;;  %v6467_v34 = vadd.f32 1e-06, %v6463_v28  ;;  %v6464_v59 = vmul.f32 0.0078125, %v6459_v23  ;;  %v9267_v46 = vld [vmem:[%s11652_s14 + $0x130] sm:$0xff]   ;;  %v9269_v23 = vld [vmem:[%s11652_s14 + $0x178] sm:$0xff]  }
0x2210   :  { %v9268_v28 = vld [vmem:[%s11652_s14 + $0x1b0] sm:$0xff]  }
0x2211   :  { %9467 = vrsqrt.f32 %v6467_v34  ;;  %v6468_v32 = vadd.f32 1e-06, %v6464_v59  ;;  %v9270_v34 = vld [vmem:[%s11652_s14 + $0x1f8] sm:$0xff]  }
0x2212   :  { %v6461_v24 = vpop.xlane.xlu1 %6460  ;;  %v9271_v59 = vld [vmem:[%s11652_s14 + $0x138] sm:$0xff]  }
0x2213   :  { %9469 = vrsqrt.f32 %v6468_v32  ;;  %v6465_v18 = vmul.f32 0.0078125, %v6461_v24  ;;  %v9272_v32 = vld [vmem:[%s11652_s14 + $0x1b8] sm:$0xff]   ;;  %v7900_v24 = vld [vmem:[%s11653_s13 + $0x4] sm:$0xf] }
0x2215   :  { %v6469_v54 = vadd.f32 1e-06, %v6465_v18  ;;  %v11443_v18 = vrot.slane %v7900_v24, %v9915_v47 }
0x2217   :  { %9471 = vrsqrt.f32 %v6469_v54  ;;  %v11446_v54 = vrot.slane %v7900_v24, %v9911_v45 }
0x2219   :  { %v9466_v58 = vpop.eup %9465 }
0x221a   :  { %v6474_v6 = vmul.f32 %v9466_v58, %v11240_v16  ;;  %v11449_v58 = vrot.slane %v7900_v24, %v9905_v43 }
0x221b   :  { %v9468_v50 = vpop.eup %9467 }
0x221c   :  { %v6475_v52 = vmul.f32 %v9468_v50, %v11243_v29  ;;  %v6484_v56 = vmul.f32 %v7866_v25, %v6474_v6 }
0x221d   :  { %v9470_v17 = vpop.eup %9469 }
0x221e   :  { %v6485_v22 = vmul.f32 %v7866_v25, %v6475_v52  ;;  %v6494_v31 = vadd.f32 %v7867_v19, %v6484_v56  ;;  %v6476_v26 = vmul.f32 %v9470_v17, %v11248_v55  ;;  %v9241_v55 = vld [vmem:[%s11652_s14 + $0x140] sm:$0xff]  }
0x221f   :  { %8355 = vmatprep.subr.bf16.mxu1 %v9241_v55 }
0x2220   :  { %v6495_v7 = vadd.f32 %v7867_v19, %v6485_v22  ;;  %v6486_v16 = vmul.f32 %v7866_v25, %v6476_v26 }
0x2221   :  { %v9472_v15 = vpop.eup %9471 }
0x2222   :  { %v6498_v27 = vpack.c.bf16 %v6495_v7, %v6494_v31  ;;  %v6477_v49 = vmul.f32 %v9472_v15, %v11255_v39  ;;  %v6496_v35 = vadd.f32 %v7867_v19, %v6486_v16  ;;  %v9242_v39 = vld [vmem:[%s11652_s14 + $0x1c0] sm:$0xff]  }
0x2223   :  { %8383 = vmatprep.subr.bf16.mxu0 %v9242_v39 }
0x2224   :  { %6749 = vmatmul.mubr.bf16.vlgmr.msra.gmra.mrb[172].mxu1 %v6498_v27  ;;  %6802 = vmatmul.mubr.bf16.vlgmr.msra.gmra.mrb[168].mxu0 %v6498_v27  ;;  %v6487_v11 = vmul.f32 %v7866_v25, %v6477_v49  ;;  %v11453_v25 = vrot.slane %v7900_v24, %v3177_v60 }
0x2225   :  { %6758 = vmatprep.mubr.bf16.mxu1 %v9516_v2  ;;  %6811 = vmatprep.mubr.bf16.mxu0 %v9516_v2  ;;  %v9244_v2 = vld [vmem:[%s11652_s14 + $0x180] sm:$0xff]  }
0x2226   :  { %v6497_v29 = vadd.f32 %v7867_v19, %v6487_v11  ;;  %8356 = vmatpush3.bf16.msra.mxu1 %v9243_v0  ;;  %8384 = vmatpush3.bf16.msra.mxu0 %v9244_v2 }
0x2227   :  { %8357 = vmatprep.subr.bf16.mxu1 %v9245_v38  ;;  %8385 = vmatprep.subr.bf16.mxu0 %v9246_v61 }
0x2228   :  { %v6499_v1 = vpack.c.bf16 %v6497_v29, %v6496_v35 }
0x222a   :  { %8358 = vmatpush3.bf16.msra.mxu1 %v9247_v8  ;;  %8386 = vmatpush3.bf16.msra.mxu0 %v9248_v41 }
0x222b   :  { %8359 = vmatprep.subr.bf16.mxu1 %v9249_v20  ;;  %8387 = vmatprep.subr.bf16.mxu0 %v9250_v40 }
0x222c   :  { %6759 = vmatmul.mubr.bf16.gmra.mrb[176].mxu1 %v6499_v1  ;;  %6812 = vmatmul.mubr.bf16.gmra.mrb[172].mxu0 %v6499_v1 }
0x222e   :  { %8360 = vmatpush3.bf16.msra.mxu1 %v9251_v3  ;;  %8388 = vmatpush3.bf16.msra.mxu0 %v9252_v10 }
0x222f   :  { %8361 = vmatprep.subr.bf16.mxu1 %v9253_v33  ;;  %8389 = vmatprep.subr.bf16.mxu0 %v9254_v48 }
0x2232   :  { %8362 = vmatpush3.bf16.msra.mxu1 %v9255_v4  ;;  %8390 = vmatpush3.bf16.msra.mxu0 %v9256_v57 }
0x2233   :  { %8363 = vmatprep.subr.bf16.mxu1 %v9257_v30  ;;  %8391 = vmatprep.subr.bf16.mxu0 %v9258_v44 }
0x2236   :  { %8364 = vmatpush3.bf16.msra.mxu1 %v9259_v36  ;;  %8392 = vmatpush3.bf16.msra.mxu0 %v9260_v62 }
0x2237   :  { %8365 = vmatprep.subr.bf16.mxu1 %v9261_v21  ;;  %8393 = vmatprep.subr.bf16.mxu0 %v9262_v63 }
0x223a   :  { %8366 = vmatpush3.bf16.msra.mxu1 %v9263_v14  ;;  %8394 = vmatpush3.bf16.msra.mxu0 %v9264_v12 }
0x223b   :  { %8367 = vmatprep.subr.bf16.mxu1 %v9265_v9  ;;  %8395 = vmatprep.subr.bf16.mxu0 %v9266_v5 }
0x223e   :  { %8368 = vmatpush3.bf16.msra.mxu1 %v9267_v46  ;;  %8396 = vmatpush3.bf16.msra.mxu0 %v9268_v28 }
0x223f   :  { %8369 = vmatprep.subr.bf16.mxu1 %v9269_v23  ;;  %8397 = vmatprep.subr.bf16.mxu0 %v9270_v34 }
0x2242   :  { %8370 = vmatpush3.bf16.msra.mxu1 %v9271_v59  ;;  %8398 = vmatpush3.bf16.msra.mxu0 %v9272_v32 }
0x22f7   :  { %v6750_v6 = vpop.f32.mrb[172].mxu1  ;;  %v6803_v50 = vpop.f32.mrb[168].mxu0 }
0x22f8   :  { %v11456_v52 = vadd.f32 %v6750_v6, %v11443_v18  ;;  %v11459_v56 = vadd.f32 %v6803_v50, %v11446_v54  ;;  %v6752_v47 = vpop.f32.mrb[173].mxu1  ;;  %v6805_v17 = vpop.f32.mrb[169].mxu0 }
0x22f9   :  { %v11462_v45 = vadd.f32 %v6752_v47, %v11449_v58  ;;  %v11465_v43 = vadd.f32 %v6805_v17, %v11453_v25  ;;  %v6754_v19 = vpop.f32.mrb[174].mxu1  ;;  %v6807_v42 = vpop.f32.mrb[170].mxu0 }
0x22fa   :  { %v6822_v60 = vmul.f32 %v11456_v52, %v11456_v52  ;;  %v6824_v22 = vmul.f32 %v11459_v56, %v11459_v56  ;;  %v11472_v31 = vadd.f32 %v6754_v19, %v11443_v18  ;;  %v11475_v7 = vadd.f32 %v6807_v42, %v11446_v54  ;;  %v6756_v26 = vpop.f32.mrb[175].mxu1  ;;  %v6809_v15 = vpop.f32.mrb[171].mxu0 }
0x22fb   :  { %v6823_v27 = vmul.f32 %v11462_v45, %v11462_v45  ;;  %v6825_v49 = vmul.f32 %v11465_v43, %v11465_v43  ;;  %v11482_v16 = vadd.f32 %v6756_v26, %v11449_v58  ;;  %v11485_v11 = vadd.f32 %v6809_v15, %v11453_v25 }
0x22fc   :  { %v6838_v29 = vmul.f32 %v6822_v60, %v11456_v52  ;;  %v6840_v35 = vmul.f32 %v6824_v22, %v11459_v56  ;;  %v6826_v1 = vmul.f32 %v11472_v31, %v11472_v31  ;;  %v6828_v55 = vmul.f32 %v11475_v7, %v11475_v7 }
0x22fd   :  { %v6839_v39 = vmul.f32 %v6823_v27, %v11462_v45  ;;  %v6841_v0 = vmul.f32 %v6825_v49, %v11465_v43  ;;  %v6827_v2 = vmul.f32 %v11482_v16, %v11482_v16  ;;  %v6829_v38 = vmul.f32 %v11485_v11, %v11485_v11 }
0x22fe   :  { %v6854_v61 = vmul.f32 0.044715, %v6838_v29  ;;  %v6856_v8 = vmul.f32 0.044715, %v6840_v35  ;;  %v6842_v41 = vmul.f32 %v6826_v1, %v11472_v31  ;;  %v6844_v20 = vmul.f32 %v6828_v55, %v11475_v7 }
0x22ff   :  { %v6855_v40 = vmul.f32 0.044715, %v6839_v39  ;;  %v6857_v3 = vmul.f32 0.044715, %v6841_v0  ;;  %v6843_v10 = vmul.f32 %v6827_v2, %v11482_v16  ;;  %v6845_v33 = vmul.f32 %v6829_v38, %v11485_v11  ;;  %v6760_v48 = vpop.f32.mrb[176].mxu1  ;;  %v6813_v4 = vpop.f32.mrb[172].mxu0 }
0x2300   :  { %v6870_v57 = vadd.f32 %v6854_v61, %v11456_v52  ;;  %v6872_v30 = vadd.f32 %v6856_v8, %v11459_v56  ;;  %v6858_v44 = vmul.f32 0.044715, %v6842_v41  ;;  %v6860_v36 = vmul.f32 0.044715, %v6844_v20  ;;  %v6762_v62 = vpop.f32.mrb[177].mxu1  ;;  %v6815_v21 = vpop.f32.mrb[173].mxu0 }
0x2301   :  { %v6871_v63 = vadd.f32 %v6855_v40, %v11462_v45  ;;  %v6873_v14 = vadd.f32 %v6857_v3, %v11465_v43  ;;  %v6859_v12 = vmul.f32 0.044715, %v6843_v10  ;;  %v6861_v9 = vmul.f32 0.044715, %v6845_v33  ;;  %v6764_v5 = vpop.f32.mrb[178].mxu1  ;;  %v6817_v46 = vpop.f32.mrb[174].mxu0 }
0x2302   :  { %v6886_v28 = vmul.f32 0.7978846, %v6870_v57  ;;  %v6888_v23 = vmul.f32 0.7978846, %v6872_v30  ;;  %v6874_v34 = vadd.f32 %v6858_v44, %v11472_v31  ;;  %v6876_v59 = vadd.f32 %v6860_v36, %v11475_v7  ;;  %v6766_v32 = vpop.f32.mrb[179].mxu1  ;;  %v6819_v24 = vpop.f32.mrb[175].mxu0 }
0x2303   :  { %v6887_v6 = vmul.f32 0.7978846, %v6871_v63  ;;  %v6889_v50 = vmul.f32 0.7978846, %v6873_v14  ;;  %v6875_v47 = vadd.f32 %v6859_v12, %v11482_v16  ;;  %v6877_v17 = vadd.f32 %v6861_v9, %v11485_v11 }
0x2304   :  { %9473 = vtanh.f32 %v6886_v28  ;;  %v6890_v19 = vmul.f32 0.7978846, %v6874_v34  ;;  %v6892_v42 = vmul.f32 0.7978846, %v6876_v59  ;;  %v11512_v60 = vadd.f32 %v6760_v48, %v11443_v18 }
0x2305   :  { %9475 = vtanh.f32 %v6888_v23  ;;  %v6891_v22 = vmul.f32 0.7978846, %v6875_v47  ;;  %v6893_v26 = vmul.f32 0.7978846, %v6877_v17  ;;  %v11515_v15 = vadd.f32 %v6813_v4, %v11446_v54 }
0x2306   :  { %9477 = vtanh.f32 %v6887_v6  ;;  %v6830_v27 = vmul.f32 %v11512_v60, %v11512_v60  ;;  %v11520_v49 = vadd.f32 %v6762_v62, %v11449_v58  ;;  %v11523_v29 = vadd.f32 %v6815_v21, %v11453_v25 }
0x2307   :  { %9479 = vtanh.f32 %v6889_v50  ;;  %v6832_v35 = vmul.f32 %v11515_v15, %v11515_v15  ;;  %v11528_v1 = vadd.f32 %v6764_v5, %v11443_v18  ;;  %v11531_v55 = vadd.f32 %v6817_v46, %v11446_v54 }
0x2308   :  { %9481 = vtanh.f32 %v6890_v19  ;;  %v6846_v39 = vmul.f32 %v6830_v27, %v11512_v60  ;;  %v6831_v0 = vmul.f32 %v11520_v49, %v11520_v49  ;;  %v6833_v2 = vmul.f32 %v11523_v29, %v11523_v29 }
0x2309   :  { %9483 = vtanh.f32 %v6892_v42  ;;  %v6848_v38 = vmul.f32 %v6832_v35, %v11515_v15  ;;  %v6834_v61 = vmul.f32 %v11528_v1, %v11528_v1  ;;  %v6836_v18 = vmul.f32 %v11531_v55, %v11531_v55 }
0x230a   :  { %9485 = vtanh.f32 %v6891_v22  ;;  %v6862_v54 = vmul.f32 0.044715, %v6846_v39  ;;  %v6847_v8 = vmul.f32 %v6831_v0, %v11520_v49  ;;  %v6849_v41 = vmul.f32 %v6833_v2, %v11523_v29 }
0x230b   :  { %9487 = vtanh.f32 %v6893_v26  ;;  %v6864_v20 = vmul.f32 0.044715, %v6848_v38  ;;  %v6850_v40 = vmul.f32 %v6834_v61, %v11528_v1  ;;  %v6852_v3 = vmul.f32 %v6836_v18, %v11531_v55 }
0x230c   :  { %v6878_v10 = vadd.f32 %v6862_v54, %v11512_v60  ;;  %v6863_v33 = vmul.f32 0.044715, %v6847_v8  ;;  %v6865_v48 = vmul.f32 0.044715, %v6849_v41  ;;  %v11549_v4 = vadd.f32 %v6766_v32, %v11449_v58 }
0x230d   :  { %v6880_v57 = vadd.f32 %v6864_v20, %v11515_v15  ;;  %v6866_v30 = vmul.f32 0.044715, %v6850_v40  ;;  %v6868_v44 = vmul.f32 0.044715, %v6852_v3  ;;  %v11553_v36 = vadd.f32 %v6819_v24, %v11453_v25 }
0x230e   :  { %v9474_v62 = vpop.eup %9473  ;;  %v6894_v21 = vmul.f32 0.7978846, %v6878_v10  ;;  %v6879_v63 = vadd.f32 %v6863_v33, %v11520_v49  ;;  %v6881_v14 = vadd.f32 %v6865_v48, %v11523_v29  ;;  %v6835_v12 = vmul.f32 %v11549_v4, %v11549_v4 }
0x230f   :  { %v9476_v9 = vpop.eup %9475  ;;  %v6918_v5 = vadd.f32 1.0, %v9474_v62  ;;  %v6896_v58 = vmul.f32 0.7978846, %v6880_v57  ;;  %v6882_v46 = vadd.f32 %v6866_v30, %v11528_v1  ;;  %v6884_v28 = vadd.f32 %v6868_v44, %v11531_v55 }
0x2310   :  { %v9478_v23 = vpop.eup %9477  ;;  %v6920_v34 = vadd.f32 1.0, %v9476_v9  ;;  %9489 = vtanh.f32 %v6894_v21  ;;  %v6895_v25 = vmul.f32 0.7978846, %v6879_v63  ;;  %v6897_v59 = vmul.f32 0.7978846, %v6881_v14 }
0x2311   :  { %v9480_v32 = vpop.eup %9479  ;;  %v6934_v24 = vmul.f32 0.5, %v6918_v5  ;;  %9491 = vtanh.f32 %v6896_v58  ;;  %v6898_v6 = vmul.f32 0.7978846, %v6882_v46  ;;  %v6900_v50 = vmul.f32 0.7978846, %v6884_v28 }
0x2312   :  { %v9482_v47 = vpop.eup %9481  ;;  %v6936_v17 = vmul.f32 0.5, %v6920_v34  ;;  %9493 = vtanh.f32 %v6895_v25  ;;  %v6851_v19 = vmul.f32 %v6835_v12, %v11549_v4  ;;  %v6837_v42 = vmul.f32 %v11553_v36, %v11553_v36 }
0x2313   :  { %v9484_v22 = vpop.eup %9483  ;;  %v6950_v26 = vmul.f32 %v6934_v24, %v11456_v52  ;;  %v6922_v27 = vadd.f32 1.0, %v9482_v47  ;;  %9495 = vtanh.f32 %v6897_v59  ;;  %v6919_v35 = vadd.f32 1.0, %v9478_v23 }
0x2314   :  { %v9486_v39 = vpop.eup %9485  ;;  %v6952_v0 = vmul.f32 %v6936_v17, %v11459_v56  ;;  %v6924_v2 = vadd.f32 1.0, %v9484_v22  ;;  %9497 = vtanh.f32 %v6898_v6  ;;  %v6867_v38 = vmul.f32 0.044715, %v6851_v19 }
0x2315   :  { %v9488_v61 = vpop.eup %9487  ;;  %v6938_v18 = vmul.f32 0.5, %v6922_v27  ;;  %9499 = vtanh.f32 %v6900_v50  ;;  %v6853_v54 = vmul.f32 %v6837_v42, %v11553_v36  ;;  %v6923_v8 = vadd.f32 1.0, %v9486_v39 }
0x2316   :  { %v6940_v41 = vmul.f32 0.5, %v6924_v2  ;;  %v6883_v20 = vadd.f32 %v6867_v38, %v11549_v4  ;;  %v6935_v40 = vmul.f32 0.5, %v6919_v35  ;;  %v6921_v52 = vadd.f32 1.0, %v9480_v32 }
0x2317   :  { %v6954_v3 = vmul.f32 %v6938_v18, %v11472_v31  ;;  %v6869_v10 = vmul.f32 0.044715, %v6853_v54  ;;  %v6939_v33 = vmul.f32 0.5, %v6923_v8  ;;  %v6925_v48 = vadd.f32 1.0, %v9488_v61 }
0x2318   :  { %v6956_v56 = vmul.f32 %v6940_v41, %v11475_v7  ;;  %v6899_v57 = vmul.f32 0.7978846, %v6883_v20  ;;  %v6951_v30 = vmul.f32 %v6935_v40, %v11462_v45  ;;  %v6937_v44 = vmul.f32 0.5, %v6921_v52 }
0x2319   :  { %v6966_v62 = vpack.c.bf16 %v6954_v3, %v6950_v26  ;;  %v6885_v21 = vadd.f32 %v6869_v10, %v11553_v36  ;;  %v6955_v63 = vmul.f32 %v6939_v33, %v11482_v16  ;;  %v6941_v14 = vmul.f32 0.5, %v6925_v48 }
0x231a   :  { %v9490_v12 = vpop.eup %9489  ;;  %v6968_v9 = vpack.c.bf16 %v6956_v56, %v6952_v0  ;;  %9501 = vtanh.f32 %v6899_v57  ;;  %v6953_v31 = vmul.f32 %v6937_v44, %v11465_v43 }
0x231b   :  { %v9492_v5 = vpop.eup %9491  ;;  %v6901_v58 = vmul.f32 0.7978846, %v6885_v21  ;;  %v6967_v46 = vpack.c.bf16 %v6955_v63, %v6951_v30  ;;  %v6957_v7 = vmul.f32 %v6941_v14, %v11485_v11  ;;  %v6926_v28 = vadd.f32 1.0, %v9490_v12 }
0x231c   :  { %v9494_v23 = vpop.eup %9493  ;;  %v6928_v45 = vadd.f32 1.0, %v9492_v5 }
0x231d   :  { %v9496_v34 = vpop.eup %9495  ;;  %9503 = vtanh.f32 %v6901_v58  ;;  %7263 = vmatprep.mubr.bf16.mxu1 %v6967_v46  ;;  %v6969_v25 = vpack.c.bf16 %v6957_v7, %v6953_v31  ;;  %v6942_v24 = vmul.f32 0.5, %v6926_v28  ;;  %v6927_v50 = vadd.f32 1.0, %v9494_v23 }
0x231e   :  { %v9498_v59 = vpop.eup %9497  ;;  %7264 = vmatmul.mubr.bf16.vlgmr.msra.gmra.mrb[180].mxu1 %v6966_v62  ;;  %v6944_v6 = vmul.f32 0.5, %v6928_v45  ;;  %v6929_v22 = vadd.f32 1.0, %v9496_v34 }
0x231f   :  { %v9500_v16 = vpop.eup %9499  ;;  %7312 = vmatprep.mubr.bf16.mxu0 %v6969_v25  ;;  %v6930_v32 = vadd.f32 1.0, %v9498_v59  ;;  %v6958_v11 = vmul.f32 %v6942_v24, %v11512_v60  ;;  %v6943_v39 = vmul.f32 0.5, %v6927_v50 }
0x2320   :  { %7313 = vmatmul.mubr.bf16.vlgmr.msra.gmra.mrb[176].mxu0 %v6968_v9  ;;  %v6932_v43 = vadd.f32 1.0, %v9500_v16  ;;  %v6960_v26 = vmul.f32 %v6944_v6, %v11515_v15  ;;  %v6945_v54 = vmul.f32 0.5, %v6929_v22 }
0x2321   :  { %v6946_v47 = vmul.f32 0.5, %v6930_v32  ;;  %v6959_v8 = vmul.f32 %v6943_v39, %v11520_v49 }
0x2322   :  { %v6948_v17 = vmul.f32 0.5, %v6932_v43  ;;  %v6961_v20 = vmul.f32 %v6945_v54, %v11523_v29  ;;  %v9276_v54 = vld [vmem:[%s11655_s18 + $0x18] sm:$0xff]  }
0x2323   :  { %v6962_v19 = vmul.f32 %v6946_v47, %v11528_v1 }
0x2324   :  { %v9502_v42 = vpop.eup %9501  ;;  %v6964_v27 = vmul.f32 %v6948_v17, %v11531_v55 }
0x2325   :  { %v6931_v35 = vadd.f32 1.0, %v9502_v42  ;;  %v6970_v0 = vpack.c.bf16 %v6962_v19, %v6958_v11 }
0x2326   :  { %v6972_v2 = vpack.c.bf16 %v6964_v27, %v6960_v26 }
0x2327   :  { %v9504_v38 = vpop.eup %9503  ;;  %v6947_v61 = vmul.f32 0.5, %v6931_v35 }
0x2328   :  { %v6933_v18 = vadd.f32 1.0, %v9504_v38  ;;  %v9273_v38 = vld [vmem:[%s11655_s18] sm:$0xff]  }
0x2329   :  { %v6963_v60 = vmul.f32 %v6947_v61, %v11549_v4  ;;  %v9274_v61 = vld [vmem:[%s11655_s18 + $0x8] sm:$0xff]   ;;  %8929 = vmatprep.subr.bf16.mxu1 %v9273_v38 }
0x232a   :  { %v6949_v41 = vmul.f32 0.5, %v6933_v18  ;;  %8930 = vmatpush3.bf16.msra.mxu1 %v9273_v38  ;;  %v9275_v18 = vld [vmem:[%s11655_s18 + $0x10] sm:$0xff]  }
0x232b   :  { %v6971_v1 = vpack.c.bf16 %v6963_v60, %v6959_v8  ;;  %8931 = vmatprep.subr.bf16.mxu1 %v9274_v61  ;;  %v9277_v8 = vld [vmem:[%s11655_s18 + $0x20] sm:$0xff]   ;;  %v9278_v60 = vld [vmem:[%s11655_s18 + $0x28] sm:$0xff]  }
0x232c   :  { %v6965_v15 = vmul.f32 %v6949_v41, %v11553_v36  ;;  %v8030_v36 = vld [vmem:[%s11654_s15 + $0x1] ss:$0 sm:$0xff]  ;;  %v9279_v41 = vld [vmem:[%s11655_s18 + $0x30] sm:$0xff]  }
0x232d   :  { %7271 = vmatprep.mubr.bf16.mxu1 %v6971_v1  ;;  %v9280_v1 = vld [vmem:[%s11655_s18 + $0x38] sm:$0xff]  }
0x232e   :  { %v6973_v55 = vpack.c.bf16 %v6965_v15, %v6961_v20  ;;  %7272 = vmatmul.mubr.bf16.gmra.mrb[184].mxu1 %v6970_v0 }
0x232f   :  { %8932 = vmatpush3.bf16.msra.mxu1 %v9274_v61 }
0x2330   :  { %7320 = vmatprep.mubr.bf16.mxu0 %v6973_v55  ;;  %8933 = vmatprep.subr.bf16.mxu1 %v9275_v18 }
0x2331   :  { %7321 = vmatmul.mubr.bf16.gmra.mrb[180].mxu0 %v6972_v2 }
0x2333   :  { %8934 = vmatpush3.bf16.msra.mxu1 %v9275_v18 }
0x2334   :  { %8935 = vmatprep.subr.bf16.mxu1 %v9276_v54 }
0x2337   :  { %8936 = vmatpush3.bf16.msra.mxu1 %v9276_v54 }
0x2338   :  { %8937 = vmatprep.subr.bf16.mxu1 %v9277_v8 }
0x233b   :  { %8938 = vmatpush3.bf16.msra.mxu1 %v9277_v8 }
0x233c   :  { %8939 = vmatprep.subr.bf16.mxu1 %v9278_v60 }
0x233f   :  { %8940 = vmatpush3.bf16.msra.mxu1 %v9278_v60 }
0x2340   :  { %8941 = vmatprep.subr.bf16.mxu1 %v9279_v41 }
0x2343   :  { %8942 = vmatpush3.bf16.msra.mxu1 %v9279_v41 }
0x2344   :  { %8943 = vmatprep.subr.bf16.mxu1 %v9280_v1 }
0x2347   :  { %8944 = vmatpush3.bf16.msra.mxu1 %v9280_v1 }
0x23f1   :  { %v8371_v40 = vpop.f32.mrb[180].mxu1 }
0x23f2   :  { %v8372_v52 = vpop.f32.mrb[181].mxu1 }
0x23f3   :  { %v8399_v3 = vpop.f32.mrb[176].mxu0  ;;  %v8373_v10 = vadd.f32 %v8372_v52, %v8371_v40  ;;  %v8374_v33 = vpop.f32.mrb[182].mxu1 }
0x23f4   :  { %v8400_v48 = vpop.f32.mrb[177].mxu0  ;;  %v8375_v49 = vpop.f32.mrb[183].mxu1 }
0x23f5   :  { %v8401_v56 = vadd.f32 %v8400_v48, %v8399_v3  ;;  %v8402_v4 = vpop.f32.mrb[178].mxu0  ;;  %v8376_v57 = vadd.f32 %v8375_v49, %v8374_v33  ;;  %v8031_v33 = vld [vmem:[%s11656_s16] ss:$0 sm:$0xff] }
0x23f6   :  { %v8403_v30 = vpop.f32.mrb[179].mxu0 }
0x23f7   :  { %v7315_v44 = vadd.f32 %v8401_v56, %v8373_v10  ;;  %v8404_v29 = vadd.f32 %v8403_v30, %v8402_v4 }
0x23f9   :  { %v7329_v62 = vadd.f32 %v7315_v44, %v11201_v51  ;;  %v7318_v21 = vadd.f32 %v8404_v29, %v8376_v57  ;;  %v8032_v29 = vld [vmem:[%s11657_s17] ss:$0 sm:$0xff] }
0x23fb   :  { %v7330_v63 = vadd.f32 %v7318_v21, %v11204_v13  ;;  %v7341_v14 = vadd.f32 %v8030_v36, %v7329_v62 }
0x23fd   :  { %7347 = vadd.xlane.f32.xlu0 %v7341_v14  ;;  %v7342_v12 = vadd.f32 %v8030_v36, %v7330_v63 }
0x23ff   :  { %7349 = vadd.xlane.f32.xlu1 %v7342_v12 }
0x2401   :  { %v8377_v9 = vpop.f32.mrb[184].mxu1 }
0x2402   :  { %v8378_v31 = vpop.f32.mrb[185].mxu1 }
0x2403   :  { %v8379_v5 = vadd.f32 %v8378_v31, %v8377_v9  ;;  %v8380_v58 = vpop.f32.mrb[186].mxu1 }
0x2404   :  { %v8405_v46 = vpop.f32.mrb[180].mxu0  ;;  %v8381_v7 = vpop.f32.mrb[187].mxu1 }
0x2405   :  { %v8406_v28 = vpop.f32.mrb[181].mxu0  ;;  %v8382_v23 = vadd.f32 %v8381_v7, %v8380_v58 }
0x2406   :  { %v8407_v45 = vadd.f32 %v8406_v28, %v8405_v46  ;;  %v8408_v34 = vpop.f32.mrb[182].mxu0 }
0x2407   :  { %v8409_v25 = vpop.f32.mrb[183].mxu0 }
0x2408   :  { %v7323_v59 = vadd.f32 %v8407_v45, %v8379_v5  ;;  %v8410_v51 = vadd.f32 %v8409_v25, %v8408_v34 }
0x240a   :  { %v7331_v16 = vadd.f32 %v7323_v59, %v11207_v53  ;;  %v7326_v13 = vadd.f32 %v8410_v51, %v8382_v23  ;;  %v8033_v59 = vld [vmem:[%s11658_s19] ss:$0 sm:$0xff] }
0x240c   :  { %v7332_v32 = vadd.f32 %v7326_v13, %v11212_v37  ;;  %v7343_v24 = vadd.f32 %v8030_v36, %v7331_v16 }
0x240e   :  { %7351 = vadd.xlane.f32.xlu0 %v7343_v24  ;;  %v7344_v43 = vadd.f32 %v8030_v36, %v7332_v32 }
0x2410   :  { %7353 = vadd.xlane.f32.xlu1 %v7344_v43 }
0x248a   :  { %v7348_v6 = vpop.xlane.xlu0 %7347 }
0x248b   :  { %v7355_v50 = vmul.f32 0.0078125, %v7348_v6 }
0x248c   :  { %v7350_v47 = vpop.xlane.xlu1 %7349 }
0x248d   :  { %v7359_v17 = vsub.f32 %v7341_v14, %v7355_v50  ;;  %v7356_v11 = vmul.f32 0.0078125, %v7350_v47 }
0x248f   :  { %v7360_v19 = vsub.f32 %v7342_v12, %v7356_v11  ;;  %v7363_v42 = vmul.f32 %v7359_v17, %v7359_v17 }
0x2491   :  { %7367 = vadd.xlane.f32.xlu0 %v7363_v42  ;;  %v7364_v22 = vmul.f32 %v7360_v19, %v7360_v19 }
0x2493   :  { %7369 = vadd.xlane.f32.xlu1 %v7364_v22 }
0x249b   :  { %v7352_v26 = vpop.xlane.xlu0 %7351 }
0x249c   :  { %v7357_v27 = vmul.f32 0.0078125, %v7352_v26 }
0x249d   :  { %v7354_v53 = vpop.xlane.xlu1 %7353 }
0x249e   :  { %v11590_v35 = vsub.f32 %v7343_v24, %v7357_v27  ;;  %v7358_v37 = vmul.f32 0.0078125, %v7354_v53 }
0x24a0   :  { %v11592_v39 = vsub.f32 %v7344_v43, %v7358_v37  ;;  %v7365_v0 = vmul.f32 %v11590_v35, %v11590_v35 }
0x24a2   :  { %7371 = vadd.xlane.f32.xlu0 %v7365_v0  ;;  %v7366_v2 = vmul.f32 %v11592_v39, %v11592_v39 }
0x24a4   :  { %7373 = vadd.xlane.f32.xlu1 %v7366_v2 }
0x251e   :  { %v7368_v20 = vpop.xlane.xlu0 %7367 }
0x251f   :  { %v7375_v15 = vmul.f32 0.0078125, %v7368_v20 }
0x2520   :  { %v7370_v55 = vpop.xlane.xlu1 %7369 }
0x2521   :  { %v7379_v40 = vadd.f32 1e-06, %v7375_v15  ;;  %v7376_v52 = vmul.f32 0.0078125, %v7370_v55 }
0x2523   :  { %9505 = vrsqrt.f32 %v7379_v40  ;;  %v7380_v3 = vadd.f32 1e-06, %v7376_v52 }
0x2525   :  { %9507 = vrsqrt.f32 %v7380_v3 }
0x252d   :  { %v9506_v10 = vpop.eup %9505 }
0x252e   :  { %v7387_v48 = vmul.f32 %v9506_v10, %v7359_v17 }
0x252f   :  { %v9508_v49 = vpop.eup %9507  ;;  %v7372_v56 = vpop.xlane.xlu0 %7371 }
0x2530   :  { %v7377_v4 = vmul.f32 0.0078125, %v7372_v56  ;;  %v7388_v57 = vmul.f32 %v9508_v49, %v7360_v19  ;;  %v7397_v30 = vmul.f32 %v8031_v33, %v7387_v48 }
0x2531   :  { %v7374_v44 = vpop.xlane.xlu1 %7373 }
0x2532   :  { %v7381_v36 = vadd.f32 1e-06, %v7377_v4  ;;  %v7378_v62 = vmul.f32 0.0078125, %v7374_v44  ;;  %v7398_v21 = vmul.f32 %v8031_v33, %v7388_v57  ;;  %v7407_v14 = vadd.f32 %v8032_v29, %v7397_v30 }
0x2534   :  { %9509 = vrsqrt.f32 %v7381_v36  ;;  %v7382_v63 = vadd.f32 1e-06, %v7378_v62  ;;  %v7408_v12 = vadd.f32 %v8032_v29, %v7398_v21 }
0x2536   :  { %9511 = vrsqrt.f32 %v7382_v63  ;;  %v7411_v9 = vpack.c.bf16 %v7408_v12, %v7407_v14 }
0x2538   :  { %8945 = vmatprep.mubr.bf16.mxu1 %v7411_v9 }
0x253e   :  { %v9510_v31 = vpop.eup %9509 }
0x253f   :  { %v7389_v5 = vmul.f32 %v9510_v31, %v11590_v35 }
0x2540   :  { %v9512_v58 = vpop.eup %9511 }
0x2541   :  { %v7390_v46 = vmul.f32 %v9512_v58, %v11592_v39  ;;  %v7399_v7 = vmul.f32 %v8031_v33, %v7389_v5 }
0x2543   :  { %v7400_v28 = vmul.f32 %v8031_v33, %v7390_v46  ;;  %v7409_v23 = vadd.f32 %v8032_v29, %v7399_v7 }
0x2545   :  { %v7410_v45 = vadd.f32 %v8032_v29, %v7400_v28 }
0x2547   :  { %v7412_v34 = vpack.c.bf16 %v7410_v45, %v7409_v23 }
0x2549   :  { %8946 = vmatmul.mubr.bf16.vlgmr.msra.gmra.mrb[188].mxu1 %v7412_v34 }
0x261c   :  { %v8947_v25 = vpop.f32.mrb[188].mxu1 }
0x261d   :  { %v7518_v51 = vpop.f32.mrb[189].mxu1  ;;  %v7527_v13 = vadd.f32 %v8947_v25, %v8033_v59 }
0x261e   :  { %v8948_v16 = vpop.f32.mrb[190].mxu1  ;;  %v7519_v43 = vadd.f32 %v8033_v59, %v7518_v51 }
0x261f   :  { %v7530_v32 = vadd.f32 %v8948_v16, %v8033_v59  ;;  %v7521_v24 = vpop.f32.mrb[191].mxu1 }
0x2620   :  { %v7522_v6 = vadd.f32 %v8033_v59, %v7521_v24 }
0x2621   :  { %v8050_v50 = vpack.c.bf16 %v7530_v32, %v7527_v13 }
0x2622   :  { %v8045_v47 = vpack.c.bf16 %v7522_v6, %v7519_v43 }
0x2623   :  { %8052 = vst [vmem:[%s11659_s20 + $0x8] sm:$0xff] %v8050_v50  }
0x2624   :  { %8046 = vst [vmem:[%s11659_s20] sm:$0xff] %v8045_v47  }

</bundles_post_ra>
